<compile_context>
chip_gen: v7x
topology: tpu7x:2x2x1
jax: 0.10.0
libtpu: 0.0.40
codegen_flags: <defaults>
</compile_context>

<pallas_src>
import functools
import math

import jax
import jax.numpy as jnp
from jax.experimental import pallas as pl
from jax.experimental.pallas import tpu as pltpu

# Explicit scoped-VMEM cap: within v7x's 64 MiB physical, comfortably under
# v5e/v6e's 128 MiB; demo working sets are far below this.
_VMEM_LIMIT = 64 * 1024 * 1024


# ----------------------------------------------------------------------------
# helpers
# ----------------------------------------------------------------------------
def _fit_tile(dim, want, align):
    """Pick a tile size: full dim if it fits, else a multiple of `align`."""
    if want >= dim:
        return dim
    return max(align, (want // align) * align)


# ----------------------------------------------------------------------------
# Tiled matmul with optional bias / activation / residual fusion
#   grid = (M//tm, N//tn, K//tk), f32 VMEM accumulator, K-reduction axis last.
#   Defaults sized for the 256x256 MXU (v6e/v7x); tk pushed toward full K.
# ----------------------------------------------------------------------------
def _linear_kernel(x_ref, w_ref, *rest, activation, has_bias, has_residual):
    idx = 0
    b_ref = None
    r_ref = None
    if has_bias:
        b_ref = rest[idx]
        idx += 1
    if has_residual:
        r_ref = rest[idx]
        idx += 1
    o_ref = rest[idx]
    acc_ref = rest[idx + 1]

    @pl.when(pl.program_id(2) == 0)
    def _():
        acc_ref[...] = jnp.zeros_like(acc_ref)

    acc_ref[...] += jnp.dot(x_ref[...], w_ref[...],
                            preferred_element_type=jnp.float32)

    @pl.when(pl.program_id(2) == pl.num_programs(2) - 1)
    def _():
        out = acc_ref[...]
        if has_bias:
            out = out + b_ref[...]
        if activation == "quick_gelu":              # CLIP QuickGELU
            out = out * jax.nn.sigmoid(1.702 * out)
        if has_residual:
            out = out + r_ref[...].astype(jnp.float32)
        o_ref[...] = out.astype(o_ref.dtype)


def linear(x, w, bias=None, residual=None, activation=None, *,
           tm=256, tn=256, tk=1024, out_dtype=jnp.bfloat16):
    """o = act(x @ w + bias) (+ residual).  x:(M,K) bf16, w:(K,N) bf16."""
    M, K = x.shape
    K2, N = w.shape
    assert K == K2
    tm = _fit_tile(M, tm, 8)
    tn = _fit_tile(N, tn, 128)
    tk = _fit_tile(K, tk, 128)
    if K % tk:
        # Padding on the reduction axis would be accumulated into the result.
        tk = K
    grid = (pl.cdiv(M, tm), pl.cdiv(N, tn), pl.cdiv(K, tk))

    in_specs = [
        pl.BlockSpec((tm, tk), lambda i, j, k: (i, k)),
        pl.BlockSpec((tk, tn), lambda i, j, k: (k, j)),
    ]
    args = [x, w]
    if bias is not None:
        in_specs.append(pl.BlockSpec((1, tn), lambda i, j, k: (0, j)))
        args.append(bias)
    if residual is not None:
        in_specs.append(pl.BlockSpec((tm, tn), lambda i, j, k: (i, j)))
        args.append(residual)

    kernel = functools.partial(_linear_kernel, activation=activation,
                               has_bias=bias is not None,
                               has_residual=residual is not None)
    return pl.pallas_call(
        kernel,
        out_shape=jax.ShapeDtypeStruct((M, N), out_dtype),
        grid=grid,
        in_specs=in_specs,
        out_specs=pl.BlockSpec((tm, tn), lambda i, j, k: (i, j)),
        scratch_shapes=[pltpu.VMEM((tm, tn), jnp.float32)],
        compiler_params=pltpu.CompilerParams(
            dimension_semantics=("parallel", "parallel", "arbitrary"),
            vmem_limit_bytes=_VMEM_LIMIT),
    )(*args)


# ----------------------------------------------------------------------------
# cls-token prepend + positional-embedding add + ln_pre, fused into one kernel
# gridded over batch (removes a full XLA read+write pass over the stream).
# ----------------------------------------------------------------------------
def _embed_ln_pre_kernel(xp_ref, cls_ref, pos_ref, g_ref, b_ref, o_ref, *, eps):
    xp = xp_ref[0].astype(jnp.float32)                       # (S-1, D)
    cls = cls_ref[...].astype(jnp.float32)                   # (1, D)
    x = jnp.concatenate([cls, xp], axis=0)                   # (S, D)
    x = x + pos_ref[...].astype(jnp.float32)
    mean = jnp.mean(x, axis=-1, keepdims=True)
    var = jnp.mean(jnp.square(x - mean), axis=-1, keepdims=True)
    o_ref[0] = ((x - mean) * jax.lax.rsqrt(var + eps) * g_ref[...]
                + b_ref[...]).astype(o_ref.dtype)


def embed_ln_pre(patch_emb, class_emb, pos_emb, gamma, beta, *, eps=1e-5,
                 out_dtype=jnp.bfloat16):
    """(B, S-1, D) patch embeddings -> ln_pre(cat(cls, patches) + pos), (B, S, D)."""
    B, Sm1, D = patch_emb.shape
    S = Sm1 + 1
    kernel = functools.partial(_embed_ln_pre_kernel, eps=eps)
    return pl.pallas_call(
        kernel,
        out_shape=jax.ShapeDtypeStruct((B, S, D), out_dtype),
        grid=(B,),
        in_specs=[
            pl.BlockSpec((1, Sm1, D), lambda b: (b, 0, 0)),
            pl.BlockSpec((1, D), lambda b: (0, 0)),
            pl.BlockSpec((S, D), lambda b: (0, 0)),
            pl.BlockSpec((1, D), lambda b: (0, 0)),
            pl.BlockSpec((1, D), lambda b: (0, 0)),
        ],
        out_specs=pl.BlockSpec((1, S, D), lambda b: (b, 0, 0)),
        compiler_params=pltpu.CompilerParams(
            dimension_semantics=("parallel",),
            vmem_limit_bytes=_VMEM_LIMIT),
    )(patch_emb, class_emb, pos_emb, gamma, beta)


# ----------------------------------------------------------------------------
# Fused attention block: LN1 + QKV projection + multi-head softmax attention
# + output projection + residual, one pallas_call gridded over batch.
# Per-head outputs are accumulated directly into the output projection
# (no head concat, fewer live f32 intermediates).
# ----------------------------------------------------------------------------
# TODO(synk): for v7x (2 TCs) add a second parallel grid axis (query-row tiles)
# so odd/small batch sizes do not leave a core idle at real CLIP sizes.
def _attn_block_kernel(x_ref, g1_ref, b1_ref, wqkv_ref, bqkv_ref,
                       wout_ref, bout_ref, o_ref, *, heads, scale, eps):
    x = x_ref[0].astype(jnp.float32)                        # (S, D)
    S, D = x.shape
    Dh = D // heads

    # LN1 (f32 math), cast to bf16 for the MXU
    mean = jnp.mean(x, axis=-1, keepdims=True)
    var = jnp.mean(jnp.square(x - mean), axis=-1, keepdims=True)
    xn = (x - mean) * jax.lax.rsqrt(var + eps) * g1_ref[...] + b1_ref[...]
    xn_bf = xn.astype(jnp.bfloat16)

    # QKV projection, kept resident in VMEM/vregs
    qkv = jnp.dot(xn_bf, wqkv_ref[...],
                  preferred_element_type=jnp.float32) + bqkv_ref[...]  # (S, 3D)
    wout = wout_ref[...]                                    # (D, D) bf16

    attn = jnp.zeros((S, D), jnp.float32)
    for h in range(heads):
        q = qkv[:, h * Dh:(h + 1) * Dh]
        k = qkv[:, D + h * Dh:D + (h + 1) * Dh]
        v = qkv[:, 2 * D + h * Dh:2 * D + (h + 1) * Dh]
        # scores without an explicit k.T (contract last dims of q and k)
        s = jax.lax.dot_general(q, k, (((1,), (1,)), ((), ())),
                                preferred_element_type=jnp.float32) * scale
        s = s - jnp.max(s, axis=-1, keepdims=True)
        p = jnp.exp(s)
        denom = jnp.sum(p, axis=-1, keepdims=True)
        p = p * pl.reciprocal(denom, approx=True)           # EUP, not VPU divide
        o_h = jnp.dot(p.astype(jnp.bfloat16), v.astype(jnp.bfloat16),
                      preferred_element_type=jnp.float32)   # (S, Dh)
        # accumulate this head's contribution to the output projection
        attn = attn + jnp.dot(o_h.astype(jnp.bfloat16),
                              wout[h * Dh:(h + 1) * Dh, :],
                              preferred_element_type=jnp.float32)

    attn = attn + bout_ref[...]
    o_ref[0] = (x + attn).astype(o_ref.dtype)               # residual add fused


def attention_block(x, blk, heads, *, eps=1e-5):
    """x: (B, S, D) bf16 residual stream -> x + MHA(LN1(x)), (B, S, D) bf16."""
    B, S, D = x.shape
    scale = 1.0 / math.sqrt(D // heads)
    kernel = functools.partial(_attn_block_kernel, heads=heads, scale=scale,
                               eps=eps)
    return pl.pallas_call(
        kernel,
        out_shape=jax.ShapeDtypeStruct((B, S, D), x.dtype),
        grid=(B,),
        in_specs=[
            pl.BlockSpec((1, S, D), lambda b: (b, 0, 0)),
            pl.BlockSpec((1, D), lambda b: (0, 0)),
            pl.BlockSpec((1, D), lambda b: (0, 0)),
            pl.BlockSpec((D, 3 * D), lambda b: (0, 0)),
            pl.BlockSpec((1, 3 * D), lambda b: (0, 0)),
            pl.BlockSpec((D, D), lambda b: (0, 0)),
            pl.BlockSpec((1, D), lambda b: (0, 0)),
        ],
        out_specs=pl.BlockSpec((1, S, D), lambda b: (b, 0, 0)),
        compiler_params=pltpu.CompilerParams(
            dimension_semantics=("parallel",),
            vmem_limit_bytes=_VMEM_LIMIT),
    )(x, blk["ln1_g"], blk["ln1_b"], blk["wqkv"], blk["bqkv"],
      blk["wout"], blk["bout"])


# ----------------------------------------------------------------------------
# Fused MLP block: LN2 + fc + QuickGELU + proj + residual, one pallas_call
# gridded over row tiles of the flattened (B*S, D) stream.  The (tm, 4D)
# hidden activation lives only in VMEM/vregs (no HBM round trip).
# ----------------------------------------------------------------------------
def _mlp_block_kernel(x_ref, g_ref, b_ref, wfc_ref, bfc_ref,
                      wproj_ref, bproj_ref, o_ref, *, eps):
    x = x_ref[...].astype(jnp.float32)                      # (tm, D)
    mean = jnp.mean(x, axis=-1, keepdims=True)
    var = jnp.mean(jnp.square(x - mean), axis=-1, keepdims=True)
    xn = ((x - mean) * jax.lax.rsqrt(var + eps) * g_ref[...]
          + b_ref[...]).astype(jnp.bfloat16)
    h = jnp.dot(xn, wfc_ref[...],
                preferred_element_type=jnp.float32) + bfc_ref[...]     # (tm, 4D)
    h = h * jax.nn.sigmoid(1.702 * h)                       # QuickGELU, f32
    y = jnp.dot(h.astype(jnp.bfloat16), wproj_ref[...],
                preferred_element_type=jnp.float32) + bproj_ref[...]   # (tm, D)
    o_ref[...] = (x + y).astype(o_ref.dtype)                # residual add fused


def mlp_block(x, blk, *, tm=256, eps=1e-5):
    """x: (B, S, D) bf16 residual stream -> x + MLP(LN2(x)), (B, S, D) bf16."""
    B, S, D = x.shape
    M = B * S
    x2d = x.reshape(M, D)
    H = blk["wfc"].shape[-1]
    tm = _fit_tile(M, tm, 8)
    kernel = functools.partial(_mlp_block_kernel, eps=eps)
    out = pl.pallas_call(
        kernel,
        out_shape=jax.ShapeDtypeStruct((M, D), x.dtype),
        grid=(pl.cdiv(M, tm),),
        in_specs=[
            pl.BlockSpec((tm, D), lambda i: (i, 0)),
            pl.BlockSpec((1, D), lambda i: (0, 0)),
            pl.BlockSpec((1, D), lambda i: (0, 0)),
            pl.BlockSpec((D, H), lambda i: (0, 0)),
            pl.BlockSpec((1, H), lambda i: (0, 0)),
            pl.BlockSpec((H, D), lambda i: (0, 0)),
            pl.BlockSpec((1, D), lambda i: (0, 0)),
        ],
        out_specs=pl.BlockSpec((tm, D), lambda i: (i, 0)),
        compiler_params=pltpu.CompilerParams(
            dimension_semantics=("parallel",),
            vmem_limit_bytes=_VMEM_LIMIT),
    )(x2d, blk["ln2_g"], blk["ln2_b"], blk["wfc"], blk["bfc"],
      blk["wproj"], blk["bproj"])
    return out.reshape(B, S, D)


# ----------------------------------------------------------------------------
# ln_post + final projection + L2 normalization, fused and tiled over batch.
# ----------------------------------------------------------------------------
def _ln_proj_l2_kernel(x_ref, g_ref, b_ref, w_ref, o_ref, *, eps, l2_eps):
    x = x_ref[...].astype(jnp.float32)                      # (tb, D)
    mean = jnp.mean(x, axis=-1, keepdims=True)
    var = jnp.mean(jnp.square(x - mean), axis=-1, keepdims=True)
    xn = (x - mean) * jax.lax.rsqrt(var + eps) * g_ref[...] + b_ref[...]
    out = jnp.dot(xn.astype(jnp.bfloat16), w_ref[...],
                  preferred_element_type=jnp.float32)       # (tb, out_dim)
    # img_features = outputs / outputs.norm(dim=-1, keepdim=True)
    nsq = jnp.sum(out * out, axis=-1, keepdims=True)
    o_ref[...] = (out * jax.lax.rsqrt(nsq + l2_eps)).astype(o_ref.dtype)


def ln_proj_l2(x, gamma, beta, w, *, tb=256, eps=1e-5, l2_eps=1e-12):
    B, D = x.shape
    D2, N = w.shape
    assert D == D2
    tb = _fit_tile(B, tb, 8)
    kernel = functools.partial(_ln_proj_l2_kernel, eps=eps, l2_eps=l2_eps)
    return pl.pallas_call(
        kernel,
        out_shape=jax.ShapeDtypeStruct((B, N), jnp.float32),
        grid=(pl.cdiv(B, tb),),
        in_specs=[
            pl.BlockSpec((tb, D), lambda i: (i, 0)),
            pl.BlockSpec((1, D), lambda i: (0, 0)),
            pl.BlockSpec((1, D), lambda i: (0, 0)),
            pl.BlockSpec((D, N), lambda i: (0, 0)),
        ],
        out_specs=pl.BlockSpec((tb, N), lambda i: (i, 0)),
        compiler_params=pltpu.CompilerParams(
            dimension_semantics=("parallel",),
            vmem_limit_bytes=_VMEM_LIMIT),
    )(x, gamma, beta, w)


# ----------------------------------------------------------------------------
# Synthetic small CLIP visual tower: weights pre-transposed + pre-cast to bf16
# (conv_w := Conv2d.weight reshaped/transposed; w* := torch weight.T).
# ----------------------------------------------------------------------------
def init_params(key, *, in_ch, patch, width, layers, heads, out_dim, grid_hw):
    n_tokens = grid_hw * grid_hw + 1
    ks = jax.random.split(key, 4 + layers)
    s = 0.02
    f32, bf16 = jnp.float32, jnp.bfloat16
    p = {
        "conv_w": (s * jax.random.normal(ks[0], (in_ch * patch * patch, width), f32)).astype(bf16),
        "class_emb": (s * jax.random.normal(ks[1], (1, width), f32)).astype(bf16),
        "pos_emb": (s * jax.random.normal(ks[2], (n_tokens, width), f32)).astype(bf16),
        "ln_pre_g": jnp.ones((1, width), f32), "ln_pre_b": jnp.zeros((1, width), f32),
        "ln_post_g": jnp.ones((1, width), f32), "ln_post_b": jnp.zeros((1, width), f32),
        "proj": (s * jax.random.normal(ks[3], (width, out_dim), f32)).astype(bf16),
        "blocks": [],
    }
    for l in range(layers):
        bk = jax.random.split(ks[4 + l], 4)
        p["blocks"].append({
            "ln1_g": jnp.ones((1, width), f32), "ln1_b": jnp.zeros((1, width), f32),
            "wqkv": (s * jax.random.normal(bk[0], (width, 3 * width), f32)).astype(bf16),
            "bqkv": jnp.zeros((1, 3 * width), f32),
            "wout": (s * jax.random.normal(bk[1], (width, width), f32)).astype(bf16),
            "bout": jnp.zeros((1, width), f32),
            "ln2_g": jnp.ones((1, width), f32), "ln2_b": jnp.zeros((1, width), f32),
            "wfc": (s * jax.random.normal(bk[2], (width, 4 * width), f32)).astype(bf16),
            "bfc": jnp.zeros((1, 4 * width), f32),
            "wproj": (s * jax.random.normal(bk[3], (4 * width, width), f32)).astype(bf16),
            "bproj": jnp.zeros((1, width), f32),
        })
    return p


def encode_image(params, inputs, *, patch, heads):
    """CLIP-style ViT encode_image.  inputs: NCHW float32."""
    B, C, H, W = inputs.shape
    Gh, Gw = H // patch, W // patch
    D = params["pos_emb"].shape[-1]

    # Conv2d(stride=patch, kernel=patch, no bias) == patchify + matmul
    # (patchify is a pure layout op left to XLA, done once per forward).
    xp = inputs.reshape(B, C, Gh, patch, Gw, patch)
    xp = xp.transpose(0, 2, 4, 1, 3, 5).reshape(B * Gh * Gw, C * patch * patch)
    pe = linear(xp.astype(jnp.bfloat16), params["conv_w"])      # no bias DMA
    pe = pe.reshape(B, Gh * Gw, D)

    # cls-token prepend + positional-embedding add + ln_pre, fused
    x = embed_ln_pre(pe, params["class_emb"], params["pos_emb"],
                     params["ln_pre_g"], params["ln_pre_b"])    # (B, S, D)

    # transformer blocks (pre-LN residual), bf16 residual stream
    for blk in params["blocks"]:
        x = attention_block(x, blk, heads)                      # fused MHA block
        x = mlp_block(x, blk)                                   # fused MLP block

    # ln_post on the class token + projection + L2 norm, fused
    cls_tok = x[:, 0, :]                                        # (B, D)
    return ln_proj_l2(cls_tok, params["ln_post_g"], params["ln_post_b"],
                      params["proj"])


def visual_encoder_forward(params, inputs, *, patch, heads):
    """VisualEncoder.forward: encode_image + L2 normalization (dim=-1),
    with the L2 normalization fused into the final projection kernel."""
    return encode_image(params, inputs, patch=patch, heads=heads)


# ----------------------------------------------------------------------------
if __name__ == "__main__":
    # small synthetic CLIP-visual config with lane-dense feature dims
    B, C, H, W = 2, 3, 32, 32
    PATCH, WIDTH, LAYERS, HEADS, OUT_DIM = 8, 256, 2, 2, 128   # Dh = 128

    key = jax.random.PRNGKey(0)
    k_inp, k_par = jax.random.split(key)
    inputs = jax.random.normal(k_inp, (B, C, H, W), jnp.float32)   # NCHW
    params = init_params(k_par, in_ch=C, patch=PATCH, width=WIDTH,
                         layers=LAYERS, heads=HEADS, out_dim=OUT_DIM,
                         grid_hw=H // PATCH)

    fwd = jax.jit(functools.partial(visual_encoder_forward,
                                    patch=PATCH, heads=HEADS))
    feats = fwd(params, inputs)
    feats = jax.block_until_ready(feats)

    # sanity: unit L2 norm per row, finite values
    norms = jnp.linalg.norm(feats, axis=-1)
    assert feats.shape == (B, OUT_DIM)
    assert bool(jnp.all(jnp.isfinite(feats)))
    assert bool(jnp.allclose(norms, 1.0, atol=1e-3))
    print("KERNEL_OK")
</pallas_src>

<mosaic_0001>
module attributes {stable_mosaic.version = 11 : i64} {
  func.func @_embed_ln_pre_kernel(%arg0: i32, %arg1: memref<1x16x256xbf16, #tpu.memory_space<vmem>>, %arg2: memref<1x256xbf16, #tpu.memory_space<vmem>>, %arg3: memref<17x256xbf16, #tpu.memory_space<vmem>>, %arg4: memref<1x256xf32, #tpu.memory_space<vmem>>, %arg5: memref<1x256xf32, #tpu.memory_space<vmem>>, %arg6: memref<1x17x256xbf16, #tpu.memory_space<vmem>>) attributes {dimension_semantics = [#tpu.dimension_semantics<parallel>], iteration_bounds = array<i64: 2>, scalar_prefetch = 0 : i64, scratch_operands = 0 : i64, tpu.core_type = #tpu.core_type<tc>, window_params = [{transform_indices = @transform_0, window_bounds = array<i64: 1, 16, 256>}, {pipeline_mode = #tpu.pipeline_mode<synchronous>, transform_indices = @transform_1, window_bounds = array<i64: 1, 256>}, {pipeline_mode = #tpu.pipeline_mode<synchronous>, transform_indices = @transform_2, window_bounds = array<i64: 17, 256>}, {pipeline_mode = #tpu.pipeline_mode<synchronous>, transform_indices = @transform_3, window_bounds = array<i64: 1, 256>}, {pipeline_mode = #tpu.pipeline_mode<synchronous>, transform_indices = @transform_4, window_bounds = array<i64: 1, 256>}, {transform_indices = @transform_5, window_bounds = array<i64: 1, 17, 256>}]} {
    %c0 = arith.constant 0 : index
    %c0_0 = arith.constant 0 : index
    %c0_1 = arith.constant 0 : index
    %0 = vector.load %arg1[%c0, %c0_0, %c0_1] : memref<1x16x256xbf16, #tpu.memory_space<vmem>>, vector<1x16x256xbf16>
    %1 = vector.shape_cast %0 : vector<1x16x256xbf16> to vector<16x256xbf16>
    %2 = arith.extf %1 : vector<16x256xbf16> to vector<16x256xf32>
    %c0_2 = arith.constant 0 : index
    %c0_3 = arith.constant 0 : index
    %3 = vector.load %arg2[%c0_2, %c0_3] : memref<1x256xbf16, #tpu.memory_space<vmem>>, vector<1x256xbf16>
    %4 = arith.extf %3 : vector<1x256xbf16> to vector<1x256xf32>
    %5 = tpu.concatenate %4, %2 in 0 : vector<1x256xf32>, vector<16x256xf32> -> vector<17x256xf32>
    %c0_4 = arith.constant 0 : index
    %c0_5 = arith.constant 0 : index
    %6 = vector.load %arg3[%c0_4, %c0_5] : memref<17x256xbf16, #tpu.memory_space<vmem>>, vector<17x256xbf16>
    %7 = arith.extf %6 : vector<17x256xbf16> to vector<17x256xf32>
    %8 = arith.addf %5, %7 : vector<17x256xf32>
    %cst = arith.constant dense<0.000000e+00> : vector<17xf32>
    %9 = vector.multi_reduction <add>, %8, %cst [1] : vector<17x256xf32> to vector<17xf32>
    %10 = vector.shape_cast %9 : vector<17xf32> to vector<17x1xf32>
    %cst_6 = arith.constant 2.560000e+02 : f32
    %11 = vector.broadcast %cst_6 : f32 to vector<17x1xf32>
    %12 = arith.divf %10, %11 : vector<17x1xf32>
    %13 = vector.broadcast %12 : vector<17x1xf32> to vector<17x256xf32>
    %14 = arith.subf %8, %13 : vector<17x256xf32>
    %15 = arith.mulf %14, %14 : vector<17x256xf32>
    %cst_7 = arith.constant dense<0.000000e+00> : vector<17xf32>
    %16 = vector.multi_reduction <add>, %15, %cst_7 [1] : vector<17x256xf32> to vector<17xf32>
    %17 = vector.shape_cast %16 : vector<17xf32> to vector<17x1xf32>
    %cst_8 = arith.constant 2.560000e+02 : f32
    %18 = vector.broadcast %cst_8 : f32 to vector<17x1xf32>
    %19 = arith.divf %17, %18 : vector<17x1xf32>
    %20 = vector.broadcast %12 : vector<17x1xf32> to vector<17x256xf32>
    %21 = arith.subf %8, %20 : vector<17x256xf32>
    %cst_9 = arith.constant 9.99999974E-6 : f32
    %22 = vector.broadcast %cst_9 : f32 to vector<17x1xf32>
    %23 = arith.addf %19, %22 : vector<17x1xf32>
    %24 = math.rsqrt %23 : vector<17x1xf32>
    %25 = vector.broadcast %24 : vector<17x1xf32> to vector<17x256xf32>
    %26 = arith.mulf %21, %25 : vector<17x256xf32>
    %c0_10 = arith.constant 0 : index
    %c0_11 = arith.constant 0 : index
    %27 = vector.load %arg4[%c0_10, %c0_11] : memref<1x256xf32, #tpu.memory_space<vmem>>, vector<1x256xf32>
    %28 = vector.broadcast %27 : vector<1x256xf32> to vector<17x256xf32>
    %29 = arith.mulf %26, %28 : vector<17x256xf32>
    %c0_12 = arith.constant 0 : index
    %c0_13 = arith.constant 0 : index
    %30 = vector.load %arg5[%c0_12, %c0_13] : memref<1x256xf32, #tpu.memory_space<vmem>>, vector<1x256xf32>
    %31 = vector.broadcast %30 : vector<1x256xf32> to vector<17x256xf32>
    %32 = arith.addf %29, %31 : vector<17x256xf32>
    %33 = arith.truncf %32 : vector<17x256xf32> to vector<17x256xbf16>
    %c0_14 = arith.constant 0 : index
    %c0_15 = arith.constant 0 : index
    %c0_16 = arith.constant 0 : index
    %34 = vector.load %arg6[%c0_14, %c0_15, %c0_16] : memref<1x17x256xbf16, #tpu.memory_space<vmem>>, vector<1x17x256xbf16>
    %35 = vector.shape_cast %34 : vector<1x17x256xbf16> to vector<17x256xbf16>
    %36 = vector.shape_cast %33 : vector<17x256xbf16> to vector<1x17x256xbf16>
    tpu.vector_store %arg6[%c0_14, %c0_15, %c0_16], %36 {strides = array<i32>} : memref<1x17x256xbf16, #tpu.memory_space<vmem>>, vector<1x17x256xbf16>,
    return
  }
  func.func @transform_0(%arg0: i32) -> (i32, i32, i32) {
    %c0_i32 = arith.constant 0 : i32
    %c0_i32_0 = arith.constant 0 : i32
    %c0_i32_1 = arith.constant 0 : i32
    return %arg0, %c0_i32, %c0_i32_0 : i32, i32, i32
  }
  func.func @transform_1(%arg0: i32) -> (i32, i32) {
    %c0_i32 = arith.constant 0 : i32
    %c0_i32_0 = arith.constant 0 : i32
    %c0_i32_1 = arith.constant 0 : i32
    return %c0_i32, %c0_i32_0 : i32, i32
  }
  func.func @transform_2(%arg0: i32) -> (i32, i32) {
    %c0_i32 = arith.constant 0 : i32
    %c0_i32_0 = arith.constant 0 : i32
    %c0_i32_1 = arith.constant 0 : i32
    return %c0_i32, %c0_i32_0 : i32, i32
  }
  func.func @transform_3(%arg0: i32) -> (i32, i32) {
    %c0_i32 = arith.constant 0 : i32
    %c0_i32_0 = arith.constant 0 : i32
    %c0_i32_1 = arith.constant 0 : i32
    return %c0_i32, %c0_i32_0 : i32, i32
  }
  func.func @transform_4(%arg0: i32) -> (i32, i32) {
    %c0_i32 = arith.constant 0 : i32
    %c0_i32_0 = arith.constant 0 : i32
    %c0_i32_1 = arith.constant 0 : i32
    return %c0_i32, %c0_i32_0 : i32, i32
  }
  func.func @transform_5(%arg0: i32) -> (i32, i32, i32) {
    %c0_i32 = arith.constant 0 : i32
    %c0_i32_0 = arith.constant 0 : i32
    %c0_i32_1 = arith.constant 0 : i32
    return %arg0, %c0_i32, %c0_i32_0 : i32, i32, i32
  }
}

module attributes {stable_mosaic.version = 11 : i64} {
  func.func @_linear_kernel(%arg0: i32, %arg1: i32, %arg2: i32, %arg3: memref<32x192xbf16, #tpu.memory_space<vmem>>, %arg4: memref<192x256xbf16, #tpu.memory_space<vmem>>, %arg5: memref<32x256xbf16, #tpu.memory_space<vmem>>, %arg6: memref<32x256xf32, #tpu.memory_space<vmem>>) attributes {dimension_semantics = [#tpu.dimension_semantics<parallel>, #tpu.dimension_semantics<parallel>, #tpu.dimension_semantics<arbitrary>], iteration_bounds = array<i64: 1, 1, 1>, scalar_prefetch = 0 : i64, scratch_operands = 1 : i64, tpu.core_type = #tpu.core_type<tc>, window_params = [{transform_indices = @transform_0, window_bounds = array<i64: 32, 192>}, {transform_indices = @transform_1, window_bounds = array<i64: 192, 256>}, {transform_indices = @transform_2, window_bounds = array<i64: 32, 256>}]} {
    %c0_i32 = arith.constant 0 : i32
    %0 = arith.cmpi eq, %arg2, %c0_i32 : i32
    %1 = arith.extui %0 : i1 to i32
    %c0_i32_0 = arith.constant 0 : i32
    %2 = arith.cmpi ne, %1, %c0_i32_0 : i32
    scf.if %2 {
      %cst_10 = arith.constant 0.000000e+00 : f32
      %12 = vector.broadcast %cst_10 : f32 to vector<32x256xf32>
      %c0_11 = arith.constant 0 : index
      %c0_12 = arith.constant 0 : index
      %13 = vector.load %arg6[%c0_11, %c0_12] : memref<32x256xf32, #tpu.memory_space<vmem>>, vector<32x256xf32>
      tpu.vector_store %arg6[%c0_11, %c0_12], %12 {strides = array<i32>} : memref<32x256xf32, #tpu.memory_space<vmem>>, vector<32x256xf32>,
    } else {
    }
    %c0 = arith.constant 0 : index
    %c0_1 = arith.constant 0 : index
    %3 = vector.load %arg6[%c0, %c0_1] : memref<32x256xf32, #tpu.memory_space<vmem>>, vector<32x256xf32>
    %c0_2 = arith.constant 0 : index
    %c0_3 = arith.constant 0 : index
    %4 = vector.load %arg3[%c0_2, %c0_3] : memref<32x192xbf16, #tpu.memory_space<vmem>>, vector<32x192xbf16>
    %c0_4 = arith.constant 0 : index
    %c0_5 = arith.constant 0 : index
    %5 = vector.load %arg4[%c0_4, %c0_5] : memref<192x256xbf16, #tpu.memory_space<vmem>>, vector<192x256xbf16>
    %cst = arith.constant dense<0.000000e+00> : vector<32x256xf32>
    %6 = tpu.matmul %4, %5, %cst {dimension_numbers = #tpu.dot_dimension_numbers<[1], [0], [0], [1], [0, 0, 1, 1], [], []>} : vector<32x192xbf16>, vector<192x256xbf16>, vector<32x256xf32> -> vector<32x256xf32>
    %7 = arith.addf %3, %6 : vector<32x256xf32>
    %c0_6 = arith.constant 0 : index
    %c0_7 = arith.constant 0 : index
    %8 = vector.load %arg6[%c0_6, %c0_7] : memref<32x256xf32, #tpu.memory_space<vmem>>, vector<32x256xf32>
    tpu.vector_store %arg6[%c0_6, %c0_7], %7 {strides = array<i32>} : memref<32x256xf32, #tpu.memory_space<vmem>>, vector<32x256xf32>,
    %c0_i32_8 = arith.constant 0 : i32
    %9 = arith.cmpi eq, %arg2, %c0_i32_8 : i32
    %10 = arith.extui %9 : i1 to i32
    %c0_i32_9 = arith.constant 0 : i32
    %11 = arith.cmpi ne, %10, %c0_i32_9 : i32
    scf.if %11 {
      %c0_10 = arith.constant 0 : index
      %c0_11 = arith.constant 0 : index
      %12 = vector.load %arg6[%c0_10, %c0_11] : memref<32x256xf32, #tpu.memory_space<vmem>>, vector<32x256xf32>
      %13 = arith.truncf %12 : vector<32x256xf32> to vector<32x256xbf16>
      %c0_12 = arith.constant 0 : index
      %c0_13 = arith.constant 0 : index
      %14 = vector.load %arg5[%c0_12, %c0_13] : memref<32x256xbf16, #tpu.memory_space<vmem>>, vector<32x256xbf16>
      tpu.vector_store %arg5[%c0_12, %c0_13], %13 {strides = array<i32>} : memref<32x256xbf16, #tpu.memory_space<vmem>>, vector<32x256xbf16>,
    } else {
    }
    return
  }
  func.func @transform_0(%arg0: i32, %arg1: i32, %arg2: i32) -> (i32, i32) {
    %c0_i32 = arith.constant 0 : i32
    return %arg0, %arg2 : i32, i32
  }
  func.func @transform_1(%arg0: i32, %arg1: i32, %arg2: i32) -> (i32, i32) {
    %c0_i32 = arith.constant 0 : i32
    return %arg2, %arg1 : i32, i32
  }
  func.func @transform_2(%arg0: i32, %arg1: i32, %arg2: i32) -> (i32, i32) {
    %c0_i32 = arith.constant 0 : i32
    return %arg0, %arg1 : i32, i32
  }
}

module attributes {stable_mosaic.version = 11 : i64} {
  func.func @_attn_block_kernel(%arg0: i32, %arg1: memref<1x17x256xbf16, #tpu.memory_space<vmem>>, %arg2: memref<1x256xf32, #tpu.memory_space<vmem>>, %arg3: memref<1x256xf32, #tpu.memory_space<vmem>>, %arg4: memref<256x768xbf16, #tpu.memory_space<vmem>>, %arg5: memref<1x768xf32, #tpu.memory_space<vmem>>, %arg6: memref<256x256xbf16, #tpu.memory_space<vmem>>, %arg7: memref<1x256xf32, #tpu.memory_space<vmem>>, %arg8: memref<1x17x256xbf16, #tpu.memory_space<vmem>>) attributes {dimension_semantics = [#tpu.dimension_semantics<parallel>], iteration_bounds = array<i64: 2>, scalar_prefetch = 0 : i64, scratch_operands = 0 : i64, tpu.core_type = #tpu.core_type<tc>, window_params = [{transform_indices = @transform_0, window_bounds = array<i64: 1, 17, 256>}, {pipeline_mode = #tpu.pipeline_mode<synchronous>, transform_indices = @transform_1, window_bounds = array<i64: 1, 256>}, {pipeline_mode = #tpu.pipeline_mode<synchronous>, transform_indices = @transform_2, window_bounds = array<i64: 1, 256>}, {pipeline_mode = #tpu.pipeline_mode<synchronous>, transform_indices = @transform_3, window_bounds = array<i64: 256, 768>}, {pipeline_mode = #tpu.pipeline_mode<synchronous>, transform_indices = @transform_4, window_bounds = array<i64: 1, 768>}, {pipeline_mode = #tpu.pipeline_mode<synchronous>, transform_indices = @transform_5, window_bounds = array<i64: 256, 256>}, {pipeline_mode = #tpu.pipeline_mode<synchronous>, transform_indices = @transform_6, window_bounds = array<i64: 1, 256>}, {transform_indices = @transform_7, window_bounds = array<i64: 1, 17, 256>}]} {
    %c0 = arith.constant 0 : index
    %c0_0 = arith.constant 0 : index
    %c0_1 = arith.constant 0 : index
    %0 = vector.load %arg1[%c0, %c0_0, %c0_1] : memref<1x17x256xbf16, #tpu.memory_space<vmem>>, vector<1x17x256xbf16>
    %1 = vector.shape_cast %0 : vector<1x17x256xbf16> to vector<17x256xbf16>
    %2 = arith.extf %1 : vector<17x256xbf16> to vector<17x256xf32>
    %cst = arith.constant dense<0.000000e+00> : vector<17xf32>
    %3 = vector.multi_reduction <add>, %2, %cst [1] : vector<17x256xf32> to vector<17xf32>
    %4 = vector.shape_cast %3 : vector<17xf32> to vector<17x1xf32>
    %cst_2 = arith.constant 2.560000e+02 : f32
    %5 = vector.broadcast %cst_2 : f32 to vector<17x1xf32>
    %6 = arith.divf %4, %5 : vector<17x1xf32>
    %7 = vector.broadcast %6 : vector<17x1xf32> to vector<17x256xf32>
    %8 = arith.subf %2, %7 : vector<17x256xf32>
    %9 = arith.mulf %8, %8 : vector<17x256xf32>
    %cst_3 = arith.constant dense<0.000000e+00> : vector<17xf32>
    %10 = vector.multi_reduction <add>, %9, %cst_3 [1] : vector<17x256xf32> to vector<17xf32>
    %11 = vector.shape_cast %10 : vector<17xf32> to vector<17x1xf32>
    %cst_4 = arith.constant 2.560000e+02 : f32
    %12 = vector.broadcast %cst_4 : f32 to vector<17x1xf32>
    %13 = arith.divf %11, %12 : vector<17x1xf32>
    %14 = vector.broadcast %6 : vector<17x1xf32> to vector<17x256xf32>
    %15 = arith.subf %2, %14 : vector<17x256xf32>
    %cst_5 = arith.constant 9.99999974E-6 : f32
    %16 = vector.broadcast %cst_5 : f32 to vector<17x1xf32>
    %17 = arith.addf %13, %16 : vector<17x1xf32>
    %18 = math.rsqrt %17 : vector<17x1xf32>
    %19 = vector.broadcast %18 : vector<17x1xf32> to vector<17x256xf32>
    %20 = arith.mulf %15, %19 : vector<17x256xf32>
    %c0_6 = arith.constant 0 : index
    %c0_7 = arith.constant 0 : index
    %21 = vector.load %arg2[%c0_6, %c0_7] : memref<1x256xf32, #tpu.memory_space<vmem>>, vector<1x256xf32>
    %22 = vector.broadcast %21 : vector<1x256xf32> to vector<17x256xf32>
    %23 = arith.mulf %20, %22 : vector<17x256xf32>
    %c0_8 = arith.constant 0 : index
    %c0_9 = arith.constant 0 : index
    %24 = vector.load %arg3[%c0_8, %c0_9] : memref<1x256xf32, #tpu.memory_space<vmem>>, vector<1x256xf32>
    %25 = vector.broadcast %24 : vector<1x256xf32> to vector<17x256xf32>
    %26 = arith.addf %23, %25 : vector<17x256xf32>
    %27 = arith.truncf %26 : vector<17x256xf32> to vector<17x256xbf16>
    %c0_10 = arith.constant 0 : index
    %c0_11 = arith.constant 0 : index
    %28 = vector.load %arg4[%c0_10, %c0_11] : memref<256x768xbf16, #tpu.memory_space<vmem>>, vector<256x768xbf16>
    %cst_12 = arith.constant dense<0.000000e+00> : vector<17x768xf32>
    %29 = tpu.matmul %27, %28, %cst_12 {dimension_numbers = #tpu.dot_dimension_numbers<[1], [0], [0], [1], [0, 0, 1, 1], [], []>} : vector<17x256xbf16>, vector<256x768xbf16>, vector<17x768xf32> -> vector<17x768xf32>
    %c0_13 = arith.constant 0 : index
    %c0_14 = arith.constant 0 : index
    %30 = vector.load %arg5[%c0_13, %c0_14] : memref<1x768xf32, #tpu.memory_space<vmem>>, vector<1x768xf32>
    %31 = vector.broadcast %30 : vector<1x768xf32> to vector<17x768xf32>
    %32 = arith.addf %29, %31 : vector<17x768xf32>
    %c0_15 = arith.constant 0 : index
    %c0_16 = arith.constant 0 : index
    %33 = vector.load %arg6[%c0_15, %c0_16] : memref<256x256xbf16, #tpu.memory_space<vmem>>, vector<256x256xbf16>
    %cst_17 = arith.constant 0.000000e+00 : f32
    %34 = vector.broadcast %cst_17 : f32 to vector<17x256xf32>
    %35 = vector.extract_strided_slice %32 {offsets = [0, 0], sizes = [17, 128], strides = [1, 1]} : vector<17x768xf32> to vector<17x128xf32>
    %36 = vector.extract_strided_slice %32 {offsets = [0, 256], sizes = [17, 128], strides = [1, 1]} : vector<17x768xf32> to vector<17x128xf32>
    %37 = vector.extract_strided_slice %32 {offsets = [0, 512], sizes = [17, 128], strides = [1, 1]} : vector<17x768xf32> to vector<17x128xf32>
    %cst_18 = arith.constant dense<0.000000e+00> : vector<17x17xf32>
    %38 = tpu.matmul %35, %36, %cst_18 {dimension_numbers = #tpu.dot_dimension_numbers<[1], [1], [0], [0], [0, 0, 1, 0], [], []>} : vector<17x128xf32>, vector<17x128xf32>, vector<17x17xf32> -> vector<17x17xf32>
    %cst_19 = arith.constant 0.0883883461 : f32
    %39 = vector.broadcast %cst_19 : f32 to vector<17x17xf32>
    %40 = arith.mulf %38, %39 : vector<17x17xf32>
    %cst_20 = arith.constant dense<0xFF800000> : vector<17xf32>
    %41 = vector.multi_reduction <maximumf>, %40, %cst_20 [1] : vector<17x17xf32> to vector<17xf32>
    %42 = vector.shape_cast %41 : vector<17xf32> to vector<17x1xf32>
    %43 = vector.broadcast %42 : vector<17x1xf32> to vector<17x17xf32>
    %44 = arith.subf %40, %43 : vector<17x17xf32>
    %45 = math.exp %44 : vector<17x17xf32>
    %cst_21 = arith.constant dense<0.000000e+00> : vector<17xf32>
    %46 = vector.multi_reduction <add>, %45, %cst_21 [1] : vector<17x17xf32> to vector<17xf32>
    %47 = vector.shape_cast %46 : vector<17xf32> to vector<17x1xf32>
    %48 = tpu.reciprocal %47 {approx = true} : vector<17x1xf32> -> vector<17x1xf32>
    %49 = vector.broadcast %48 : vector<17x1xf32> to vector<17x17xf32>
    %50 = arith.mulf %45, %49 : vector<17x17xf32>
    %51 = arith.truncf %50 : vector<17x17xf32> to vector<17x17xbf16>
    %52 = arith.truncf %37 : vector<17x128xf32> to vector<17x128xbf16>
    %cst_22 = arith.constant dense<0.000000e+00> : vector<17x128xf32>
    %53 = tpu.matmul %51, %52, %cst_22 {dimension_numbers = #tpu.dot_dimension_numbers<[1], [0], [0], [1], [0, 0, 1, 1], [], []>} : vector<17x17xbf16>, vector<17x128xbf16>, vector<17x128xf32> -> vector<17x128xf32>
    %54 = arith.truncf %53 : vector<17x128xf32> to vector<17x128xbf16>
    %55 = vector.extract_strided_slice %33 {offsets = [0, 0], sizes = [128, 256], strides = [1, 1]} : vector<256x256xbf16> to vector<128x256xbf16>
    %cst_23 = arith.constant dense<0.000000e+00> : vector<17x256xf32>
    %56 = tpu.matmul %54, %55, %cst_23 {dimension_numbers = #tpu.dot_dimension_numbers<[1], [0], [0], [1], [0, 0, 1, 1], [], []>} : vector<17x128xbf16>, vector<128x256xbf16>, vector<17x256xf32> -> vector<17x256xf32>
    %57 = arith.addf %34, %56 : vector<17x256xf32>
    %58 = vector.extract_strided_slice %32 {offsets = [0, 128], sizes = [17, 128], strides = [1, 1]} : vector<17x768xf32> to vector<17x128xf32>
    %59 = vector.extract_strided_slice %32 {offsets = [0, 384], sizes = [17, 128], strides = [1, 1]} : vector<17x768xf32> to vector<17x128xf32>
    %60 = vector.extract_strided_slice %32 {offsets = [0, 640], sizes = [17, 128], strides = [1, 1]} : vector<17x768xf32> to vector<17x128xf32>
    %cst_24 = arith.constant dense<0.000000e+00> : vector<17x17xf32>
    %61 = tpu.matmul %58, %59, %cst_24 {dimension_numbers = #tpu.dot_dimension_numbers<[1], [1], [0], [0], [0, 0, 1, 0], [], []>} : vector<17x128xf32>, vector<17x128xf32>, vector<17x17xf32> -> vector<17x17xf32>
    %cst_25 = arith.constant 0.0883883461 : f32
    %62 = vector.broadcast %cst_25 : f32 to vector<17x17xf32>
    %63 = arith.mulf %61, %62 : vector<17x17xf32>
    %cst_26 = arith.constant dense<0xFF800000> : vector<17xf32>
    %64 = vector.multi_reduction <maximumf>, %63, %cst_26 [1] : vector<17x17xf32> to vector<17xf32>
    %65 = vector.shape_cast %64 : vector<17xf32> to vector<17x1xf32>
    %66 = vector.broadcast %65 : vector<17x1xf32> to vector<17x17xf32>
    %67 = arith.subf %63, %66 : vector<17x17xf32>
    %68 = math.exp %67 : vector<17x17xf32>
    %cst_27 = arith.constant dense<0.000000e+00> : vector<17xf32>
    %69 = vector.multi_reduction <add>, %68, %cst_27 [1] : vector<17x17xf32> to vector<17xf32>
    %70 = vector.shape_cast %69 : vector<17xf32> to vector<17x1xf32>
    %71 = tpu.reciprocal %70 {approx = true} : vector<17x1xf32> -> vector<17x1xf32>
    %72 = vector.broadcast %71 : vector<17x1xf32> to vector<17x17xf32>
    %73 = arith.mulf %68, %72 : vector<17x17xf32>
    %74 = arith.truncf %73 : vector<17x17xf32> to vector<17x17xbf16>
    %75 = arith.truncf %60 : vector<17x128xf32> to vector<17x128xbf16>
    %cst_28 = arith.constant dense<0.000000e+00> : vector<17x128xf32>
    %76 = tpu.matmul %74, %75, %cst_28 {dimension_numbers = #tpu.dot_dimension_numbers<[1], [0], [0], [1], [0, 0, 1, 1], [], []>} : vector<17x17xbf16>, vector<17x128xbf16>, vector<17x128xf32> -> vector<17x128xf32>
    %77 = arith.truncf %76 : vector<17x128xf32> to vector<17x128xbf16>
    %78 = vector.extract_strided_slice %33 {offsets = [128, 0], sizes = [128, 256], strides = [1, 1]} : vector<256x256xbf16> to vector<128x256xbf16>
    %cst_29 = arith.constant dense<0.000000e+00> : vector<17x256xf32>
    %79 = tpu.matmul %77, %78, %cst_29 {dimension_numbers = #tpu.dot_dimension_numbers<[1], [0], [0], [1], [0, 0, 1, 1], [], []>} : vector<17x128xbf16>, vector<128x256xbf16>, vector<17x256xf32> -> vector<17x256xf32>
    %80 = arith.addf %57, %79 : vector<17x256xf32>
    %c0_30 = arith.constant 0 : index
    %c0_31 = arith.constant 0 : index
    %81 = vector.load %arg7[%c0_30, %c0_31] : memref<1x256xf32, #tpu.memory_space<vmem>>, vector<1x256xf32>
    %82 = vector.broadcast %81 : vector<1x256xf32> to vector<17x256xf32>
    %83 = arith.addf %80, %82 : vector<17x256xf32>
    %84 = arith.addf %2, %83 : vector<17x256xf32>
    %85 = arith.truncf %84 : vector<17x256xf32> to vector<17x256xbf16>
    %c0_32 = arith.constant 0 : index
    %c0_33 = arith.constant 0 : index
    %c0_34 = arith.constant 0 : index
    %86 = vector.load %arg8[%c0_32, %c0_33, %c0_34] : memref<1x17x256xbf16, #tpu.memory_space<vmem>>, vector<1x17x256xbf16>
    %87 = vector.shape_cast %86 : vector<1x17x256xbf16> to vector<17x256xbf16>
    %88 = vector.shape_cast %85 : vector<17x256xbf16> to vector<1x17x256xbf16>
    tpu.vector_store %arg8[%c0_32, %c0_33, %c0_34], %88 {strides = array<i32>} : memref<1x17x256xbf16, #tpu.memory_space<vmem>>, vector<1x17x256xbf16>,
    return
  }
  func.func @transform_0(%arg0: i32) -> (i32, i32, i32) {
    %c0_i32 = arith.constant 0 : i32
    %c0_i32_0 = arith.constant 0 : i32
    %c0_i32_1 = arith.constant 0 : i32
    return %arg0, %c0_i32, %c0_i32_0 : i32, i32, i32
  }
  func.func @transform_1(%arg0: i32) -> (i32, i32) {
    %c0_i32 = arith.constant 0 : i32
    %c0_i32_0 = arith.constant 0 : i32
    %c0_i32_1 = arith.constant 0 : i32
    return %c0_i32, %c0_i32_0 : i32, i32
  }
  func.func @transform_2(%arg0: i32) -> (i32, i32) {
    %c0_i32 = arith.constant 0 : i32
    %c0_i32_0 = arith.constant 0 : i32
    %c0_i32_1 = arith.constant 0 : i32
    return %c0_i32, %c0_i32_0 : i32, i32
  }
  func.func @transform_3(%arg0: i32) -> (i32, i32) {
    %c0_i32 = arith.constant 0 : i32
    %c0_i32_0 = arith.constant 0 : i32
    %c0_i32_1 = arith.constant 0 : i32
    return %c0_i32, %c0_i32_0 : i32, i32
  }
  func.func @transform_4(%arg0: i32) -> (i32, i32) {
    %c0_i32 = arith.constant 0 : i32
    %c0_i32_0 = arith.constant 0 : i32
    %c0_i32_1 = arith.constant 0 : i32
    return %c0_i32, %c0_i32_0 : i32, i32
  }
  func.func @transform_5(%arg0: i32) -> (i32, i32) {
    %c0_i32 = arith.constant 0 : i32
    %c0_i32_0 = arith.constant 0 : i32
    %c0_i32_1 = arith.constant 0 : i32
    return %c0_i32, %c0_i32_0 : i32, i32
  }
  func.func @transform_6(%arg0: i32) -> (i32, i32) {
    %c0_i32 = arith.constant 0 : i32
    %c0_i32_0 = arith.constant 0 : i32
    %c0_i32_1 = arith.constant 0 : i32
    return %c0_i32, %c0_i32_0 : i32, i32
  }
  func.func @transform_7(%arg0: i32) -> (i32, i32, i32) {
    %c0_i32 = arith.constant 0 : i32
    %c0_i32_0 = arith.constant 0 : i32
    %c0_i32_1 = arith.constant 0 : i32
    return %arg0, %c0_i32, %c0_i32_0 : i32, i32, i32
  }
}

module attributes {stable_mosaic.version = 11 : i64} {
  func.func @_mlp_block_kernel(%arg0: i32, %arg1: memref<34x256xbf16, #tpu.memory_space<vmem>>, %arg2: memref<1x256xf32, #tpu.memory_space<vmem>>, %arg3: memref<1x256xf32, #tpu.memory_space<vmem>>, %arg4: memref<256x1024xbf16, #tpu.memory_space<vmem>>, %arg5: memref<1x1024xf32, #tpu.memory_space<vmem>>, %arg6: memref<1024x256xbf16, #tpu.memory_space<vmem>>, %arg7: memref<1x256xf32, #tpu.memory_space<vmem>>, %arg8: memref<34x256xbf16, #tpu.memory_space<vmem>>) attributes {dimension_semantics = [#tpu.dimension_semantics<parallel>], iteration_bounds = array<i64: 1>, scalar_prefetch = 0 : i64, scratch_operands = 0 : i64, tpu.core_type = #tpu.core_type<tc>, window_params = [{transform_indices = @transform_0, window_bounds = array<i64: 34, 256>}, {pipeline_mode = #tpu.pipeline_mode<synchronous>, transform_indices = @transform_1, window_bounds = array<i64: 1, 256>}, {pipeline_mode = #tpu.pipeline_mode<synchronous>, transform_indices = @transform_2, window_bounds = array<i64: 1, 256>}, {pipeline_mode = #tpu.pipeline_mode<synchronous>, transform_indices = @transform_3, window_bounds = array<i64: 256, 1024>}, {pipeline_mode = #tpu.pipeline_mode<synchronous>, transform_indices = @transform_4, window_bounds = array<i64: 1, 1024>}, {pipeline_mode = #tpu.pipeline_mode<synchronous>, transform_indices = @transform_5, window_bounds = array<i64: 1024, 256>}, {pipeline_mode = #tpu.pipeline_mode<synchronous>, transform_indices = @transform_6, window_bounds = array<i64: 1, 256>}, {transform_indices = @transform_7, window_bounds = array<i64: 34, 256>}]} {
    %c0 = arith.constant 0 : index
    %c0_0 = arith.constant 0 : index
    %0 = vector.load %arg1[%c0, %c0_0] : memref<34x256xbf16, #tpu.memory_space<vmem>>, vector<34x256xbf16>
    %1 = arith.extf %0 : vector<34x256xbf16> to vector<34x256xf32>
    %cst = arith.constant dense<0.000000e+00> : vector<34xf32>
    %2 = vector.multi_reduction <add>, %1, %cst [1] : vector<34x256xf32> to vector<34xf32>
    %3 = vector.shape_cast %2 : vector<34xf32> to vector<34x1xf32>
    %cst_1 = arith.constant 2.560000e+02 : f32
    %4 = vector.broadcast %cst_1 : f32 to vector<34x1xf32>
    %5 = arith.divf %3, %4 : vector<34x1xf32>
    %6 = vector.broadcast %5 : vector<34x1xf32> to vector<34x256xf32>
    %7 = arith.subf %1, %6 : vector<34x256xf32>
    %8 = arith.mulf %7, %7 : vector<34x256xf32>
    %cst_2 = arith.constant dense<0.000000e+00> : vector<34xf32>
    %9 = vector.multi_reduction <add>, %8, %cst_2 [1] : vector<34x256xf32> to vector<34xf32>
    %10 = vector.shape_cast %9 : vector<34xf32> to vector<34x1xf32>
    %cst_3 = arith.constant 2.560000e+02 : f32
    %11 = vector.broadcast %cst_3 : f32 to vector<34x1xf32>
    %12 = arith.divf %10, %11 : vector<34x1xf32>
    %13 = vector.broadcast %5 : vector<34x1xf32> to vector<34x256xf32>
    %14 = arith.subf %1, %13 : vector<34x256xf32>
    %cst_4 = arith.constant 9.99999974E-6 : f32
    %15 = vector.broadcast %cst_4 : f32 to vector<34x1xf32>
    %16 = arith.addf %12, %15 : vector<34x1xf32>
    %17 = math.rsqrt %16 : vector<34x1xf32>
    %18 = vector.broadcast %17 : vector<34x1xf32> to vector<34x256xf32>
    %19 = arith.mulf %14, %18 : vector<34x256xf32>
    %c0_5 = arith.constant 0 : index
    %c0_6 = arith.constant 0 : index
    %20 = vector.load %arg2[%c0_5, %c0_6] : memref<1x256xf32, #tpu.memory_space<vmem>>, vector<1x256xf32>
    %21 = vector.broadcast %20 : vector<1x256xf32> to vector<34x256xf32>
    %22 = arith.mulf %19, %21 : vector<34x256xf32>
    %c0_7 = arith.constant 0 : index
    %c0_8 = arith.constant 0 : index
    %23 = vector.load %arg3[%c0_7, %c0_8] : memref<1x256xf32, #tpu.memory_space<vmem>>, vector<1x256xf32>
    %24 = vector.broadcast %23 : vector<1x256xf32> to vector<34x256xf32>
    %25 = arith.addf %22, %24 : vector<34x256xf32>
    %26 = arith.truncf %25 : vector<34x256xf32> to vector<34x256xbf16>
    %c0_9 = arith.constant 0 : index
    %c0_10 = arith.constant 0 : index
    %27 = vector.load %arg4[%c0_9, %c0_10] : memref<256x1024xbf16, #tpu.memory_space<vmem>>, vector<256x1024xbf16>
    %cst_11 = arith.constant dense<0.000000e+00> : vector<34x1024xf32>
    %28 = tpu.matmul %26, %27, %cst_11 {dimension_numbers = #tpu.dot_dimension_numbers<[1], [0], [0], [1], [0, 0, 1, 1], [], []>} : vector<34x256xbf16>, vector<256x1024xbf16>, vector<34x1024xf32> -> vector<34x1024xf32>
    %c0_12 = arith.constant 0 : index
    %c0_13 = arith.constant 0 : index
    %29 = vector.load %arg5[%c0_12, %c0_13] : memref<1x1024xf32, #tpu.memory_space<vmem>>, vector<1x1024xf32>
    %30 = vector.broadcast %29 : vector<1x1024xf32> to vector<34x1024xf32>
    %31 = arith.addf %28, %30 : vector<34x1024xf32>
    %cst_14 = arith.constant 1.702000e+00 : f32
    %32 = vector.broadcast %cst_14 : f32 to vector<34x1024xf32>
    %33 = arith.mulf %32, %31 : vector<34x1024xf32>
    %34 = arith.negf %33 : vector<34x1024xf32>
    %35 = math.exp %34 : vector<34x1024xf32>
    %cst_15 = arith.constant 1.000000e+00 : f32
    %36 = vector.broadcast %cst_15 : f32 to vector<34x1024xf32>
    %37 = arith.addf %36, %35 : vector<34x1024xf32>
    %38 = arith.divf %36, %37 : vector<34x1024xf32>
    %39 = arith.mulf %31, %38 : vector<34x1024xf32>
    %40 = arith.truncf %39 : vector<34x1024xf32> to vector<34x1024xbf16>
    %c0_16 = arith.constant 0 : index
    %c0_17 = arith.constant 0 : index
    %41 = vector.load %arg6[%c0_16, %c0_17] : memref<1024x256xbf16, #tpu.memory_space<vmem>>, vector<1024x256xbf16>
    %cst_18 = arith.constant dense<0.000000e+00> : vector<34x256xf32>
    %42 = tpu.matmul %40, %41, %cst_18 {dimension_numbers = #tpu.dot_dimension_numbers<[1], [0], [0], [1], [0, 0, 1, 1], [], []>} : vector<34x1024xbf16>, vector<1024x256xbf16>, vector<34x256xf32> -> vector<34x256xf32>
    %c0_19 = arith.constant 0 : index
    %c0_20 = arith.constant 0 : index
    %43 = vector.load %arg7[%c0_19, %c0_20] : memref<1x256xf32, #tpu.memory_space<vmem>>, vector<1x256xf32>
    %44 = vector.broadcast %43 : vector<1x256xf32> to vector<34x256xf32>
    %45 = arith.addf %42, %44 : vector<34x256xf32>
    %46 = arith.addf %1, %45 : vector<34x256xf32>
    %47 = arith.truncf %46 : vector<34x256xf32> to vector<34x256xbf16>
    %c0_21 = arith.constant 0 : index
    %c0_22 = arith.constant 0 : index
    %48 = vector.load %arg8[%c0_21, %c0_22] : memref<34x256xbf16, #tpu.memory_space<vmem>>, vector<34x256xbf16>
    tpu.vector_store %arg8[%c0_21, %c0_22], %47 {strides = array<i32>} : memref<34x256xbf16, #tpu.memory_space<vmem>>, vector<34x256xbf16>,
    return
  }
  func.func @transform_0(%arg0: i32) -> (i32, i32) {
    %c0_i32 = arith.constant 0 : i32
    %c0_i32_0 = arith.constant 0 : i32
    return %arg0, %c0_i32 : i32, i32
  }
  func.func @transform_1(%arg0: i32) -> (i32, i32) {
    %c0_i32 = arith.constant 0 : i32
    %c0_i32_0 = arith.constant 0 : i32
    %c0_i32_1 = arith.constant 0 : i32
    return %c0_i32, %c0_i32_0 : i32, i32
  }
  func.func @transform_2(%arg0: i32) -> (i32, i32) {
    %c0_i32 = arith.constant 0 : i32
    %c0_i32_0 = arith.constant 0 : i32
    %c0_i32_1 = arith.constant 0 : i32
    return %c0_i32, %c0_i32_0 : i32, i32
  }
  func.func @transform_3(%arg0: i32) -> (i32, i32) {
    %c0_i32 = arith.constant 0 : i32
    %c0_i32_0 = arith.constant 0 : i32
    %c0_i32_1 = arith.constant 0 : i32
    return %c0_i32, %c0_i32_0 : i32, i32
  }
  func.func @transform_4(%arg0: i32) -> (i32, i32) {
    %c0_i32 = arith.constant 0 : i32
    %c0_i32_0 = arith.constant 0 : i32
    %c0_i32_1 = arith.constant 0 : i32
    return %c0_i32, %c0_i32_0 : i32, i32
  }
  func.func @transform_5(%arg0: i32) -> (i32, i32) {
    %c0_i32 = arith.constant 0 : i32
    %c0_i32_0 = arith.constant 0 : i32
    %c0_i32_1 = arith.constant 0 : i32
    return %c0_i32, %c0_i32_0 : i32, i32
  }
  func.func @transform_6(%arg0: i32) -> (i32, i32) {
    %c0_i32 = arith.constant 0 : i32
    %c0_i32_0 = arith.constant 0 : i32
    %c0_i32_1 = arith.constant 0 : i32
    return %c0_i32, %c0_i32_0 : i32, i32
  }
  func.func @transform_7(%arg0: i32) -> (i32, i32) {
    %c0_i32 = arith.constant 0 : i32
    %c0_i32_0 = arith.constant 0 : i32
    return %arg0, %c0_i32 : i32, i32
  }
}

module attributes {stable_mosaic.version = 11 : i64} {
  func.func @_ln_proj_l2_kernel(%arg0: i32, %arg1: memref<2x256xbf16, #tpu.memory_space<vmem>>, %arg2: memref<1x256xf32, #tpu.memory_space<vmem>>, %arg3: memref<1x256xf32, #tpu.memory_space<vmem>>, %arg4: memref<256x128xbf16, #tpu.memory_space<vmem>>, %arg5: memref<2x128xf32, #tpu.memory_space<vmem>>) attributes {dimension_semantics = [#tpu.dimension_semantics<parallel>], iteration_bounds = array<i64: 1>, scalar_prefetch = 0 : i64, scratch_operands = 0 : i64, tpu.core_type = #tpu.core_type<tc>, window_params = [{transform_indices = @transform_0, window_bounds = array<i64: 2, 256>}, {pipeline_mode = #tpu.pipeline_mode<synchronous>, transform_indices = @transform_1, window_bounds = array<i64: 1, 256>}, {pipeline_mode = #tpu.pipeline_mode<synchronous>, transform_indices = @transform_2, window_bounds = array<i64: 1, 256>}, {pipeline_mode = #tpu.pipeline_mode<synchronous>, transform_indices = @transform_3, window_bounds = array<i64: 256, 128>}, {transform_indices = @transform_4, window_bounds = array<i64: 2, 128>}]} {
    %c0 = arith.constant 0 : index
    %c0_0 = arith.constant 0 : index
    %0 = vector.load %arg1[%c0, %c0_0] : memref<2x256xbf16, #tpu.memory_space<vmem>>, vector<2x256xbf16>
    %1 = arith.extf %0 : vector<2x256xbf16> to vector<2x256xf32>
    %cst = arith.constant dense<0.000000e+00> : vector<2xf32>
    %2 = vector.multi_reduction <add>, %1, %cst [1] : vector<2x256xf32> to vector<2xf32>
    %3 = vector.shape_cast %2 : vector<2xf32> to vector<2x1xf32>
    %cst_1 = arith.constant 2.560000e+02 : f32
    %4 = vector.broadcast %cst_1 : f32 to vector<2x1xf32>
    %5 = arith.divf %3, %4 : vector<2x1xf32>
    %6 = vector.broadcast %5 : vector<2x1xf32> to vector<2x256xf32>
    %7 = arith.subf %1, %6 : vector<2x256xf32>
    %8 = arith.mulf %7, %7 : vector<2x256xf32>
    %cst_2 = arith.constant dense<0.000000e+00> : vector<2xf32>
    %9 = vector.multi_reduction <add>, %8, %cst_2 [1] : vector<2x256xf32> to vector<2xf32>
    %10 = vector.shape_cast %9 : vector<2xf32> to vector<2x1xf32>
    %cst_3 = arith.constant 2.560000e+02 : f32
    %11 = vector.broadcast %cst_3 : f32 to vector<2x1xf32>
    %12 = arith.divf %10, %11 : vector<2x1xf32>
    %13 = vector.broadcast %5 : vector<2x1xf32> to vector<2x256xf32>
    %14 = arith.subf %1, %13 : vector<2x256xf32>
    %cst_4 = arith.constant 9.99999974E-6 : f32
    %15 = vector.broadcast %cst_4 : f32 to vector<2x1xf32>
    %16 = arith.addf %12, %15 : vector<2x1xf32>
    %17 = math.rsqrt %16 : vector<2x1xf32>
    %18 = vector.broadcast %17 : vector<2x1xf32> to vector<2x256xf32>
    %19 = arith.mulf %14, %18 : vector<2x256xf32>
    %c0_5 = arith.constant 0 : index
    %c0_6 = arith.constant 0 : index
    %20 = vector.load %arg2[%c0_5, %c0_6] : memref<1x256xf32, #tpu.memory_space<vmem>>, vector<1x256xf32>
    %21 = vector.broadcast %20 : vector<1x256xf32> to vector<2x256xf32>
    %22 = arith.mulf %19, %21 : vector<2x256xf32>
    %c0_7 = arith.constant 0 : index
    %c0_8 = arith.constant 0 : index
    %23 = vector.load %arg3[%c0_7, %c0_8] : memref<1x256xf32, #tpu.memory_space<vmem>>, vector<1x256xf32>
    %24 = vector.broadcast %23 : vector<1x256xf32> to vector<2x256xf32>
    %25 = arith.addf %22, %24 : vector<2x256xf32>
    %26 = arith.truncf %25 : vector<2x256xf32> to vector<2x256xbf16>
    %c0_9 = arith.constant 0 : index
    %c0_10 = arith.constant 0 : index
    %27 = vector.load %arg4[%c0_9, %c0_10] : memref<256x128xbf16, #tpu.memory_space<vmem>>, vector<256x128xbf16>
    %cst_11 = arith.constant dense<0.000000e+00> : vector<2x128xf32>
    %28 = tpu.matmul %26, %27, %cst_11 {dimension_numbers = #tpu.dot_dimension_numbers<[1], [0], [0], [1], [0, 0, 1, 1], [], []>} : vector<2x256xbf16>, vector<256x128xbf16>, vector<2x128xf32> -> vector<2x128xf32>
    %29 = arith.mulf %28, %28 : vector<2x128xf32>
    %cst_12 = arith.constant dense<0.000000e+00> : vector<2xf32>
    %30 = vector.multi_reduction <add>, %29, %cst_12 [1] : vector<2x128xf32> to vector<2xf32>
    %31 = vector.shape_cast %30 : vector<2xf32> to vector<2x1xf32>
    %cst_13 = arith.constant 9.99999996E-13 : f32
    %32 = vector.broadcast %cst_13 : f32 to vector<2x1xf32>
    %33 = arith.addf %31, %32 : vector<2x1xf32>
    %34 = math.rsqrt %33 : vector<2x1xf32>
    %35 = vector.broadcast %34 : vector<2x1xf32> to vector<2x128xf32>
    %36 = arith.mulf %28, %35 : vector<2x128xf32>
    %c0_14 = arith.constant 0 : index
    %c0_15 = arith.constant 0 : index
    %37 = vector.load %arg5[%c0_14, %c0_15] : memref<2x128xf32, #tpu.memory_space<vmem>>, vector<2x128xf32>
    tpu.vector_store %arg5[%c0_14, %c0_15], %36 {strides = array<i32>} : memref<2x128xf32, #tpu.memory_space<vmem>>, vector<2x128xf32>,
    return
  }
  func.func @transform_0(%arg0: i32) -> (i32, i32) {
    %c0_i32 = arith.constant 0 : i32
    %c0_i32_0 = arith.constant 0 : i32
    return %arg0, %c0_i32 : i32, i32
  }
  func.func @transform_1(%arg0: i32) -> (i32, i32) {
    %c0_i32 = arith.constant 0 : i32
    %c0_i32_0 = arith.constant 0 : i32
    %c0_i32_1 = arith.constant 0 : i32
    return %c0_i32, %c0_i32_0 : i32, i32
  }
  func.func @transform_2(%arg0: i32) -> (i32, i32) {
    %c0_i32 = arith.constant 0 : i32
    %c0_i32_0 = arith.constant 0 : i32
    %c0_i32_1 = arith.constant 0 : i32
    return %c0_i32, %c0_i32_0 : i32, i32
  }
  func.func @transform_3(%arg0: i32) -> (i32, i32) {
    %c0_i32 = arith.constant 0 : i32
    %c0_i32_0 = arith.constant 0 : i32
    %c0_i32_1 = arith.constant 0 : i32
    return %c0_i32, %c0_i32_0 : i32, i32
  }
  func.func @transform_4(%arg0: i32) -> (i32, i32) {
    %c0_i32 = arith.constant 0 : i32
    %c0_i32_0 = arith.constant 0 : i32
    return %arg0, %c0_i32 : i32, i32
  }
}

</mosaic_0001>

<bundles_post_ra>
// kernel: visual_encoder_forward.8
= control target key start
LH: loop header
LB: loop body
LE: loop exit
PB: predicated region body
PF: predicated region fallthrough
CT: control target
= control target key end

     0   :  { %10 = vsyncpa [#allocation3], 0  ;;  %s1289_s0 = inlined_call_operand.hbm [shape: bf16[2,16,256], index: 0, kind: input, shape index: {}]   ;;  %s1290_s1 = inlined_call_operand.hbm [shape: bf16[1,256], index: 1, kind: input, shape index: {}]   ;;  %s1291_s2 = inlined_call_operand.hbm [shape: bf16[17,256], index: 2, kind: input, shape index: {}]   ;;  %s1292_s3 = inlined_call_operand.hbm [shape: f32[1,256], index: 3, kind: input, shape index: {}]   ;;  %s1293_s4 = inlined_call_operand.hbm [shape: f32[1,256], index: 4, kind: input, shape index: {}]   ;;  %s1294_s5 = inlined_call_operand.hbm [shape: bf16[2,17,256], index: 5, kind: output, shape index: {}]  }
   0x1   :  { %12 = vsyncpa [#allocation3 + $0x1], 0 }
   0x2   :  { %13 = vsyncpa [#allocation6], 0 }
   0x3   :  { %14 = vsyncpa [#allocation9], 0 }
   0x4   :  { %15 = vsyncpa [#allocation4], 0 }
   0x5   :  { %17 = vsyncpa [#allocation4 + $0x1], 0  ;;  %s977_s18 = smov 0   ;;  %s979_s19 = smov 0  }
   0x6   :  { %s981_s20 = smov 0   ;;  %s983_s21 = smov 0  }
   0x7 LB: > { %s998_s22 = sadd.s32 4294967295, %s935_s21   ;;  %s594_s23 = sadd.s32 4294967294, %s935_s21   ;;  %s935_s21 = sphi %s983_s21, %s1321_s21   ;;  %s931_s20 = sphi %s981_s20, %s1320_s20   ;;  %s927_s19 = sphi %s979_s19, %s1319_s19   ;;  %s923_s18 = sphi %s977_s18, %s1318_s18  }
   0x8   : > { %p43_p0 = scmp.ne.s32.totalorder %s927_s19, %s923_s18  ;;  %p1295_p1 = scmp.eq.s32.totalorder %s998_s22, 0 }
   0x9   : > { %p157_p3 = scmp.eq.s32.totalorder %s594_s23, 1  ;;  %p595_p5 = scmp.ge.s32.totalorder %s935_s21, 1 }
   0xa   : > { %p1007_p4 = por %p1295_p1, %p43_p0  ;;  %p164_p7 = scmp.lt.s32.totalorder %s935_s21, 3 }
   0xb   : > { %p1012_p6 = por %p157_p3, %p43_p0  ;;  %s937_s27 = smov [#allocation5]  }
   0xc   : > { %s1298_s24 = scalar_select %p1007_p4, 1, 0 }
   0xd   : > { %s1299_s25 = scalar_select %p1012_p6, 1, 0 }
   0xe   : > { %p1017_p8 = pnand %p595_p5, %p164_p7  ;;  %s177_s28 = sshll.u32 %s937_s27, 4  ;;  %s178_s28 = int_to_ptr.vmem [resolvable:$true] %s177_s28 }
   0xf   : > { %s938_s29 = smov [#allocation8]   ;;  %s939_s7 = smov [#allocation7]  }
  0x10   : > { %s1300_s26 = scalar_select %p1017_p8, 1, 0 }
  0x11   : > { %p642_p10 = pneg %p1017_p8  ;;  %s201_s30 = sshll.u32 %s938_s29, 4  ;;  %s1030_s30 = int_to_ptr.vmem [resolvable:$true] %s201_s30 }
  0x12   : > { %s187_s8 = sshll.u32 %s939_s7, 4  ;;  %s719_s11 = scalar_lea.hbm %s1290_s1, 32  ;;  %s1032_s8 = int_to_ptr.vmem [resolvable:$true] %s187_s8 }
  0x13   : > { %p1026_p11 = pnand %p642_p10, %p1295_p1  ;;  %p720_p12 = scmp.ne.s32.totalorder %s1290_s1, %s719_s11 }
  0x14   : > { %p726_p5 = scmp.lt.u32.totalorder %s719_s11, %s1290_s1 }
  0x15   : > { %p1042_p13 = pneg %p1026_p11 }
  0x17   : > { %p722_p0 = pnand %p1042_p13, %p720_p12 }
  0x19   : > { %p723_p3 = pneg %p722_p0 }
  0x1b   : > { %p728_p7 = pnand %p726_p5, %p723_p3 }
  0x1d   : > { %731 = shalt.err (!%p728_p7)
}
  0x1e   : > { %s732_s17 = scalar_lea.vmem %s178_s28, 32  ;;  %p740_p2 = scmp.lt.s32.totalorder %s178_s28, %s178_s28 }
  0x1f   : > { %p733_p10 = scmp.ne.s32.totalorder %s178_s28, %s732_s17  ;;  %p741_p6 = scmp.lt.s32.totalorder %s732_s17, %s732_s17 }
  0x21   : > { %p735_p9 = pnand %p733_p10, %p1042_p13  ;;  %p742_p4 = por %p741_p6, %p740_p2 }
  0x23   : > { %p736_p1 = pneg %p735_p9 }
  0x25   : > { %p743_p8 = pnand %p742_p4, %p736_p1 }
  0x27   : > { %746 = shalt.err (!%p743_p8)
}
  0x28   : > { %645 = dma.hbm_to_vmem [thread:$0]  (!%p1026_p11), %s1290_s1, 32, %s178_s28, [#allocation6]  }
  0x29   : > { %s747_s9 = scalar_lea.hbm %s1292_s3, 32 }
  0x2a   : > { %p748_p9 = scmp.ne.s32.totalorder %s1292_s3, %s747_s9  ;;  %p754_p1 = scmp.lt.u32.totalorder %s747_s9, %s1292_s3 }
  0x2c   : > { %p750_p12 = pnand %p748_p9, %p1042_p13 }
  0x2e   : > { %p751_p2 = pneg %p750_p12 }
  0x30   : > { %p756_p4 = pnand %p754_p1, %p751_p2 }
  0x32   : > { %759 = shalt.err (!%p756_p4)
}
  0x33   : > { %s760_s28 = scalar_lea.vmem %s1030_s30, 32  ;;  %p768_p3 = scmp.lt.s32.totalorder %s1030_s30, %s1030_s30 }
  0x34   : > { %p761_p6 = scmp.ne.s32.totalorder %s1030_s30, %s760_s28  ;;  %p769_p5 = scmp.lt.s32.totalorder %s760_s28, %s760_s28 }
  0x36   : > { %p763_p8 = pnand %p761_p6, %p1042_p13  ;;  %p770_p7 = por %p769_p5, %p768_p3 }
  0x38   : > { %p764_p0 = pneg %p763_p8 }
  0x3a   : > { %p771_p10 = pnand %p770_p7, %p764_p0 }
  0x3c   : > { %774 = shalt.err (!%p771_p10)
}
  0x3d   : > { %651 = dma.hbm_to_vmem [thread:$0]  (!%p1026_p11), %s1292_s3, 32, %s1030_s30, [#allocation9]  }
  0x3e   : > { %s775_s27 = scalar_lea.hbm %s1291_s2, 384 }
  0x3f   : > { %p776_p9 = scmp.ne.s32.totalorder %s1291_s2, %s775_s27  ;;  %p782_p1 = scmp.lt.u32.totalorder %s775_s27, %s1291_s2 }
  0x41   : > { %p778_p12 = pnand %p776_p9, %p1042_p13 }
  0x43   : > { %p779_p2 = pneg %p778_p12 }
  0x45   : > { %p784_p4 = pnand %p782_p1, %p779_p2 }
  0x47   : > { %787 = shalt.err (!%p784_p4)
}
  0x48   : > { %s788_s30 = scalar_lea.vmem %s1032_s8, 384  ;;  %p796_p3 = scmp.lt.s32.totalorder %s1032_s8, %s1032_s8 }
  0x49   : > { %p789_p6 = scmp.ne.s32.totalorder %s1032_s8, %s788_s30  ;;  %p797_p5 = scmp.lt.s32.totalorder %s788_s30, %s788_s30 }
  0x4b   : > { %p791_p8 = pnand %p789_p6, %p1042_p13  ;;  %p798_p7 = por %p797_p5, %p796_p3 }
  0x4d   : > { %p792_p0 = pneg %p791_p8 }
  0x4f   : > { %p799_p10 = pnand %p798_p7, %p792_p0 }
  0x51   : > { %802 = shalt.err (!%p799_p10)
}
  0x52   : > { %s940_s11 = smov 128   ;;  %s941_s12 = smov 8  }
  0x53   : > { %648 = dma.hbm_to_vmem [thread:$0]  (!%p1026_p11), %s1291_s2, 384, %s1032_s8, [#allocation6], %s940_s11, %s940_s11, %s941_s12  }
  0x54   : > { %s942_s15 = smov [#allocation10]   ;;  %s803_s27 = scalar_lea.hbm %s1293_s4, 32 }
  0x55   : > { %s212_s16 = sshll.u32 %s942_s15, 4  ;;  %p804_p9 = scmp.ne.s32.totalorder %s1293_s4, %s803_s27  ;;  %s213_s16 = int_to_ptr.vmem [resolvable:$true] %s212_s16 }
  0x56   : > { %p810_p1 = scmp.lt.u32.totalorder %s803_s27, %s1293_s4 }
  0x57   : > { %p806_p12 = pnand %p804_p9, %p1042_p13 }
  0x59   : > { %p807_p2 = pneg %p806_p12 }
  0x5b   : > { %p812_p4 = pnand %p810_p1, %p807_p2 }
  0x5d   : > { %815 = shalt.err (!%p812_p4)
}
  0x5e   : > { %s816_s8 = scalar_lea.vmem %s213_s16, 32  ;;  %p824_p3 = scmp.lt.s32.totalorder %s213_s16, %s213_s16 }
  0x5f   : > { %p817_p6 = scmp.ne.s32.totalorder %s213_s16, %s816_s8  ;;  %p825_p5 = scmp.lt.s32.totalorder %s816_s8, %s816_s8 }
  0x61   : > { %p819_p8 = pnand %p817_p6, %p1042_p13  ;;  %p826_p7 = por %p825_p5, %p824_p3 }
  0x63   : > { %p820_p0 = pneg %p819_p8 }
  0x65   : > { %p827_p10 = pnand %p826_p7, %p820_p0 }
  0x67   : > { %830 = shalt.err (!%p827_p10)
}
  0x68   : > { %654 = dma.hbm_to_vmem [thread:$0]  (!%p1026_p11), %s1293_s4, 32, %s213_s16, [#allocation9]  }
  0x69   : > { %s1126_s14 = sadd.s32 1, %s935_s21   ;;  %s30_s28 = sadd.s32 1, %s931_s20 }
  0x6a   : > { %s27_s6 = ssub.s32 %s935_s21, %s1126_s14  ;;  %p37_p13 = scmp.ne.s32.totalorder %s931_s20, %s927_s19 }
  0x6b   : > { %p28_p9 = scmp.eq.s32.totalorder %s27_s6, 0  ;;  %p38_p12 = scmp.eq.s32.totalorder %s935_s21, 0 }
  0x6c   : > { %p1303_p2 = scmp.eq.s32.totalorder %s998_s22, 1  ;;  %p667_p4 = scmp.lt.s32.totalorder %s935_s21, 2 }
  0x6d   : > { %s1142_s17 = scalar_select %p28_p9, %s931_s20, %s30_s28  }
  0x6e   : > { %p1136_p1 = por %p1303_p2, %p37_p13  ;;  %p39_p6 = por %p38_p12, %p37_p13 }
  0x6f   : > { %s223_s23 = sand.u32 1, %s931_s20   ;;  %s616_s16 = sshll.u32 %s935_s21, 8 }
  0x70   : > { %s601_s27 = sshll.u32 %s223_s23, 4  ;;  %s1149_s9 = scalar_lea.hbm %s1289_s0, %s616_s16 }
  0x71   : > { %s227_s10 = scalar_lea.vmem [#allocation2], %s601_s27  ;;  %p1153_p11 = pnand %p667_p4, %p39_p6 }
  0x72   : > { %s234_s8 = sshll.u32 %s227_s10, 4  ;;  %s1157_s13 = scalar_lea.sflag [#allocation3], %s223_s23  ;;  %s1151_s8 = int_to_ptr.vmem [resolvable:$true] %s234_s8 }
  0x73   : > { %s831_s28 = scalar_lea.hbm %s1149_s9, 256  ;;  %p833_p0 = pneg %p1153_p11 }
  0x74   : > { %p832_p8 = scmp.ne.s32.totalorder %s1149_s9, %s831_s28  ;;  %s836_s16 = scalar_lea.hbm %s1289_s0, 512 }
  0x75   : > { %p837_p7 = scmp.lt.u32.totalorder %s1149_s9, %s1289_s0  ;;  %p838_p10 = scmp.lt.u32.totalorder %s836_s16, %s831_s28 }
  0x76   : > { %p834_p3 = pnand %p833_p0, %p832_p8  ;;  %p840_p9 = scmp.lt.u32.totalorder %s831_s28, %s1149_s9 }
  0x77   : > { %p839_p13 = por %p838_p10, %p837_p7 }
  0x78   : > { %p835_p5 = pneg %p834_p3 }
  0x79   : > { %p841_p12 = por %p840_p9, %p839_p13 }
  0x7b   : > { %p842_p2 = pnand %p841_p12, %p835_p5 }
  0x7d   : > { %845 = shalt.err (!%p842_p2)
}
  0x7e   : > { %s846_s23 = scalar_lea.vmem %s1151_s8, 256  ;;  %s943_s10 = smov [#allocation2]  }
  0x7f   : > { %p847_p4 = scmp.ne.s32.totalorder %s1151_s8, %s846_s23  ;;  %s851_s6 = sshll.u32 %s943_s10, 4  ;;  %s852_s6 = int_to_ptr.vmem [resolvable:$false] %s851_s6 }
  0x80   : > { %s853_s27 = scalar_lea.vmem %s852_s6, 512  ;;  %p854_p3 = scmp.lt.s32.totalorder %s1151_s8, %s852_s6 }
  0x81   : > { %p849_p6 = pnand %p847_p4, %p833_p0  ;;  %p855_p7 = scmp.lt.s32.totalorder %s853_s27, %s846_s23 }
  0x83   : > { %p850_p8 = pneg %p849_p6  ;;  %p856_p10 = por %p855_p7, %p854_p3 }
  0x85   : > { %p857_p13 = pnand %p856_p10, %p850_p8 }
  0x87   : > { %860 = shalt.err (!%p857_p13)
}
  0x88   : > { %658 = dma.hbm_to_vmem [thread:$0]  (!%p1153_p11), %s1149_s9, 256, %s1151_s8, %s1157_s13, %s940_s11, %s940_s11, %s941_s12  }
  0x89   : > { %p1306_p0 = scmp.ne.s32.totalorder %s1300_s26, 0 }
  0x8a   : > { %s1191_s28 = sand.u32 (!%p1306_p0), 1, %s927_s19   ;;  %p1307_p5 = scmp.ne.s32.totalorder (!%p1306_p0), %s1298_s24, 0 }
  0x8b   : > { %246 = sbr.rel (%p1306_p0) target bundleno = 498 (0x1f2), region = 40  ;;  %s605_s16 = sshll.u32 (!%p1306_p0), %s1191_s28, 4 }
  0x8c   : > { %s249_s29 = scalar_lea.sflag (!%p1306_p0), [#allocation3], %s1191_s28  ;;  %s252_s7 = scalar_lea.vmem (!%p1306_p0), [#allocation2], %s605_s16 }
  0x92   : > { %906 = dma.done.wait (%p1307_p5), %s249_s29, 256  }
  0x93   : > { %908 = vsyncadd (%p1307_p5), %s249_s29, 4294967040  ;;  %p1308_p9 = scmp.eq.s32.totalorder %s998_s22, 0 }
  0x95   : > { %910 = dma.done.wait (%p1308_p9), [#allocation6], 416   ;;  %p1309_p11 = pmov %p1308_p9 }
  0x96   : > { %p1310_p12 = pmov %p1308_p9 }
  0x97   : > { %912 = vsyncadd (%p1309_p11), [#allocation6], 4294966880 }
  0x98   : > { %914 = dma.done.wait (%p1310_p12), [#allocation9], 64   ;;  %p1311_p2 = pmov %p1308_p9 }
  0x99   : > { %v304_v0 = vlaneseq  ;;  %v296_v2 = vld [vmem:[%s252_s7 + $0x8] sm:$0xff]  ;;  %v335_v3 = vld [vmem:[#allocation7 + $0x10] sm:$0x11]  ;;  %v301_v11 = vld [vmem:[#allocation5] sm:$0x3]  ;;  %vm318_vm0 = vcmask 1040384  }
  0x9a   : > { %916 = vsyncadd (%p1311_p2), [#allocation9], 4294967232  ;;  %v295_v4 = vld [vmem:[%s252_s7] sm:$0xff]  ;;  %v299_v7 = vunpack.c.l.bf16 %v296_v2  ;;  %v300_v8 = vunpack.c.h.bf16 %v296_v2  ;;  %v340_v9 = vunpack.c.l.bf16 %v335_v3  ;;  %v341_v10 = vunpack.c.h.bf16 %v335_v3  ;;  %s620_s24 = smul.u32 24, %s1191_s28  ;;  %s944_s23 = smov [#allocation11]  }
  0x9b   : > { %v1207_v1 = vshrl.u32 %v304_v0, 7  ;;  %v333_v12 = vld [vmem:[#allocation7] sm:$0xff]  ;;  %v297_v13 = vunpack.c.l.bf16 %v295_v4  ;;  %v298_v14 = vunpack.c.h.bf16 %v295_v4  ;;  %v302_v15 = vunpack.c.l.bf16 %v301_v11  ;;  %v334_v26 = vld [vmem:[#allocation7 + $0x8] sm:$0xff]  ;;  %s621_s11 = smul.u32 384, %s998_s22  ;;  %s470_s22 = scalar_lea.sflag [#allocation4], %s1191_s28 }
  0x9c   : > { %v321_v16 = vrot.slane %v299_v7, 7  ;;  %v323_v17 = vrot.slane %v300_v8, 7  ;;  %v336_v18 = vunpack.c.l.bf16 %v333_v12  ;;  %v337_v19 = vunpack.c.h.bf16 %v333_v12  ;;  %s294_s26 = scalar_lea.vmem [#allocation11], %s620_s24  ;;  %s865_s10 = sshll.u32 %s944_s23, 4  ;;  %s866_s10 = int_to_ptr.vmem [resolvable:$false] %s865_s10 }
  0x9d   : > { %v1210_v5 = vsub.s32 0, %v1207_v1  ;;  %v310_v6 = vsub.s32 2, %v1207_v1  ;;  %v319_v22 = vrot.slane %v297_v13, 7  ;;  %v320_v23 = vrot.slane %v298_v14, 7  ;;  %v401_v13 = vld [vmem:[#allocation8] sm:$0x3]  ;;  %s1243_s30 = scalar_lea.hbm %s1294_s5, %s621_s11 }
  0x9e   : > { %v346_v24 = vadd.f32 %v340_v9, %v321_v16  ;;  %v347_v25 = vadd.f32 %v341_v10, %v323_v17  ;;  %v338_v36 = vunpack.c.l.bf16 %v334_v26  ;;  %v339_v37 = vunpack.c.h.bf16 %v334_v26  ;;  %v419_v14 = vld [vmem:[#allocation10] sm:$0x3]  ;;  %s483_s12 = sshll.u32 %s294_s26, 4  ;;  %s867_s6 = scalar_lea.vmem %s866_s10, 768  ;;  %s1245_s12 = int_to_ptr.vmem [resolvable:$true] %s483_s12 }
  0x9f   : > { %v307_v20 = vrot.slane %v302_v15, %v1210_v5  ;;  %v311_v21 = vrot.slane %v302_v15, %v310_v6  ;;  %v322_v29 = vsel %vm318_vm0, %v319_v22, %v321_v16  ;;  %v324_v30 = vsel %vm318_vm0, %v320_v23, %v323_v17  ;;  %s861_s13 = scalar_lea.vmem %s1245_s12, 384  ;;  %p868_p3 = scmp.lt.s32.totalorder %s1245_s12, %s866_s10 }
  0xa0   : > { %v354_v31 = vsel %vm318_vm0, %v346_v24, 0.0  ;;  %v355_v32 = vsel %vm318_vm0, %v347_v25, 0.0  ;;  %v344_v39 = vadd.f32 %v338_v36, %v322_v29  ;;  %v345_v40 = vadd.f32 %v339_v37, %v324_v30  ;;  %p862_p4 = scmp.ne.s32.totalorder %s1245_s12, %s861_s13  ;;  %p869_p7 = scmp.lt.s32.totalorder %s867_s6, %s861_s13 }
  0xa1   : > { %v331_v27 = vsel %vm318_vm0, %v307_v20, %v319_v22  ;;  %v332_v28 = vsel %vm318_vm0, %v311_v21, %v320_v23  ;;  %v356_v35 = vadd.f32 %v355_v32, %v354_v31  ;;  %v409_v12 = vsub.s32 1, %v1207_v1  ;;  %v466_v32 = vld [vmem:[%s294_s26 + $0x10] sm:$0x11] }
  0xa2   : > { %v342_v33 = vadd.f32 %v336_v18, %v331_v27  ;;  %v343_v34 = vadd.f32 %v337_v19, %v332_v28  ;;  %v351_v41 = vadd.f32 %v345_v40, %v344_v39  ;;  %v406_v15 = vrot.slane %v401_v13, %v1210_v5  ;;  %p863_p6 = pnand %p862_p4, %p1136_p1  ;;  %p870_p10 = por %p869_p7, %p868_p3 }
  0xa3   : > { %357 = vadd.xlane.f32.xlu0 %v356_v35  ;;  %v410_v16 = vrot.slane %v401_v13, %v409_v12  ;;  %vm460_vm1 = vsmask.f32 256  ;;  %vm462_vm2 = vcmask 1044484   ;;  %vm463_vm3 = vsmask.f32 4352 }
  0xa4   : > { %v348_v38 = vadd.f32 %v343_v34, %v342_v33  ;;  %352 = vadd.xlane.f32.xlu1 %v351_v41  ;;  %v424_v18 = vrot.slane %v419_v14, %v1210_v5  ;;  %v428_v19 = vrot.slane %v419_v14, %v409_v12  ;;  %vm1227_vm4 = vmand %vm318_vm0, %vm460_vm1  ;;  %p864_p8 = pneg %p863_p6 }
  0xa5   : > { %vm1231_vm5 = vmand %vm462_vm2, %vm463_vm3 }
  0xa6   : > { %vm465_vm6 = vmor %vm1231_vm5, %vm1227_vm4  ;;  %p871_p13 = pnand %p870_p10, %p864_p8 }
  0xa7   : > { %349 = vadd.xlane.f32.xlu0 %v348_v38 }
 0x130   : > { %v358_v42 = vpop.xlane.xlu0 %357 }
 0x131   : > { %v362_v43 = vmul.f32 0.00390625, %v358_v42  ;;  %v353_v47 = vpop.xlane.xlu1 %352 }
 0x132   : > { %v361_v49 = vmul.f32 0.00390625, %v353_v47 }
 0x133   : > { %v367_v44 = vsub.f32 %v346_v24, %v362_v43  ;;  %v368_v45 = vsub.f32 %v347_v25, %v362_v43 }
 0x134   : > { %v350_v46 = vpop.xlane.xlu0 %349  ;;  %v365_v54 = vsub.f32 %v344_v39, %v361_v49  ;;  %v366_v55 = vsub.f32 %v345_v40, %v361_v49 }
 0x135   : > { %v360_v48 = vmul.f32 0.00390625, %v350_v46  ;;  %v373_v50 = vmul.f32 %v367_v44, %v367_v44  ;;  %v374_v51 = vmul.f32 %v368_v45, %v368_v45 }
 0x136   : > { %v371_v61 = vmul.f32 %v365_v54, %v365_v54  ;;  %v372_v62 = vmul.f32 %v366_v55, %v366_v55 }
 0x137   : > { %v363_v52 = vsub.f32 %v342_v33, %v360_v48  ;;  %v364_v53 = vsub.f32 %v343_v34, %v360_v48  ;;  %v381_v56 = vsel %vm318_vm0, %v373_v50, 0.0  ;;  %v382_v57 = vsel %vm318_vm0, %v374_v51, 0.0 }
 0x138   : > { %v383_v58 = vadd.f32 %v382_v57, %v381_v56  ;;  %v378_v0 = vadd.f32 %v372_v62, %v371_v61 }
 0x139   : > { %v369_v59 = vmul.f32 %v363_v52, %v363_v52  ;;  %v370_v60 = vmul.f32 %v364_v53, %v364_v53 }
 0x13a   : > { %384 = vadd.xlane.f32.xlu1 %v383_v58 }
 0x13b   : > { %v375_v63 = vadd.f32 %v370_v60, %v369_v59 }
 0x13d   : > { %376 = vadd.xlane.f32.xlu0 %v375_v63 }
 0x13e   : > { %379 = vadd.xlane.f32.xlu1 %v378_v0 }
 0x1c7   : > { %v385_v2 = vpop.xlane.xlu1 %384 }
 0x1c8   : > { %v388_v3 = vmul.f32 0.00390625, %v385_v2 }
 0x1ca   : > { %v377_v4 = vpop.xlane.xlu0 %376  ;;  %v391_v6 = vadd.f32 1e-05, %v388_v3 }
 0x1cb   : > { %v386_v7 = vmul.f32 0.00390625, %v377_v4  ;;  %v380_v8 = vpop.xlane.xlu1 %379 }
 0x1cc   : > { %713 = vrsqrt.f32 %v391_v6  ;;  %v387_v10 = vmul.f32 0.00390625, %v380_v8 }
 0x1cd   : > { %v389_v9 = vadd.f32 1e-05, %v386_v7 }
 0x1ce   : > { %v390_v11 = vadd.f32 1e-05, %v387_v10 }
 0x1cf   : > { %715 = vrsqrt.f32 %v389_v9 }
 0x1d0   : > { %717 = vrsqrt.f32 %v390_v11 }
 0x1d6   : > { %v714_v17 = vpop.eup %713 }
 0x1d7   : > { %v399_v20 = vmul.f32 %v714_v17, %v367_v44  ;;  %v400_v21 = vmul.f32 %v714_v17, %v368_v45 }
 0x1d9   : > { %v716_v22 = vpop.eup %715  ;;  %v417_v24 = vmul.f32 %v406_v15, %v399_v20  ;;  %v418_v25 = vmul.f32 %v410_v16, %v400_v21 }
 0x1da   : > { %v395_v26 = vmul.f32 %v716_v22, %v363_v52  ;;  %v396_v27 = vmul.f32 %v716_v22, %v364_v53  ;;  %v718_v28 = vpop.eup %717 }
 0x1db   : > { %v435_v5 = vadd.f32 %v424_v18, %v417_v24  ;;  %v436_v29 = vadd.f32 %v428_v19, %v418_v25  ;;  %v397_v33 = vmul.f32 %v718_v28, %v365_v54  ;;  %v398_v34 = vmul.f32 %v718_v28, %v366_v55 }
 0x1dc   : > { %v413_v30 = vmul.f32 %v406_v15, %v395_v26  ;;  %v414_v31 = vmul.f32 %v410_v16, %v396_v27 }
 0x1dd   : > { %v619_v35 = vpack.c.bf16 %v436_v29, %v435_v5  ;;  %v415_v38 = vmul.f32 %v406_v15, %v397_v33  ;;  %v416_v39 = vmul.f32 %v410_v16, %v398_v34 }
 0x1de   : > { %v431_v36 = vadd.f32 %v424_v18, %v413_v30  ;;  %v432_v37 = vadd.f32 %v428_v19, %v414_v31 }
 0x1df   : > { %v467_v40 = vsel %vm465_vm6, %v619_v35, %v466_v32  ;;  %v433_v42 = vadd.f32 %v424_v18, %v415_v38  ;;  %v434_v43 = vadd.f32 %v428_v19, %v416_v39 }
 0x1e0   : > { %v617_v41 = vpack.c.bf16 %v432_v37, %v431_v36  ;;  %468 = vst [vmem:[%s294_s26 + $0x10] sm:$0x11] %v467_v40 }
 0x1e1   : > { %v618_v44 = vpack.c.bf16 %v434_v43, %v433_v42 }
 0x1e2   : > { %457 = vst [vmem:[%s294_s26] sm:$0xff] %v617_v41 }
 0x1e3   : > { %458 = vst [vmem:[%s294_s26 + $0x8] sm:$0xff] %v618_v44 }
 0x1e4   : > { %874 = shalt.err (!%p871_p13)
}
 0x1e5   : > { %s875_s27 = scalar_lea.hbm %s1243_s30, 384  ;;  %s879_s7 = scalar_lea.hbm %s1294_s5, 768 }
 0x1e6   : > { %p876_p0 = scmp.ne.s32.totalorder %s1243_s30, %s875_s27  ;;  %p880_p11 = scmp.lt.u32.totalorder %s1243_s30, %s1294_s5 }
 0x1e7   : > { %p881_p12 = scmp.lt.u32.totalorder %s879_s7, %s875_s27  ;;  %p883_p4 = scmp.lt.u32.totalorder %s875_s27, %s1243_s30 }
 0x1e8   : > { %p877_p5 = pnand %p876_p0, %p1136_p1 }
 0x1e9   : > { %p882_p2 = por %p881_p12, %p880_p11 }
 0x1ea   : > { %p878_p9 = pneg %p877_p5 }
 0x1eb   : > { %p884_p6 = por %p883_p4, %p882_p2 }
 0x1ed   : > { %p885_p8 = pnand %p884_p6, %p878_p9 }
 0x1ef   : > { %888 = shalt.err (!%p885_p8)
}
 0x1f0   : > { %s945_s11 = smov 128   ;;  %s946_s9 = smov 8  }
 0x1f1   : > { %640 = dma.vmem_to_hbm [thread:$0]  (%p1136_p1), %s1245_s12, 384, %s1243_s30, %s470_s22, %s945_s11, %s945_s11, %s946_s9  }
 0x1f2 PF: > { %s498_s8 = sand.u32 1, %s923_s18   ;;  %p1316_p3 = scmp.ne.s32.totalorder %s1299_s25, 0 }
 0x1f3   : > { %p1317_p7 = scmp.ge.s32.totalorder %s935_s21, 2  ;;  %s499_s13 = scalar_lea.sflag [#allocation4], %s498_s8 }
 0x1f5   : > { %p660_p10 = pnand %p1317_p7, %p1316_p3 }
 0x1f7   : > { %918 = dma.done.wait (!%p660_p10), %s499_s13, 384  }
 0x1f8   : > { %920 = vsyncadd (!%p660_p10), %s499_s13, 4294966912  ;;  %p20_p13 = scmp.ge.s32.totalorder %s1126_s14, 4   ;;  %s1318_s18 = smov %s927_s19 }
 0x1f9   : > { %s1319_s19 = smov %s931_s20  ;;  %s1320_s20 = smov %s1142_s17 }
 0x1fa   : > { %s1321_s21 = smov %s1126_s14  ;;  %22 = sbr.rel (!%p20_p13) target bundleno = 7 (0x7), region = 101 }
 0x201   :  { %504 = vsyncpa [#allocation3], 1 }
 0x202   :  { %506 = vsyncpa [#allocation3 + $0x1], 1 }
 0x203   :  { %507 = vsyncpa [#allocation6], 1 }
 0x204   :  { %508 = vsyncpa [#allocation9], 1 }
 0x205   :  { %509 = vsyncpa [#allocation4], 1 }
 0x206   :  { %511 = vsyncpa [#allocation4 + $0x1], 1 }

// kernel: visual_encoder_forward.7
= control target key start
LH: loop header
LB: loop body
LE: loop exit
PB: predicated region body
PF: predicated region fallthrough
CT: control target
= control target key end

     0   :  { %7 = vsyncpa [#allocation4], 0  ;;  %s606_s0 = inlined_call_operand.hbm [shape: bf16[32,192], index: 0, kind: input, shape index: {}]   ;;  %s607_s1 = inlined_call_operand.hbm [shape: bf16[192,256], index: 1, kind: input, shape index: {}]   ;;  %s608_s2 = inlined_call_operand.hbm [shape: bf16[32,256], index: 2, kind: output, shape index: {}]  }
   0x1   :  { %8 = vsyncpa [#allocation7], 0 }
   0x2   :  { %9 = vsyncpa [#allocation5], 0  ;;  %s541_s9 = smov [#allocation3]   ;;  %s469_s13 = scalar_lea.hbm %s606_s0, 512 }
   0x3   :  { %s15_s10 = sshll.u32 %s541_s9, 4  ;;  %p470_p0 = scmp.ne.s32.totalorder %s606_s0, %s469_s13  ;;  %s16_s10 = int_to_ptr.vmem [resolvable:$true] %s15_s10 }
   0x4   :  { %p473_p1 = scmp.lt.u32.totalorder %s469_s13, %s606_s0 }
   0x6   :  { %p475_p2 = pnand %p473_p1, %p470_p0 }
   0x8   :  { %478 = shalt.err (!%p475_p2)
}
   0x9   :  { %s479_s18 = scalar_lea.vmem %s16_s10, 512  ;;  %p484_p4 = scmp.lt.s32.totalorder %s16_s10, %s16_s10 }
   0xa   :  { %p480_p3 = scmp.ne.s32.totalorder %s16_s10, %s479_s18  ;;  %p485_p5 = scmp.lt.s32.totalorder %s479_s18, %s479_s18 }
   0xc   :  { %p486_p6 = por %p485_p5, %p484_p4 }
   0xe   :  { %p487_p7 = pnand %p486_p6, %p480_p3 }
  0x10   :  { %490 = shalt.err (!%p487_p7)
}
  0x11   :  { %s542_s19 = smov 128   ;;  %s543_s20 = smov 8  }
  0x12   :  { %21 = dma.hbm_to_vmem [thread:$0]  %s606_s0, 512, %s16_s10, [#allocation4], %s542_s19, %s542_s19, %s543_s20  }
  0x13   :  { %s544_s23 = smov [#allocation6]   ;;  %s491_s27 = scalar_lea.hbm %s607_s1, 3072 }
  0x14   :  { %s27_s24 = sshll.u32 %s544_s23, 4  ;;  %p492_p8 = scmp.ne.s32.totalorder %s607_s1, %s491_s27  ;;  %s28_s24 = int_to_ptr.vmem [resolvable:$true] %s27_s24 }
  0x15   :  { %p495_p9 = scmp.lt.u32.totalorder %s491_s27, %s607_s1 }
  0x17   :  { %p497_p10 = pnand %p495_p9, %p492_p8 }
  0x19   :  { %500 = shalt.err (!%p497_p10)
}
  0x1a   :  { %s501_s4 = scalar_lea.vmem %s28_s24, 3072  ;;  %p506_p12 = scmp.lt.s32.totalorder %s28_s24, %s28_s24 }
  0x1b   :  { %p502_p11 = scmp.ne.s32.totalorder %s28_s24, %s501_s4  ;;  %p507_p13 = scmp.lt.s32.totalorder %s501_s4, %s501_s4 }
  0x1d   :  { %p508_p0 = por %p507_p13, %p506_p12 }
  0x1f   :  { %p509_p1 = pnand %p508_p0, %p502_p11 }
  0x21   :  { %512 = shalt.err (!%p509_p1)
}
  0x22   :  { %33 = dma.hbm_to_vmem [thread:$0]  %s607_s1, 3072, %s28_s24, [#allocation7], %s542_s19, %s542_s19, %s543_s20  }
  0x23   :  { %535 = dma.done.wait [#allocation4], 512  }
  0x24   :  { %536 = vsyncadd [#allocation4], 4294966784 }
  0x25   :  { %537 = dma.done.wait [#allocation7], 3072  }
  0x26   :  { %538 = vsyncadd [#allocation7], 4294964224  ;;  %v427_v0 = vld [vmem:[#allocation6 + $0x4] ss:$8 sps:$4 sm:$0xff]   ;;  %v429_v1 = vld [vmem:[#allocation6] ss:$8 sps:$4 sm:$0xff]  }
  0x27   :  { %234 = vmatprep.subr.bf16.mxu0 %v427_v0  ;;  %398 = vmatprep.subr.bf16.mxu1 %v427_v0  ;;  %v430_v2 = vld [vmem:[#allocation6 + $0x14] ss:$8 sps:$4 sm:$0xff]   ;;  %v432_v3 = vld [vmem:[#allocation6 + $0x10] ss:$8 sps:$4 sm:$0xff]   ;;  %v433_v4 = vld [vmem:[#allocation6 + $0x24] ss:$8 sps:$4 sm:$0xff]  }
  0x28   :  { %235 = vmatpush1.bf16.msra.mxu0 %v429_v1  ;;  %410 = vmatpush1.bf16.msra.mxu1 %v429_v1  ;;  %v435_v5 = vld [vmem:[#allocation6 + $0x20] ss:$8 sps:$4 sm:$0xff]   ;;  %v436_v6 = vld [vmem:[#allocation6 + $0x34] ss:$8 sps:$4 sm:$0xff]   ;;  %v438_v7 = vld [vmem:[#allocation6 + $0x30] ss:$8 sps:$4 sm:$0xff]  }
  0x29   :  { %236 = vmatprep.subr.bf16.mxu0 %v430_v2  ;;  %399 = vmatprep.subr.bf16.mxu1 %v430_v2  ;;  %v439_v8 = vld [vmem:[#allocation6 + $0x44] ss:$8 sps:$4 sm:$0xff]   ;;  %v441_v9 = vld [vmem:[#allocation6 + $0x40] ss:$8 sps:$4 sm:$0xff]   ;;  %v442_v10 = vld [vmem:[#allocation6 + $0x54] ss:$8 sps:$4 sm:$0xff]  }
  0x2a   :  { %v465_v11 = vld [vmem:[#allocation3 + $0x4] ss:$8 sps:$4 sm:$0xff]   ;;  %vm227_vm0 = vcmask 523264   ;;  %v468_v12 = vld [vmem:[#allocation3 + $0x14] ss:$8 sps:$4 sm:$0xff]   ;;  %s545_s1 = smov [#allocation8]  }
  0x2b   :  { %v444_v13 = vld [vmem:[#allocation6 + $0x50] ss:$8 sps:$4 sm:$0xff]   ;;  %v445_v14 = vld [vmem:[#allocation6 + $0x64] ss:$8 sps:$4 sm:$0xff]   ;;  %388 = vmatprep.mubr.msk.bf16.mxu0 %vm227_vm0, %v465_v11  ;;  %389 = vmatprep.mubr.msk.bf16.mxu1 %vm227_vm0, %v468_v12  ;;  %v447_v15 = vld [vmem:[#allocation6 + $0x60] ss:$8 sps:$4 sm:$0xff]  }
  0x2c   :  { %237 = vmatpush1.bf16.msra.mxu0 %v432_v3  ;;  %411 = vmatpush1.bf16.msra.mxu1 %v432_v3  ;;  %v448_v16 = vld [vmem:[#allocation6 + $0x74] ss:$8 sps:$4 sm:$0xff]   ;;  %v450_v17 = vld [vmem:[#allocation6 + $0x70] ss:$8 sps:$4 sm:$0xff]   ;;  %v451_v18 = vld [vmem:[#allocation6 + $0x84] ss:$8 sps:$4 sm:$0xff]  }
  0x2d   :  { %238 = vmatprep.subr.bf16.mxu0 %v433_v4  ;;  %400 = vmatprep.subr.bf16.mxu1 %v433_v4  ;;  %v453_v19 = vld [vmem:[#allocation6 + $0x80] ss:$8 sps:$4 sm:$0xff]   ;;  %v454_v20 = vld [vmem:[#allocation6 + $0x94] ss:$8 sps:$4 sm:$0xff]   ;;  %v456_v21 = vld [vmem:[#allocation6 + $0x90] ss:$8 sps:$4 sm:$0xff]  }
  0x2e   :  { %v457_v22 = vld [vmem:[#allocation6 + $0xa4] ss:$8 sps:$4 sm:$0xff]   ;;  %v459_v23 = vld [vmem:[#allocation6 + $0xa0] ss:$8 sps:$4 sm:$0xff]   ;;  %v460_v24 = vld [vmem:[#allocation6 + $0xb4] ss:$8 sps:$4 sm:$0xff]  }
  0x2f   :  { %v462_v25 = vld [vmem:[#allocation6 + $0xb0] ss:$8 sps:$4 sm:$0xff]   ;;  %v463_v26 = vld [vmem:[#allocation3] ss:$8 sps:$4 sm:$0xff]   ;;  %s347_s6 = sshll.u32 %s545_s1, 4  ;;  %s348_s6 = int_to_ptr.vmem [resolvable:$true] %s347_s6 }
  0x30   :  { %239 = vmatpush1.bf16.msra.mxu0 %v435_v5  ;;  %412 = vmatpush1.bf16.msra.mxu1 %v435_v5  ;;  %v466_v27 = vld [vmem:[#allocation3 + $0x10] ss:$8 sps:$4 sm:$0xff]   ;;  %s513_s7 = scalar_lea.vmem %s348_s6, 512  ;;  %p518_p3 = scmp.lt.s32.totalorder %s348_s6, %s348_s6 }
  0x31   :  { %240 = vmatprep.subr.bf16.mxu0 %v436_v6  ;;  %401 = vmatprep.subr.bf16.mxu1 %v436_v6  ;;  %p514_p2 = scmp.ne.s32.totalorder %s348_s6, %s513_s7  ;;  %p519_p4 = scmp.lt.s32.totalorder %s513_s7, %s513_s7 }
  0x33   :  { %p520_p5 = por %p519_p4, %p518_p3 }
  0x34   :  { %241 = vmatpush1.bf16.msra.mxu0 %v438_v7  ;;  %413 = vmatpush1.bf16.msra.mxu1 %v438_v7 }
  0x35   :  { %242 = vmatprep.subr.bf16.mxu0 %v439_v8  ;;  %402 = vmatprep.subr.bf16.mxu1 %v439_v8  ;;  %p521_p6 = pnand %p520_p5, %p514_p2 }
  0x38   :  { %243 = vmatpush1.bf16.msra.mxu0 %v441_v9  ;;  %414 = vmatpush1.bf16.msra.mxu1 %v441_v9 }
  0x39   :  { %244 = vmatprep.subr.bf16.mxu0 %v442_v10  ;;  %403 = vmatprep.subr.bf16.mxu1 %v442_v10 }
  0x3c   :  { %245 = vmatpush1.bf16.msra.mxu0 %v444_v13  ;;  %415 = vmatpush1.bf16.msra.mxu1 %v444_v13 }
  0x3d   :  { %246 = vmatprep.subr.bf16.mxu0 %v445_v14  ;;  %404 = vmatprep.subr.bf16.mxu1 %v445_v14 }
  0x40   :  { %247 = vmatpush1.bf16.msra.mxu0 %v447_v15  ;;  %416 = vmatpush1.bf16.msra.mxu1 %v447_v15 }
  0x41   :  { %248 = vmatprep.subr.bf16.mxu0 %v448_v16  ;;  %405 = vmatprep.subr.bf16.mxu1 %v448_v16 }
  0x44   :  { %249 = vmatpush1.bf16.msra.mxu0 %v450_v17  ;;  %417 = vmatpush1.bf16.msra.mxu1 %v450_v17 }
  0x45   :  { %250 = vmatprep.subr.bf16.mxu0 %v451_v18  ;;  %406 = vmatprep.subr.bf16.mxu1 %v451_v18 }
  0x48   :  { %251 = vmatpush1.bf16.msra.mxu0 %v453_v19  ;;  %418 = vmatpush1.bf16.msra.mxu1 %v453_v19 }
  0x49   :  { %252 = vmatprep.subr.bf16.mxu0 %v454_v20  ;;  %407 = vmatprep.subr.bf16.mxu1 %v454_v20 }
  0x4c   :  { %253 = vmatpush1.bf16.msra.mxu0 %v456_v21  ;;  %419 = vmatpush1.bf16.msra.mxu1 %v456_v21 }
  0x4d   :  { %254 = vmatprep.subr.bf16.mxu0 %v457_v22  ;;  %408 = vmatprep.subr.bf16.mxu1 %v457_v22 }
  0x50   :  { %255 = vmatpush1.bf16.msra.mxu0 %v459_v23  ;;  %420 = vmatpush1.bf16.msra.mxu1 %v459_v23 }
  0x51   :  { %256 = vmatprep.subr.bf16.mxu0 %v460_v24  ;;  %409 = vmatprep.subr.bf16.mxu1 %v460_v24 }
  0x54   :  { %257 = vmatpush1.bf16.msra.mxu0 %v462_v25  ;;  %421 = vmatpush1.bf16.msra.mxu1 %v462_v25 }
  0x57   :  { %267 = vmatmul.mubr.bf16.vlgmr.msra.gmra.mrb[0].mxu0 %v463_v26  ;;  %277 = vmatmul.mubr.bf16.vlgmr.msra.gmra.mrb[0].mxu1 %v466_v27 }
 0x12a   :  { %v268_v28 = vpop.f32.mrb[0].mxu0  ;;  %v278_v29 = vpop.f32.mrb[0].mxu1 }
 0x12b   :  { %v270_v30 = vpop.f32.mrb[1].mxu0  ;;  %v280_v31 = vpop.f32.mrb[1].mxu1 }
 0x12c   :  { %v394_v32 = vpack.c.bf16 %v270_v30, %v268_v28  ;;  %v396_v33 = vpack.c.bf16 %v280_v31, %v278_v29  ;;  %v272_v34 = vpop.f32.mrb[2].mxu0  ;;  %v282_v35 = vpop.f32.mrb[2].mxu1 }
 0x12d   :  { %v274_v36 = vpop.f32.mrb[3].mxu0  ;;  %v284_v37 = vpop.f32.mrb[3].mxu1 }
 0x12e   :  { %338 = vst [vmem:[#allocation8] sm:$0xff] %v394_v32  ;;  %340 = vst [vmem:[#allocation8 + $0x10] sm:$0xff] %v396_v33  ;;  %v395_v38 = vpack.c.bf16 %v274_v36, %v272_v34  ;;  %v397_v39 = vpack.c.bf16 %v284_v37, %v282_v35 }
 0x130   :  { %339 = vst [vmem:[#allocation8 + $0x8] sm:$0xff] %v395_v38  ;;  %341 = vst [vmem:[#allocation8 + $0x18] sm:$0xff] %v397_v39 }
 0x131   :  { %524 = shalt.err (!%p521_p6)
}
 0x132   :  { %s525_s10 = scalar_lea.hbm %s608_s2, 512 }
 0x133   :  { %p526_p7 = scmp.ne.s32.totalorder %s608_s2, %s525_s10  ;;  %p529_p8 = scmp.lt.u32.totalorder %s525_s10, %s608_s2 }
 0x135   :  { %p531_p9 = pnand %p529_p8, %p526_p7 }
 0x137   :  { %534 = shalt.err (!%p531_p9)
}
 0x138   :  { %353 = dma.vmem_to_hbm [thread:$0]  %s348_s6, 512, %s608_s2, [#allocation5], %s542_s19, %s542_s19, %s543_s20  }
 0x139   :  { %539 = dma.done.wait [#allocation5], 512  }
 0x13a   :  { %540 = vsyncadd [#allocation5], 4294966784 }
 0x13b   :  { %357 = vsyncpa [#allocation4], 1 }
 0x13c   :  { %358 = vsyncpa [#allocation7], 1 }
 0x13d   :  { %359 = vsyncpa [#allocation5], 1 }

// kernel: visual_encoder_forward.9
= control target key start
LH: loop header
LB: loop body
LE: loop exit
PB: predicated region body
PF: predicated region fallthrough
CT: control target
= control target key end

     0   :  { %s3520_s0 = inlined_call_operand.hbm [shape: bf16[2,17,256], index: 0, kind: input, shape index: {}]   ;;  %s3521_s1 = inlined_call_operand.hbm [shape: f32[1,256], index: 1, kind: input, shape index: {}]   ;;  %s3522_s2 = inlined_call_operand.hbm [shape: f32[1,256], index: 2, kind: input, shape index: {}]   ;;  %s3523_s3 = inlined_call_operand.hbm [shape: bf16[256,768], index: 3, kind: input, shape index: {}]   ;;  %s3524_s4 = inlined_call_operand.hbm [shape: f32[1,768], index: 4, kind: input, shape index: {}]   ;;  %s3525_s5 = inlined_call_operand.hbm [shape: bf16[256,256], index: 5, kind: input, shape index: {}]   ;;  %s3526_s6 = inlined_call_operand.hbm [shape: f32[1,256], index: 6, kind: input, shape index: {}]   ;;  %s3527_s7 = inlined_call_operand.hbm [shape: bf16[2,17,256], index: 7, kind: output, shape index: {}]  }
   0x1   :  { %3533 = sst [smem:[#allocation20_spill]] %s3521_s1 }
   0x2   :  { %12 = vsyncpa [#allocation3], 0 }
   0x3   :  { %14 = vsyncpa [#allocation3 + $0x1], 0 }
   0x4   :  { %15 = vsyncpa [#allocation6], 0 }
   0x5   :  { %16 = vsyncpa [#allocation9], 0 }
   0x6   :  { %17 = vsyncpa [#allocation12], 0 }
   0x7   :  { %18 = vsyncpa [#allocation4], 0 }
   0x8   :  { %20 = vsyncpa [#allocation4 + $0x1], 0  ;;  %s3010_s24 = smov 0   ;;  %s3012_s25 = smov 0  }
   0x9   :  { %s3014_s26 = smov 0   ;;  %s3016_s27 = smov 0  }
   0xa LB: > { %s2952_s28 = smov [#allocation5]   ;;  %s3031_s30 = sadd.s32 4294967295, %s2950_s27   ;;  %s2950_s27 = sphi %s3016_s27, %s3558_s27   ;;  %s2946_s26 = sphi %s3014_s26, %s3557_s26   ;;  %s2942_s25 = sphi %s3012_s25, %s3556_s25   ;;  %s2938_s24 = sphi %s3010_s24, %s3555_s24  }
   0xb   : > { %s222_s29 = sshll.u32 %s2952_s28, 4  ;;  %p2098_p0 = scmp.ge.s32.totalorder %s2950_s27, 1  ;;  %s223_s29 = int_to_ptr.vmem [resolvable:$true] %s222_s29 }
   0xc   : > { %p3528_p1 = scmp.eq.s32.totalorder %s3031_s30, 0  ;;  %p209_p2 = scmp.lt.s32.totalorder %s2950_s27, 3 }
   0xd   : > { %s2953_s9 = smov [#allocation8]   ;;  %s2954_s12 = smov [#allocation11]  }
   0xe   : > { %p3036_p3 = pnand %p2098_p0, %p209_p2  ;;  %s243_s10 = sshll.u32 %s2953_s9, 4  ;;  %s3043_s10 = int_to_ptr.vmem [resolvable:$true] %s243_s10 }
   0xf   : > { %s267_s13 = sshll.u32 %s2954_s12, 4  ;;  %s3536_s1 = sld [smem:[#allocation20_spill]]  ;;  %s3051_s13 = int_to_ptr.vmem [resolvable:$true] %s267_s13 }
  0x10   : > { %s3534_s8 = scalar_select %p3036_p3, 1, 0 }
  0x11   : > { %p2363_p5 = pneg %p3036_p3 }
  0x13   : > { %p3047_p6 = pnand %p2363_p5, %p3528_p1 }
  0x15   : > { %s2674_s16 = scalar_lea.hbm %s3536_s1, 32  ;;  %p3061_p8 = pneg %p3047_p6 }
  0x16   : > { %p2675_p7 = scmp.ne.s32.totalorder %s3536_s1, %s2674_s16  ;;  %p2681_p11 = scmp.lt.u32.totalorder %s2674_s16, %s3536_s1 }
  0x18   : > { %p2677_p9 = pnand %p3061_p8, %p2675_p7 }
  0x1a   : > { %p2678_p10 = pneg %p2677_p9 }
  0x1c   : > { %p2683_p12 = pnand %p2681_p11, %p2678_p10 }
  0x1e   : > { %2686 = shalt.err (!%p2683_p12)
}
  0x1f   : > { %s2687_s22 = scalar_lea.vmem %s223_s29, 32  ;;  %p2695_p5 = scmp.lt.s32.totalorder %s223_s29, %s223_s29 }
  0x20   : > { %p2688_p13 = scmp.ne.s32.totalorder %s223_s29, %s2687_s22  ;;  %p2696_p4 = scmp.lt.s32.totalorder %s2687_s22, %s2687_s22 }
  0x22   : > { %p2690_p0 = pnand %p2688_p13, %p3061_p8  ;;  %p2697_p1 = por %p2696_p4, %p2695_p5 }
  0x24   : > { %p2691_p2 = pneg %p2690_p0 }
  0x26   : > { %p2698_p3 = pnand %p2697_p1, %p2691_p2 }
  0x28   : > { %2701 = shalt.err (!%p2698_p3)
}
  0x29   : > { %2366 = dma.hbm_to_vmem [thread:$0]  (!%p3047_p6), %s3536_s1, 32, %s223_s29, [#allocation6]  }
  0x2a   : > { %s2702_s14 = scalar_lea.hbm %s3523_s3, 12288 }
  0x2b   : > { %p2703_p7 = scmp.ne.s32.totalorder %s3523_s3, %s2702_s14  ;;  %p2709_p1 = scmp.lt.u32.totalorder %s2702_s14, %s3523_s3 }
  0x2d   : > { %p2705_p9 = pnand %p2703_p7, %p3061_p8 }
  0x2f   : > { %p2706_p4 = pneg %p2705_p9 }
  0x31   : > { %p2711_p3 = pnand %p2709_p1, %p2706_p4 }
  0x33   : > { %2714 = shalt.err (!%p2711_p3)
}
  0x34   : > { %s2715_s29 = scalar_lea.vmem %s3043_s10, 12288  ;;  %p2723_p13 = scmp.lt.s32.totalorder %s3043_s10, %s3043_s10 }
  0x35   : > { %p2716_p10 = scmp.ne.s32.totalorder %s3043_s10, %s2715_s29  ;;  %p2724_p0 = scmp.lt.s32.totalorder %s2715_s29, %s2715_s29 }
  0x37   : > { %p2718_p11 = pnand %p2716_p10, %p3061_p8  ;;  %p2725_p2 = por %p2724_p0, %p2723_p13 }
  0x39   : > { %p2719_p12 = pneg %p2718_p11 }
  0x3b   : > { %p2726_p5 = pnand %p2725_p2, %p2719_p12 }
  0x3d   : > { %2729 = shalt.err (!%p2726_p5)
}
  0x3e   : > { %s2955_s20 = smov 384   ;;  %s2956_s21 = smov 24  }
  0x3f   : > { %2372 = dma.hbm_to_vmem [thread:$0]  (!%p3047_p6), %s3523_s3, 12288, %s3043_s10, [#allocation9], %s2955_s20, %s2955_s20, %s2956_s21  }
  0x40   : > { %s2730_s12 = scalar_lea.hbm %s3525_s5, 4096 }
  0x41   : > { %p2731_p7 = scmp.ne.s32.totalorder %s3525_s5, %s2730_s12  ;;  %p2737_p1 = scmp.lt.u32.totalorder %s2730_s12, %s3525_s5 }
  0x43   : > { %p2733_p9 = pnand %p2731_p7, %p3061_p8 }
  0x45   : > { %p2734_p4 = pneg %p2733_p9 }
  0x47   : > { %p2739_p3 = pnand %p2737_p1, %p2734_p4 }
  0x49   : > { %2742 = shalt.err (!%p2739_p3)
}
  0x4a   : > { %s2743_s10 = scalar_lea.vmem %s3051_s13, 4096  ;;  %p2751_p13 = scmp.lt.s32.totalorder %s3051_s13, %s3051_s13 }
  0x4b   : > { %p2744_p10 = scmp.ne.s32.totalorder %s3051_s13, %s2743_s10  ;;  %p2752_p0 = scmp.lt.s32.totalorder %s2743_s10, %s2743_s10 }
  0x4d   : > { %p2746_p11 = pnand %p2744_p10, %p3061_p8  ;;  %p2753_p2 = por %p2752_p0, %p2751_p13 }
  0x4f   : > { %p2747_p12 = pneg %p2746_p11 }
  0x51   : > { %p2754_p5 = pnand %p2753_p2, %p2747_p12 }
  0x53   : > { %2757 = shalt.err (!%p2754_p5)
}
  0x54   : > { %s3530_s18 = smov 128   ;;  %s3531_s29 = smov 8  }
  0x55   : > { %2378 = dma.hbm_to_vmem [thread:$0]  (!%p3047_p6), %s3525_s5, 4096, %s3051_s13, [#allocation12], %s3530_s18, %s3530_s18, %s3531_s29  }
  0x56   : > { %s2959_s22 = smov [#allocation7]   ;;  %s2960_s28 = smov [#allocation10]  }
  0x57   : > { %s233_s23 = sshll.u32 %s2959_s22, 4  ;;  %s257_s9 = sshll.u32 %s2960_s28, 4  ;;  %s234_s23 = int_to_ptr.vmem [resolvable:$true] %s233_s23  ;;  %s258_s9 = int_to_ptr.vmem [resolvable:$true] %s257_s9 }
  0x58   : > { %s2758_s15 = scalar_lea.hbm %s3522_s2, 32 }
  0x59   : > { %p2759_p7 = scmp.ne.s32.totalorder %s3522_s2, %s2758_s15  ;;  %p2765_p1 = scmp.lt.u32.totalorder %s2758_s15, %s3522_s2 }
  0x5b   : > { %p2761_p9 = pnand %p2759_p7, %p3061_p8 }
  0x5d   : > { %p2762_p4 = pneg %p2761_p9 }
  0x5f   : > { %p2767_p3 = pnand %p2765_p1, %p2762_p4 }
  0x61   : > { %2770 = shalt.err (!%p2767_p3)
}
  0x62   : > { %s2771_s13 = scalar_lea.vmem %s234_s23, 32  ;;  %p2779_p13 = scmp.lt.s32.totalorder %s234_s23, %s234_s23 }
  0x63   : > { %p2772_p10 = scmp.ne.s32.totalorder %s234_s23, %s2771_s13  ;;  %p2780_p0 = scmp.lt.s32.totalorder %s2771_s13, %s2771_s13 }
  0x65   : > { %p2774_p11 = pnand %p2772_p10, %p3061_p8  ;;  %p2781_p2 = por %p2780_p0, %p2779_p13 }
  0x67   : > { %p2775_p12 = pneg %p2774_p11 }
  0x69   : > { %p2782_p5 = pnand %p2781_p2, %p2775_p12 }
  0x6b   : > { %2785 = shalt.err (!%p2782_p5)
}
  0x6c   : > { %2369 = dma.hbm_to_vmem [thread:$0]  (!%p3047_p6), %s3522_s2, 32, %s234_s23, [#allocation6]  }
  0x6d   : > { %s2786_s28 = scalar_lea.hbm %s3524_s4, 96 }
  0x6e   : > { %p2787_p7 = scmp.ne.s32.totalorder %s3524_s4, %s2786_s28  ;;  %p2793_p1 = scmp.lt.u32.totalorder %s2786_s28, %s3524_s4 }
  0x70   : > { %p2789_p9 = pnand %p2787_p7, %p3061_p8 }
  0x72   : > { %p2790_p4 = pneg %p2789_p9 }
  0x74   : > { %p2795_p3 = pnand %p2793_p1, %p2790_p4 }
  0x76   : > { %2798 = shalt.err (!%p2795_p3)
}
  0x77   : > { %s2799_s17 = scalar_lea.vmem %s258_s9, 96  ;;  %p2807_p13 = scmp.lt.s32.totalorder %s258_s9, %s258_s9 }
  0x78   : > { %p2800_p10 = scmp.ne.s32.totalorder %s258_s9, %s2799_s17  ;;  %p2808_p0 = scmp.lt.s32.totalorder %s2799_s17, %s2799_s17 }
  0x7a   : > { %p2802_p11 = pnand %p2800_p10, %p3061_p8  ;;  %p2809_p2 = por %p2808_p0, %p2807_p13 }
  0x7c   : > { %p2803_p12 = pneg %p2802_p11 }
  0x7e   : > { %p2810_p5 = pnand %p2809_p2, %p2803_p12 }
  0x80   : > { %2813 = shalt.err (!%p2810_p5)
}
  0x81   : > { %2375 = dma.hbm_to_vmem [thread:$0]  (!%p3047_p6), %s3524_s4, 96, %s258_s9, [#allocation9]  }
  0x82   : > { %s2961_s13 = smov [#allocation13]   ;;  %s2814_s22 = scalar_lea.hbm %s3526_s6, 32 }
  0x83   : > { %s281_s20 = sshll.u32 %s2961_s13, 4  ;;  %p2815_p7 = scmp.ne.s32.totalorder %s3526_s6, %s2814_s22  ;;  %s282_s20 = int_to_ptr.vmem [resolvable:$true] %s281_s20 }
  0x84   : > { %p2821_p1 = scmp.lt.u32.totalorder %s2814_s22, %s3526_s6 }
  0x85   : > { %p2817_p9 = pnand %p2815_p7, %p3061_p8 }
  0x87   : > { %p2818_p4 = pneg %p2817_p9 }
  0x89   : > { %p2823_p3 = pnand %p2821_p1, %p2818_p4 }
  0x8b   : > { %2826 = shalt.err (!%p2823_p3)
}
  0x8c   : > { %s2827_s9 = scalar_lea.vmem %s282_s20, 32  ;;  %p2835_p13 = scmp.lt.s32.totalorder %s282_s20, %s282_s20 }
  0x8d   : > { %p2828_p10 = scmp.ne.s32.totalorder %s282_s20, %s2827_s9  ;;  %p2836_p0 = scmp.lt.s32.totalorder %s2827_s9, %s2827_s9 }
  0x8f   : > { %p2830_p11 = pnand %p2828_p10, %p3061_p8  ;;  %p2837_p2 = por %p2836_p0, %p2835_p13 }
  0x91   : > { %p2831_p12 = pneg %p2830_p11 }
  0x93   : > { %p2838_p5 = pnand %p2837_p2, %p2831_p12 }
  0x95   : > { %2841 = shalt.err (!%p2838_p5)
}
  0x96   : > { %2381 = dma.hbm_to_vmem [thread:$0]  (!%p3047_p6), %s3526_s6, 32, %s282_s20, [#allocation12]  }
  0x97   : > { %s2097_s19 = sadd.s32 4294967294, %s2950_s27   ;;  %s3182_s11 = sadd.s32 1, %s2950_s27  }
  0x98   : > { %s30_s23 = ssub.s32 %s2950_s27, %s3182_s11  ;;  %s33_s10 = sadd.s32 1, %s2946_s26 }
  0x99   : > { %p31_p8 = scmp.eq.s32.totalorder %s30_s23, 0  ;;  %p40_p7 = scmp.ne.s32.totalorder %s2946_s26, %s2942_s25 }
  0x9a   : > { %p41_p9 = scmp.eq.s32.totalorder %s2950_s27, 0  ;;  %p46_p4 = scmp.ne.s32.totalorder %s2942_s25, %s2938_s24 }
  0x9b   : > { %s3193_s13 = scalar_select %p31_p8, %s2946_s26, %s33_s10  }
  0x9c   : > { %p42_p1 = por %p41_p9, %p40_p7  ;;  %p3538_p3 = scmp.eq.s32.totalorder %s3031_s30, 0 }
  0x9d   : > { %p196_p6 = scmp.eq.s32.totalorder %s3031_s30, 1  ;;  %p202_p11 = scmp.eq.s32.totalorder %s2097_s19, 1 }
  0x9e   : > { %p3197_p10 = por %p3538_p3, %p46_p4  ;;  %p2396_p12 = scmp.lt.s32.totalorder %s2950_s27, 2 }
  0x9f   : > { %s292_s20 = sand.u32 1, %s2946_s26   ;;  %p3204_p13 = por %p196_p6, %p40_p7 }
  0xa0   : > { %p3208_p0 = por %p202_p11, %p46_p4  ;;  %s2331_s28 = smul.u32 24, %s292_s20 }
  0xa1   : > { %s3540_s1 = scalar_select %p3204_p13, 1, 0 }
  0xa2   : > { %s3541_s22 = scalar_select %p3208_p0, 1, 0 }
  0xa3   : > { %s2332_s12 = smul.u32 384, %s2950_s27  ;;  %p3213_p2 = pnand %p2396_p12, %p42_p1 }
  0xa4   : > { %s296_s17 = scalar_lea.vmem [#allocation2], %s2331_s28  ;;  %s3224_s23 = scalar_lea.sflag [#allocation3], %s292_s20 }
  0xa5   : > { %s3220_s16 = scalar_lea.hbm %s3520_s0, %s2332_s12  ;;  %s303_s19 = sshll.u32 %s296_s17, 4  ;;  %s3222_s19 = int_to_ptr.vmem [resolvable:$true] %s303_s19 }
  0xa6   : > { %s2842_s10 = scalar_lea.hbm %s3220_s16, 384  ;;  %p2844_p8 = pneg %p3213_p2 }
  0xa7   : > { %p2843_p5 = scmp.ne.s32.totalorder %s3220_s16, %s2842_s10  ;;  %s2847_s9 = scalar_lea.hbm %s3520_s0, 768 }
  0xa8   : > { %p2848_p4 = scmp.lt.u32.totalorder %s3220_s16, %s3520_s0  ;;  %p2849_p1 = scmp.lt.u32.totalorder %s2847_s9, %s2842_s10 }
  0xa9   : > { %p2845_p7 = pnand %p2844_p8, %p2843_p5  ;;  %p2851_p6 = scmp.lt.u32.totalorder %s2842_s10, %s3220_s16 }
  0xaa   : > { %p2850_p3 = por %p2849_p1, %p2848_p4 }
  0xab   : > { %p2846_p9 = pneg %p2845_p7 }
  0xac   : > { %p2852_p11 = por %p2851_p6, %p2850_p3 }
  0xae   : > { %p2853_p12 = pnand %p2852_p11, %p2846_p9 }
  0xb0   : > { %2856 = shalt.err (!%p2853_p12)
}
  0xb1   : > { %s2857_s20 = scalar_lea.vmem %s3222_s19, 384  ;;  %s2962_s28 = smov [#allocation2]  }
  0xb2   : > { %p2858_p5 = scmp.ne.s32.totalorder %s3222_s19, %s2857_s20  ;;  %s2862_s17 = sshll.u32 %s2962_s28, 4  ;;  %s2863_s17 = int_to_ptr.vmem [resolvable:$false] %s2862_s17 }
  0xb3   : > { %s2864_s18 = scalar_lea.vmem %s2863_s17, 768  ;;  %p2865_p13 = scmp.lt.s32.totalorder %s3222_s19, %s2863_s17 }
  0xb4   : > { %p2860_p7 = pnand %p2858_p5, %p2844_p8  ;;  %p2866_p4 = scmp.lt.s32.totalorder %s2864_s18, %s2857_s20 }
  0xb6   : > { %p2861_p0 = pneg %p2860_p7  ;;  %p2867_p1 = por %p2866_p4, %p2865_p13 }
  0xb8   : > { %p2868_p3 = pnand %p2867_p1, %p2861_p0 }
  0xba   : > { %2871 = shalt.err (!%p2868_p3)
}
  0xbb   : > { %s3543_s29 = smov 8   ;;  %s3544_s10 = smov 128  }
  0xbc   : > { %2385 = dma.hbm_to_vmem [thread:$0]  (!%p3213_p2), %s3220_s16, 384, %s3222_s19, %s3224_s23, %s3544_s10, %s3544_s10, %s3543_s29  }
  0xbd   : > { %p3545_p8 = scmp.ne.s32.totalorder %s3534_s8, 0 }
  0xbe   : > { %s3258_s12 = sand.u32 (!%p3545_p8), 1, %s2942_s25  }
  0xbf   : > { %315 = sbr.rel (%p3545_p8) target bundleno = 2314 (0x90a), region = 48  ;;  %s318_s9 = scalar_lea.sflag (!%p3545_p8), [#allocation3], %s3258_s12 }
  0xc0   : > { %s2333_s15 = smul.u32 (!%p3545_p8), 24, %s3258_s12 }
  0xc2   : > { %s321_s14 = scalar_lea.vmem (!%p3545_p8), [#allocation2], %s2333_s15 }
  0xc6   : > { %2917 = dma.done.wait (%p3197_p10), %s318_s9, 384  }
  0xc7   : > { %2919 = vsyncadd (%p3197_p10), %s318_s9, 4294966912  ;;  %p3546_p13 = scmp.eq.s32.totalorder %s3031_s30, 0 }
  0xc9   : > { %2921 = dma.done.wait (%p3546_p13), [#allocation6], 64   ;;  %p3547_p0 = pmov %p3546_p13 }
  0xcb   : > { %2923 = vsyncadd (%p3547_p0), [#allocation6], 4294967232  ;;  %p3548_p2 = pmov %p3547_p0 }
  0xcc   : > { %p3549_p9 = pmov %p3547_p0 }
  0xcd   : > { %2925 = dma.done.wait (%p3548_p2), [#allocation9], 12384  }
  0xce   : > { %2927 = vsyncadd (%p3549_p9), [#allocation9], 4294954912  ;;  %p3550_p6 = pmov %p3547_p0 }
  0xcf   : > { %p3551_p11 = pmov %p3547_p0 }
  0xd0   : > { %2929 = dma.done.wait (%p3550_p6), [#allocation12], 4128  }
  0xd1   : > { %2931 = vsyncadd (%p3551_p11), [#allocation12], 4294963168  ;;  %v377_v0 = vld [vmem:[%s321_s14] sm:$0xff]  ;;  %v379_v1 = vld [vmem:[%s321_s14 + $0x10] sm:$0x11]  ;;  %vm392_vm0 = vcmask 1040384  }
  0xd2   : > { %v378_v2 = vld [vmem:[%s321_s14 + $0x8] sm:$0xff]  ;;  %v3280_v3 = vunpack.c.l.bf16 %v377_v0  ;;  %v3282_v4 = vunpack.c.h.bf16 %v377_v0  ;;  %v3284_v5 = vunpack.c.l.bf16 %v379_v1  ;;  %v3286_v6 = vunpack.c.h.bf16 %v379_v1  ;;  %v2452_v14 = vld [vmem:[#allocation8 + $0x4] ss:$24 sps:$4 sm:$0xff]   ;;  %v2457_v17 = vld [vmem:[#allocation8 + $0x8] ss:$24 sps:$4 sm:$0xff]   ;;  %s375_s8 = scalar_lea.vmem [#allocation14], %s2333_s15 }
  0xd3   : > { %v3288_v7 = vunpack.c.l.bf16 %v378_v2  ;;  %v3290_v8 = vunpack.c.h.bf16 %v378_v2  ;;  %v2454_v15 = vld [vmem:[#allocation8] ss:$24 sps:$4 sm:$0xff]   ;;  %v2455_v16 = vld [vmem:[#allocation8 + $0xc] ss:$24 sps:$4 sm:$0xff]   ;;  %1088 = vmatprep.subr.bf16.mxu0 %v2452_v14  ;;  %v2461_v19 = vld [vmem:[#allocation8 + $0x3c] ss:$24 sps:$4 sm:$0xff]  }
  0xd4   : > { %v386_v9 = vadd.f32 %v3282_v4, %v3280_v3  ;;  %v393_v10 = vsel %vm392_vm0, %v3284_v5, 0.0  ;;  %v394_v11 = vsel %vm392_vm0, %v3286_v6, 0.0  ;;  %v2458_v18 = vld [vmem:[#allocation8 + $0x34] ss:$24 sps:$4 sm:$0xff]   ;;  %1139 = vmatprep.subr.bf16.mxu1 %v2455_v16  ;;  %1089 = vmatpush1.bf16.msra.mxu0 %v2454_v15  ;;  %v2460_v20 = vld [vmem:[#allocation8 + $0x30] ss:$24 sps:$4 sm:$0xff]  }
  0xd5   : > { %v395_v12 = vadd.f32 %v394_v11, %v393_v10  ;;  %v389_v13 = vadd.f32 %v3290_v8, %v3288_v7  ;;  %1140 = vmatpush1.bf16.msra.mxu1 %v2457_v17  ;;  %v2463_v21 = vld [vmem:[#allocation8 + $0x38] ss:$24 sps:$4 sm:$0xff]   ;;  %1090 = vmatprep.subr.bf16.mxu0 %v2458_v18  ;;  %v2464_v22 = vld [vmem:[#allocation8 + $0x64] ss:$24 sps:$4 sm:$0xff]   ;;  %v2469_v25 = vld [vmem:[#allocation8 + $0x68] ss:$24 sps:$4 sm:$0xff]  }
  0xd6   : > { %387 = vadd.xlane.f32.xlu0 %v386_v9  ;;  %1141 = vmatprep.subr.bf16.mxu1 %v2461_v19  ;;  %v2467_v23 = vld [vmem:[#allocation8 + $0x6c] ss:$24 sps:$4 sm:$0xff]   ;;  %v2466_v24 = vld [vmem:[#allocation8 + $0x60] ss:$24 sps:$4 sm:$0xff]   ;;  %v2473_v27 = vld [vmem:[#allocation8 + $0x9c] ss:$24 sps:$4 sm:$0xff]  }
  0xd7   : > { %396 = vadd.xlane.f32.xlu1 %v395_v12  ;;  %v2470_v26 = vld [vmem:[#allocation8 + $0x94] ss:$24 sps:$4 sm:$0xff]   ;;  %v2472_v28 = vld [vmem:[#allocation8 + $0x90] ss:$24 sps:$4 sm:$0xff]   ;;  %v2476_v30 = vld [vmem:[#allocation8 + $0xc4] ss:$24 sps:$4 sm:$0xff]  }
  0xd8   : > { %1091 = vmatpush1.bf16.msra.mxu0 %v2460_v20  ;;  %v2475_v29 = vld [vmem:[#allocation8 + $0x98] ss:$24 sps:$4 sm:$0xff]   ;;  %v2479_v31 = vld [vmem:[#allocation8 + $0xcc] ss:$24 sps:$4 sm:$0xff]   ;;  %v2481_v33 = vld [vmem:[#allocation8 + $0xc8] ss:$24 sps:$4 sm:$0xff]  }
  0xd9   : > { %1142 = vmatpush1.bf16.msra.mxu1 %v2463_v21  ;;  %1092 = vmatprep.subr.bf16.mxu0 %v2464_v22  ;;  %v2478_v32 = vld [vmem:[#allocation8 + $0xc0] ss:$24 sps:$4 sm:$0xff]   ;;  %v2482_v34 = vld [vmem:[#allocation8 + $0xf4] ss:$24 sps:$4 sm:$0xff]   ;;  %v2484_v36 = vld [vmem:[#allocation8 + $0xf0] ss:$24 sps:$4 sm:$0xff]  }
  0xda   : > { %390 = vadd.xlane.f32.xlu0 %v389_v13  ;;  %1143 = vmatprep.subr.bf16.mxu1 %v2467_v23  ;;  %v2485_v35 = vld [vmem:[#allocation8 + $0xfc] ss:$24 sps:$4 sm:$0xff]   ;;  %v2487_v37 = vld [vmem:[#allocation8 + $0xf8] ss:$24 sps:$4 sm:$0xff]   ;;  %v2491_v39 = vld [vmem:[#allocation8 + $0x12c] ss:$24 sps:$4 sm:$0xff]  }
  0xdb   : > { %v2488_v38 = vld [vmem:[#allocation8 + $0x124] ss:$24 sps:$4 sm:$0xff]   ;;  %v2490_v40 = vld [vmem:[#allocation8 + $0x120] ss:$24 sps:$4 sm:$0xff]   ;;  %v2494_v42 = vld [vmem:[#allocation8 + $0x154] ss:$24 sps:$4 sm:$0xff]  }
  0xdc   : > { %1093 = vmatpush1.bf16.msra.mxu0 %v2466_v24  ;;  %v2493_v41 = vld [vmem:[#allocation8 + $0x128] ss:$24 sps:$4 sm:$0xff]   ;;  %v2497_v43 = vld [vmem:[#allocation8 + $0x15c] ss:$24 sps:$4 sm:$0xff]   ;;  %v2499_v45 = vld [vmem:[#allocation8 + $0x158] ss:$24 sps:$4 sm:$0xff]  }
  0xdd   : > { %1144 = vmatpush1.bf16.msra.mxu1 %v2469_v25  ;;  %1094 = vmatprep.subr.bf16.mxu0 %v2470_v26  ;;  %v2496_v44 = vld [vmem:[#allocation8 + $0x150] ss:$24 sps:$4 sm:$0xff]   ;;  %v2500_v46 = vld [vmem:[#allocation8 + $0x184] ss:$24 sps:$4 sm:$0xff]   ;;  %v2502_v48 = vld [vmem:[#allocation8 + $0x180] ss:$24 sps:$4 sm:$0xff]  }
  0xde   : > { %1145 = vmatprep.subr.bf16.mxu1 %v2473_v27  ;;  %v2503_v47 = vld [vmem:[#allocation8 + $0x18c] ss:$24 sps:$4 sm:$0xff]   ;;  %v2505_v49 = vld [vmem:[#allocation8 + $0x188] ss:$24 sps:$4 sm:$0xff]   ;;  %v2509_v17 = vld [vmem:[#allocation8 + $0x1bc] ss:$24 sps:$4 sm:$0xff]  }
  0xdf   : > { %v2506_v50 = vld [vmem:[#allocation8 + $0x1b4] ss:$24 sps:$4 sm:$0xff]   ;;  %v2508_v16 = vld [vmem:[#allocation8 + $0x1b0] ss:$24 sps:$4 sm:$0xff]   ;;  %v2512_v19 = vld [vmem:[#allocation8 + $0x1e4] ss:$24 sps:$4 sm:$0xff]  }
  0xe0   : > { %1095 = vmatpush1.bf16.msra.mxu0 %v2472_v28  ;;  %v2511_v18 = vld [vmem:[#allocation8 + $0x1b8] ss:$24 sps:$4 sm:$0xff]   ;;  %v2515_v21 = vld [vmem:[#allocation8 + $0x1ec] ss:$24 sps:$4 sm:$0xff]   ;;  %v2517_v22 = vld [vmem:[#allocation8 + $0x1e8] ss:$24 sps:$4 sm:$0xff]  }
  0xe1   : > { %1146 = vmatpush1.bf16.msra.mxu1 %v2475_v29  ;;  %1096 = vmatprep.subr.bf16.mxu0 %v2476_v30  ;;  %v2514_v20 = vld [vmem:[#allocation8 + $0x1e0] ss:$24 sps:$4 sm:$0xff]   ;;  %v2518_v23 = vld [vmem:[#allocation8 + $0x214] ss:$24 sps:$4 sm:$0xff]   ;;  %v2520_v24 = vld [vmem:[#allocation8 + $0x210] ss:$24 sps:$4 sm:$0xff]  }
  0xe2   : > { %1147 = vmatprep.subr.bf16.mxu1 %v2479_v31  ;;  %v2521_v25 = vld [vmem:[#allocation8 + $0x21c] ss:$24 sps:$4 sm:$0xff]   ;;  %v2523_v26 = vld [vmem:[#allocation8 + $0x218] ss:$24 sps:$4 sm:$0xff]   ;;  %v2527_v29 = vld [vmem:[#allocation8 + $0x24c] ss:$24 sps:$4 sm:$0xff]  }
  0xe3   : > { %v2524_v27 = vld [vmem:[#allocation8 + $0x244] ss:$24 sps:$4 sm:$0xff]   ;;  %v2526_v28 = vld [vmem:[#allocation8 + $0x240] ss:$24 sps:$4 sm:$0xff]   ;;  %v2530_v31 = vld [vmem:[#allocation8 + $0x274] ss:$24 sps:$4 sm:$0xff]  }
  0xe4   : > { %1097 = vmatpush1.bf16.msra.mxu0 %v2478_v32  ;;  %v2529_v30 = vld [vmem:[#allocation8 + $0x248] ss:$24 sps:$4 sm:$0xff]   ;;  %v2533_v32 = vld [vmem:[#allocation8 + $0x27c] ss:$24 sps:$4 sm:$0xff]   ;;  %vm2964_vm1 = vmmov 0   ;;  %vm1356_vm2 = vcmask 138240  }
  0xe5   : > { %1148 = vmatpush1.bf16.msra.mxu1 %v2481_v33  ;;  %1098 = vmatprep.subr.bf16.mxu0 %v2482_v34  ;;  %v2532_v33 = vld [vmem:[#allocation8 + $0x270] ss:$24 sps:$4 sm:$0xff]   ;;  %vm1363_vm3 = vcmask 131072   ;;  %vm1944_vm4 = vsmask.f32 256  ;;  %vm1946_vm5 = vcmask 1044484  }
  0xe6   : > { %1149 = vmatprep.subr.bf16.mxu1 %v2485_v35  ;;  %v2535_v34 = vld [vmem:[#allocation8 + $0x278] ss:$24 sps:$4 sm:$0xff]   ;;  %v2536_v35 = vld [vmem:[#allocation8 + $0x2a4] ss:$24 sps:$4 sm:$0xff]   ;;  %vm1947_vm6 = vsmask.f32 4352  ;;  %vm1945_vm7 = vmand %vm392_vm0, %vm1944_vm4 }
  0xe7   : > { %vm1948_vm8 = vmand %vm1946_vm5, %vm1947_vm6  ;;  %s2334_s21 = smul.u32 384, %s3031_s30  ;;  %s1967_s16 = sshll.u32 %s375_s8, 4  ;;  %s3476_s16 = int_to_ptr.vmem [resolvable:$true] %s1967_s16 }
  0xe8   : > { %1099 = vmatpush1.bf16.msra.mxu0 %v2484_v36  ;;  %v2539_v36 = vld [vmem:[#allocation8 + $0x2ac] ss:$24 sps:$4 sm:$0xff]   ;;  %vm1949_vm9 = vmor %vm1948_vm8, %vm1945_vm7  ;;  %s1954_s30 = scalar_lea.sflag [#allocation4], %s3258_s12  ;;  %s2872_s28 = scalar_lea.vmem %s3476_s16, 384 }
  0xe9   : > { %1150 = vmatpush1.bf16.msra.mxu1 %v2487_v37  ;;  %1100 = vmatprep.subr.bf16.mxu0 %v2488_v38  ;;  %v2538_v37 = vld [vmem:[#allocation8 + $0x2a0] ss:$24 sps:$4 sm:$0xff]   ;;  %s3474_s20 = scalar_lea.hbm %s3527_s7, %s2334_s21  ;;  %p2873_p10 = scmp.ne.s32.totalorder %s3476_s16, %s2872_s28 }
  0xea   : > { %1151 = vmatprep.subr.bf16.mxu1 %v2491_v39  ;;  %v2541_v38 = vld [vmem:[#allocation8 + $0x2a8] ss:$24 sps:$4 sm:$0xff]   ;;  %v2542_v39 = vld [vmem:[#allocation8 + $0x2d4] ss:$24 sps:$4 sm:$0xff]   ;;  %p3552_p12 = scmp.ne.s32.totalorder %s3540_s1, 0  ;;  %s2967_s17 = smov [#allocation14]  }
  0xeb   : > { %s2876_s18 = sshll.u32 %s2967_s17, 4  ;;  %s2877_s18 = int_to_ptr.vmem [resolvable:$false] %s2876_s18 }
  0xec   : > { %1101 = vmatpush1.bf16.msra.mxu0 %v2490_v40  ;;  %v2545_v40 = vld [vmem:[#allocation8 + $0x2dc] ss:$24 sps:$4 sm:$0xff]   ;;  %p2874_p5 = pnand %p2873_p10, %p3552_p12  ;;  %s2878_s29 = scalar_lea.vmem %s2877_s18, 768 }
  0xed   : > { %1152 = vmatpush1.bf16.msra.mxu1 %v2493_v41  ;;  %1102 = vmatprep.subr.bf16.mxu0 %v2494_v42  ;;  %v2544_v41 = vld [vmem:[#allocation8 + $0x2d0] ss:$24 sps:$4 sm:$0xff]   ;;  %p2879_p4 = scmp.lt.s32.totalorder %s3476_s16, %s2877_s18  ;;  %p2880_p1 = scmp.lt.s32.totalorder %s2878_s29, %s2872_s28 }
  0xee   : > { %1153 = vmatprep.subr.bf16.mxu1 %v2497_v43  ;;  %v2547_v42 = vld [vmem:[#allocation8 + $0x2d8] ss:$24 sps:$4 sm:$0xff]   ;;  %v2550_v43 = vld [vmem:[#allocation8 + $0x14] ss:$24 sps:$4 sm:$0xff]   ;;  %p2875_p7 = pneg %p2874_p5 }
  0xef   : > { %p2881_p3 = por %p2880_p1, %p2879_p4 }
  0xf0   : > { %1103 = vmatpush1.bf16.msra.mxu0 %v2496_v44 }
  0xf1   : > { %1154 = vmatpush1.bf16.msra.mxu1 %v2499_v45  ;;  %1104 = vmatprep.subr.bf16.mxu0 %v2500_v46  ;;  %p2882_p8 = pnand %p2881_p3, %p2875_p7 }
  0xf2   : > { %1155 = vmatprep.subr.bf16.mxu1 %v2503_v47 }
  0xf4   : > { %1105 = vmatpush1.bf16.msra.mxu0 %v2502_v48 }
  0xf5   : > { %1156 = vmatpush1.bf16.msra.mxu1 %v2505_v49  ;;  %1106 = vmatprep.subr.bf16.mxu0 %v2506_v50  ;;  %v442_v49 = vlaneseq }
  0xf6   : > { %1157 = vmatprep.subr.bf16.mxu1 %v2509_v17 }
  0xf8   : > { %1107 = vmatpush1.bf16.msra.mxu0 %v2508_v16 }
  0xf9   : > { %1158 = vmatpush1.bf16.msra.mxu1 %v2511_v18  ;;  %1108 = vmatprep.subr.bf16.mxu0 %v2512_v19 }
  0xfa   : > { %1159 = vmatprep.subr.bf16.mxu1 %v2515_v21 }
  0xfc   : > { %1109 = vmatpush1.bf16.msra.mxu0 %v2514_v20 }
  0xfd   : > { %1160 = vmatpush1.bf16.msra.mxu1 %v2517_v22  ;;  %1110 = vmatprep.subr.bf16.mxu0 %v2518_v23 }
  0xfe   : > { %1161 = vmatprep.subr.bf16.mxu1 %v2521_v25 }
 0x100   : > { %1111 = vmatpush1.bf16.msra.mxu0 %v2520_v24 }
 0x101   : > { %1162 = vmatpush1.bf16.msra.mxu1 %v2523_v26  ;;  %1112 = vmatprep.subr.bf16.mxu0 %v2524_v27 }
 0x102   : > { %1163 = vmatprep.subr.bf16.mxu1 %v2527_v29  ;;  %v2548_v29 = vld [vmem:[#allocation8 + $0x10] ss:$24 sps:$4 sm:$0xff]  }
 0x104   : > { %1113 = vmatpush1.bf16.msra.mxu0 %v2526_v28 }
 0x105   : > { %1164 = vmatpush1.bf16.msra.mxu1 %v2529_v30  ;;  %1114 = vmatprep.subr.bf16.mxu0 %v2530_v31  ;;  %v2556_v31 = vld [vmem:[#allocation8 + $0x74] ss:$24 sps:$4 sm:$0xff]  }
 0x106   : > { %1165 = vmatprep.subr.bf16.mxu1 %v2533_v32 }
 0x108   : > { %1115 = vmatpush1.bf16.msra.mxu0 %v2532_v33  ;;  %v2554_v33 = vld [vmem:[#allocation8 + $0x70] ss:$24 sps:$4 sm:$0xff]  }
 0x109   : > { %1166 = vmatpush1.bf16.msra.mxu1 %v2535_v34  ;;  %1116 = vmatprep.subr.bf16.mxu0 %v2536_v35  ;;  %v2559_v35 = vld [vmem:[#allocation8 + $0xa4] ss:$24 sps:$4 sm:$0xff]  }
 0x10a   : > { %1167 = vmatprep.subr.bf16.mxu1 %v2539_v36  ;;  %v2557_v36 = vld [vmem:[#allocation8 + $0xa0] ss:$24 sps:$4 sm:$0xff]  }
 0x10c   : > { %1117 = vmatpush1.bf16.msra.mxu0 %v2538_v37  ;;  %v2562_v37 = vld [vmem:[#allocation8 + $0xd4] ss:$24 sps:$4 sm:$0xff]  }
 0x10d   : > { %1168 = vmatpush1.bf16.msra.mxu1 %v2541_v38  ;;  %1118 = vmatprep.subr.bf16.mxu0 %v2542_v39  ;;  %v2560_v38 = vld [vmem:[#allocation8 + $0xd0] ss:$24 sps:$4 sm:$0xff]   ;;  %v2565_v39 = vld [vmem:[#allocation8 + $0x104] ss:$24 sps:$4 sm:$0xff]  }
 0x10e   : > { %1169 = vmatprep.subr.bf16.mxu1 %v2545_v40  ;;  %v2563_v40 = vld [vmem:[#allocation8 + $0x100] ss:$24 sps:$4 sm:$0xff]  }
 0x110   : > { %1119 = vmatpush1.bf16.msra.mxu0 %v2544_v41  ;;  %v2568_v41 = vld [vmem:[#allocation8 + $0x134] ss:$24 sps:$4 sm:$0xff]  }
 0x111   : > { %1170 = vmatpush1.bf16.msra.mxu1 %v2547_v42  ;;  %1190 = vmatprep.subr.bf16.mxu0 %v2550_v43  ;;  %v2566_v42 = vld [vmem:[#allocation8 + $0x130] ss:$24 sps:$4 sm:$0xff]   ;;  %v2571_v43 = vld [vmem:[#allocation8 + $0x164] ss:$24 sps:$4 sm:$0xff]  }
 0x163   : > { %v388_v51 = vpop.xlane.xlu0 %387 }
 0x164   : > { %v399_v52 = vmul.f32 0.00390625, %v388_v51  ;;  %v397_v53 = vpop.xlane.xlu1 %396 }
 0x165   : > { %v401_v54 = vmul.f32 0.00390625, %v397_v53 }
 0x166   : > { %v3301_v55 = vsub.f32 %v3280_v3, %v399_v52  ;;  %v3304_v56 = vsub.f32 %v3282_v4, %v399_v52 }
 0x167   : > { %v3307_v57 = vsub.f32 %v3284_v5, %v401_v54  ;;  %v3310_v58 = vsub.f32 %v3286_v6, %v401_v54  ;;  %v391_v59 = vpop.xlane.xlu0 %390  ;;  %v3332_v54 = vshrl.u32 %v442_v49, 7  ;;  %v2580_v49 = vld [vmem:[#allocation8 + $0x1f4] ss:$24 sps:$4 sm:$0xff]  }
 0x168   : > { %v400_v60 = vmul.f32 0.00390625, %v391_v59  ;;  %v408_v61 = vmul.f32 %v3301_v55, %v3301_v55  ;;  %v409_v62 = vmul.f32 %v3304_v56, %v3304_v56 }
 0x169   : > { %v412_v63 = vmul.f32 %v3307_v57, %v3307_v57  ;;  %v413_v0 = vmul.f32 %v3310_v58, %v3310_v58  ;;  %v3335_v59 = vsub.s32 1, %v3332_v54 }
 0x16a   : > { %v3321_v1 = vsub.f32 %v3288_v7, %v400_v60  ;;  %v3324_v2 = vsub.f32 %v3290_v8, %v400_v60  ;;  %v414_v9 = vadd.f32 %v409_v62, %v408_v61  ;;  %v440_v60 = vld [vmem:[#allocation5] sm:$0x3]  ;;  %v3338_v61 = vsub.s32 0, %v3332_v54 }
 0x16b   : > { %v420_v10 = vsel %vm392_vm0, %v412_v63, 0.0  ;;  %v421_v11 = vsel %vm392_vm0, %v413_v0, 0.0  ;;  %v449_v0 = vrot.slane %v440_v60, %v3335_v59 }
 0x16c   : > { %415 = vadd.xlane.f32.xlu1 %v414_v9  ;;  %v422_v12 = vadd.f32 %v421_v11, %v420_v10  ;;  %v410_v13 = vmul.f32 %v3321_v1, %v3321_v1  ;;  %v411_v14 = vmul.f32 %v3324_v2, %v3324_v2  ;;  %v458_v9 = vld [vmem:[#allocation7] sm:$0x3]  ;;  %v445_v11 = vrot.slane %v440_v60, %v3338_v61  ;;  %v2584_v60 = vld [vmem:[#allocation8 + $0x250] ss:$24 sps:$4 sm:$0xff]  }
 0x16e   : > { %v417_v15 = vadd.f32 %v411_v14, %v410_v13 }
 0x170   : > { %423 = vadd.xlane.f32.xlu1 %v422_v12  ;;  %418 = vadd.xlane.f32.xlu0 %v417_v15  ;;  %v467_v15 = vrot.slane %v458_v9, %v3335_v59 }
 0x1f9   : > { %v416_v44 = vpop.xlane.xlu1 %415 }
 0x1fa   : > { %v425_v45 = vmul.f32 0.00390625, %v416_v44  ;;  %v2569_v44 = vld [vmem:[#allocation8 + $0x160] ss:$24 sps:$4 sm:$0xff]  }
 0x1fc   : > { %v428_v46 = vadd.f32 1e-05, %v425_v45  ;;  %v2574_v45 = vld [vmem:[#allocation8 + $0x194] ss:$24 sps:$4 sm:$0xff]  }
 0x1fd   : > { %v424_v47 = vpop.xlane.xlu1 %423  ;;  %v419_v48 = vpop.xlane.xlu0 %418 }
 0x1fe   : > { %2644 = vrsqrt.f32 %v428_v46  ;;  %v427_v50 = vmul.f32 0.00390625, %v424_v47  ;;  %v426_v51 = vmul.f32 0.00390625, %v419_v48  ;;  %v2572_v46 = vld [vmem:[#allocation8 + $0x190] ss:$24 sps:$4 sm:$0xff]   ;;  %v2577_v47 = vld [vmem:[#allocation8 + $0x1c4] ss:$24 sps:$4 sm:$0xff]  }
 0x1ff   : > { %v2575_v48 = vld [vmem:[#allocation8 + $0x1c0] ss:$24 sps:$4 sm:$0xff]  }
 0x200   : > { %v430_v52 = vadd.f32 1e-05, %v427_v50  ;;  %v429_v53 = vadd.f32 1e-05, %v426_v51  ;;  %v2578_v50 = vld [vmem:[#allocation8 + $0x1f0] ss:$24 sps:$4 sm:$0xff]  }
 0x201   : > { %v2583_v51 = vld [vmem:[#allocation8 + $0x224] ss:$24 sps:$4 sm:$0xff]  }
 0x202   : > { %2646 = vrsqrt.f32 %v430_v52  ;;  %v2581_v52 = vld [vmem:[#allocation8 + $0x220] ss:$24 sps:$4 sm:$0xff]  }
 0x203   : > { %2648 = vrsqrt.f32 %v429_v53  ;;  %v2586_v53 = vld [vmem:[#allocation8 + $0x254] ss:$24 sps:$4 sm:$0xff]  }
 0x208   : > { %v2645_v62 = vpop.eup %2644 }
 0x209   : > { %v435_v63 = vmul.f32 %v2645_v62, %v3304_v56  ;;  %v434_v10 = vmul.f32 %v2645_v62, %v3301_v55  ;;  %v463_v56 = vrot.slane %v458_v9, %v3338_v61  ;;  %v2589_v62 = vld [vmem:[#allocation8 + $0x284] ss:$24 sps:$4 sm:$0xff]   ;;  %v2590_v9 = vld [vmem:[#allocation8 + $0x2b0] ss:$24 sps:$4 sm:$0xff]  }
 0x20b   : > { %v453_v14 = vmul.f32 %v449_v0, %v435_v63  ;;  %v452_v19 = vmul.f32 %v445_v11, %v434_v10  ;;  %v2587_v63 = vld [vmem:[#allocation8 + $0x280] ss:$24 sps:$4 sm:$0xff]   ;;  %v2595_v10 = vld [vmem:[#allocation8 + $0x2e4] ss:$24 sps:$4 sm:$0xff]  }
 0x20c   : > { %v2647_v12 = vpop.eup %2646 }
 0x20d   : > { %v2649_v13 = vpop.eup %2648  ;;  %v439_v16 = vmul.f32 %v2647_v12, %v3310_v58  ;;  %v471_v55 = vadd.f32 %v467_v15, %v453_v14  ;;  %v438_v23 = vmul.f32 %v2647_v12, %v3307_v57  ;;  %v470_v25 = vadd.f32 %v463_v56, %v452_v19  ;;  %v2551_v57 = vld [vmem:[#allocation8 + $0x40] ss:$24 sps:$4 sm:$0xff]  }
 0x20e   : > { %v437_v17 = vmul.f32 %v2649_v13, %v3324_v2  ;;  %v436_v18 = vmul.f32 %v2649_v13, %v3321_v1  ;;  %v2553_v2 = vld [vmem:[#allocation8 + $0x44] ss:$24 sps:$4 sm:$0xff]   ;;  %v2963_v12 = vmov 0.0|0.0   ;;  %v2965_v13 = vmov 0.0  }
 0x20f   : > { %v457_v20 = vmul.f32 %v449_v0, %v439_v16  ;;  %v456_v30 = vmul.f32 %v445_v11, %v438_v23  ;;  %2321 = vmatprep.subr.bf16.mxu1 %v2963_v12  ;;  %v2966_v14 = vmov 0   ;;  %v3365_v16 = vld [vmem:[#allocation10] sm:$0x3f] }
 0x210   : > { %v455_v21 = vmul.f32 %v449_v0, %v437_v17  ;;  %v454_v22 = vmul.f32 %v445_v11, %v436_v18  ;;  %v2592_v0 = vld [vmem:[#allocation8 + $0x2b4] ss:$24 sps:$4 sm:$0xff]   ;;  %v2593_v11 = vld [vmem:[#allocation8 + $0x2e0] ss:$24 sps:$4 sm:$0xff]   ;;  %v592_v17 = vsub.s32 3, %v3332_v54 }
 0x211   : > { %v475_v27 = vadd.f32 %v467_v15, %v457_v20  ;;  %v474_v32 = vadd.f32 %v463_v56, %v456_v30 }
 0x212   : > { %v473_v24 = vadd.f32 %v467_v15, %v455_v21  ;;  %v472_v26 = vadd.f32 %v463_v56, %v454_v22  ;;  %v588_v15 = vsub.s32 2, %v3332_v54  ;;  %v3370_v20 = vrot.slane %v3365_v16, %v592_v17 }
 0x213   : > { %v3352_v1 = vpack.c.bf16 %v475_v27, %v475_v27  ;;  %v478_v34 = vpack.c.bf16 %v474_v32, %v474_v32 }
 0x214   : > { %v477_v28 = vpack.c.bf16 %v473_v24, %v471_v55  ;;  %v3350_v58 = vpack.c.bf16 %v472_v26, %v470_v25  ;;  %v589_v18 = vrot.slane %v3365_v16, %v588_v15 }
 0x216   : > { %1120 = vmatprep.mubr.bf16.mxu0 %v477_v28  ;;  %1171 = vmatprep.mubr.bf16.mxu1 %v477_v28 }
 0x217   : > { %1121 = vmatmul.mubr.bf16.vlgmr.msra.gmra.mrb[0].mxu0 %v3350_v58  ;;  %1172 = vmatmul.mubr.bf16.vlgmr.msra.gmra.mrb[0].mxu1 %v3350_v58 }
 0x218   : > { %1191 = vmatpush1.bf16.msra.mxu0 %v2548_v29  ;;  %1130 = vmatprep.mubr.bf16.mxu0 %v3352_v1 }
 0x219   : > { %1181 = vmatprep.mubr.bf16.mxu1 %v3352_v1  ;;  %1192 = vmatprep.subr.bf16.mxu0 %v2553_v2 }
 0x21c   : > { %1193 = vmatpush1.bf16.msra.mxu0 %v2551_v57 }
 0x21d   : > { %1194 = vmatprep.subr.bf16.mxu0 %v2556_v31 }
 0x21f   : > { %1131 = vmatmul.mubr.bf16.gmra.mrb[4].mxu0 %v478_v34  ;;  %1182 = vmatmul.mubr.bf16.gmra.mrb[4].mxu1 %v478_v34 }
 0x220   : > { %1195 = vmatpush1.bf16.msra.mxu0 %v2554_v33  ;;  %1222 = vmatprep.mubr.bf16.mxu0 %v477_v28 }
 0x221   : > { %1196 = vmatprep.subr.bf16.mxu0 %v2559_v35  ;;  %2281 = vmatprep.mubr.msk.f32.mxu1 %vm2964_vm1, %v2965_v13 }
 0x224   : > { %1197 = vmatpush1.bf16.msra.mxu0 %v2557_v36  ;;  %v581_v36 = vrot.slane %v3365_v16, %v3338_v61 }
 0x225   : > { %1198 = vmatprep.subr.bf16.mxu0 %v2562_v37 }
 0x228   : > { %1199 = vmatpush1.bf16.msra.mxu0 %v2560_v38 }
 0x229   : > { %1200 = vmatprep.subr.bf16.mxu0 %v2565_v39 }
 0x22c   : > { %1201 = vmatpush1.bf16.msra.mxu0 %v2563_v40 }
 0x22d   : > { %1202 = vmatprep.subr.bf16.mxu0 %v2568_v41  ;;  %v596_v41 = vsub.s32 4, %v3332_v54 }
 0x230   : > { %1203 = vmatpush1.bf16.msra.mxu0 %v2566_v42  ;;  %v600_v42 = vsub.s32 5, %v3332_v54 }
 0x231   : > { %1204 = vmatprep.subr.bf16.mxu0 %v2571_v43  ;;  %v597_v43 = vrot.slane %v3365_v16, %v596_v41 }
 0x234   : > { %1205 = vmatpush1.bf16.msra.mxu0 %v2569_v44 }
 0x235   : > { %1206 = vmatprep.subr.bf16.mxu0 %v2574_v45  ;;  %v601_v45 = vrot.slane %v3365_v16, %v600_v42 }
 0x238   : > { %1207 = vmatpush1.bf16.msra.mxu0 %v2572_v46 }
 0x239   : > { %1208 = vmatprep.subr.bf16.mxu0 %v2577_v47 }
 0x23c   : > { %1209 = vmatpush1.bf16.msra.mxu0 %v2575_v48 }
 0x23d   : > { %1210 = vmatprep.subr.bf16.mxu0 %v2580_v49 }
 0x240   : > { %1211 = vmatpush1.bf16.msra.mxu0 %v2578_v50 }
 0x241   : > { %1212 = vmatprep.subr.bf16.mxu0 %v2583_v51 }
 0x244   : > { %1213 = vmatpush1.bf16.msra.mxu0 %v2581_v52 }
 0x245   : > { %1214 = vmatprep.subr.bf16.mxu0 %v2586_v53 }
 0x248   : > { %1215 = vmatpush1.bf16.msra.mxu0 %v2584_v60 }
 0x249   : > { %1216 = vmatprep.subr.bf16.mxu0 %v2589_v62 }
 0x24c   : > { %1217 = vmatpush1.bf16.msra.mxu0 %v2587_v63 }
 0x24d   : > { %1218 = vmatprep.subr.bf16.mxu0 %v2592_v0  ;;  %v1402_v0 = vsel %vm392_vm0, 65535, %v2966_v14 }
 0x250   : > { %1219 = vmatpush1.bf16.msra.mxu0 %v2590_v9 }
 0x251   : > { %1220 = vmatprep.subr.bf16.mxu0 %v2595_v10 }
 0x254   : > { %1221 = vmatpush1.bf16.msra.mxu0 %v2593_v11 }
 0x257   : > { %1223 = vmatmul.mubr.bf16.vlgmr.msra.gmra.mrb[8].mxu0 %v3350_v58 }
 0x258   : > { %1232 = vmatprep.mubr.bf16.mxu0 %v3352_v1 }
 0x25f   : > { %1233 = vmatmul.mubr.bf16.gmra.mrb[12].mxu0 %v478_v34 }
 0x260   : > { %1747 = vmatprep.mubr.bf16.mxu0 %v2966_v14 }
 0x2ea   : > { %v1122_v19 = vpop.f32.mrb[0].mxu0  ;;  %v1173_v56 = vpop.f32.mrb[0].mxu1 }
 0x2eb   : > { %v3372_v21 = vpop.f32.mrb[1].mxu0  ;;  %v1175_v22 = vpop.f32.mrb[1].mxu1  ;;  %v1174_v24 = vadd.f32 %v1173_v56, %v589_v18  ;;  %v1123_v38 = vadd.f32 %v1122_v19, %v581_v36 }
 0x2ec   : > { %v1126_v55 = vpop.f32.mrb[2].mxu0  ;;  %v1177_v23 = vpop.f32.mrb[2].mxu1  ;;  %v3377_v28 = vadd.f32 %v1175_v22, %v3370_v20 }
 0x2ed   : > { %v1178_v25 = vadd.f32 %v1177_v23, %v589_v18  ;;  %v3374_v26 = vpop.f32.mrb[3].mxu0  ;;  %v1179_v27 = vpop.f32.mrb[3].mxu1  ;;  %v1127_v39 = vadd.f32 %v1126_v55, %v581_v36 }
 0x2ee   : > { %v3380_v29 = vadd.f32 %v1179_v27, %v3370_v20 }
 0x2ef   : > { %v2322_v58 = vpack.c.bf16 %v1178_v25, %v1174_v24 }
 0x2f0   : > { %v2325_v2 = vpack.c.bf16 %v3380_v29, %v3377_v28 }
 0x2f1   : > { %2323 = vmatpush3.bf16.xpose.msra.mxu1 %v2322_v58 }
 0x2f2   : > { %v1132_v30 = vpop.f32.mrb[4].mxu0  ;;  %v1183_v1 = vpop.f32.mrb[4].mxu1  ;;  %2279 = vmatprep.subr.mxu1 %v2965_v13 }
 0x2f3   : > { %v3385_v57 = vpop.f32.mrb[5].mxu0  ;;  %v3387_v31 = vpop.f32.mrb[5].mxu1  ;;  %v1184_v37 = vadd.f32 %v1183_v1, %v589_v18  ;;  %v1133_v40 = vadd.f32 %v1132_v30, %v581_v36 }
 0x2f4   : > { %v1136_v32 = vpop.f32.mrb[6].mxu0  ;;  %v1187_v33 = vpop.f32.mrb[6].mxu1 }
 0x2f5   : > { %v1137_v34 = vpop.f32.mrb[7].mxu0  ;;  %v1188_v35 = vpop.f32.mrb[7].mxu1 }
 0x2f9   : > { %2280 = vmatpush3.xpose.msra.mxu1 %v1184_v37 }
 0x2fc   : > { %2282 = vmatmul.mubr.f32.vlgmr.msra.gmra.mrb[8].mxu1 %v1123_v38 }
 0x2fd   : > { %2284 = vmatprep.mubr.msk.f32.mxu1 %vm2964_vm1, %v2965_v13 }
 0x300   : > { %2285 = vmatmul.mubr.f32.gmra.mrb[10].mxu1 %v1127_v39 }
 0x301   : > { %2287 = vmatprep.mubr.msk.f32.mxu1 %vm2964_vm1, %v2965_v13 }
 0x304   : > { %2288 = vmatmul.mubr.f32.gmra.mrb[12].mxu1 %v1133_v40 }
 0x32a   : > { %v1224_v44 = vpop.f32.mrb[8].mxu0 }
 0x32b   : > { %v1226_v46 = vpop.f32.mrb[9].mxu0  ;;  %v1225_v48 = vadd.f32 %v1224_v44, %v597_v43 }
 0x32c   : > { %v1228_v47 = vpop.f32.mrb[10].mxu0  ;;  %v1227_v51 = vadd.f32 %v1226_v46, %v601_v45 }
 0x32d   : > { %v1229_v49 = vadd.f32 %v1228_v47, %v597_v43  ;;  %v1230_v50 = vpop.f32.mrb[11].mxu0 }
 0x32e   : > { %v1231_v52 = vadd.f32 %v1230_v50, %v601_v45 }
 0x32f   : > { %v1393_v53 = vpack.c.bf16 %v1229_v49, %v1225_v48 }
 0x330   : > { %v3399_v60 = vpack.c.bf16 %v1231_v52, %v1227_v51 }
 0x331   : > { %2290 = vmatprep.subr.bf16.mxu1 %v1393_v53 }
 0x332   : > { %v1234_v62 = vpop.f32.mrb[12].mxu0  ;;  %2291 = vmatpush3.bf16.msra.mxu1 %v1393_v53 }
 0x333   : > { %v1235_v63 = vadd.f32 %v1234_v62, %v597_v43  ;;  %v1236_v54 = vpop.f32.mrb[13].mxu0 }
 0x334   : > { %v1237_v9 = vadd.f32 %v1236_v54, %v601_v45  ;;  %v1238_v10 = vpop.f32.mrb[14].mxu0 }
 0x335   : > { %v1394_v11 = vpack.c.bf16 %v1235_v63, %v1235_v63  ;;  %v1239_v15 = vpop.f32.mrb[15].mxu0  ;;  %v585_v10 = vrot.slane %v3365_v16, %v3335_v59 }
 0x336   : > { %v1575_v17 = vpack.c.bf16 %v1237_v9, %v1237_v9 }
 0x337   : > { %v1404_v18 = vand.u32 %v1402_v0, %v1394_v11  ;;  %v1186_v11 = vadd.f32 %v3387_v31, %v3370_v20  ;;  %v1125_v15 = vadd.f32 %v3372_v21, %v585_v10  ;;  %v1129_v28 = vadd.f32 %v3374_v26, %v585_v10 }
 0x338   : > { %v3403_v19 = vand.u32 %v1575_v17, %v1402_v0  ;;  %v1135_v16 = vadd.f32 %v3385_v57, %v585_v10 }
 0x339   : > { %2292 = vmatprep.subr.bf16.mxu1 %v1404_v18 }
 0x33a   : > { %2293 = vmatpush3.bf16.msra.mxu1 %v1404_v18 }
 0x33b   : > { %2324 = vmatprep.subr.bf16.mxu1 %v2963_v12 }
 0x3cf   : > { %v1339_v56 = vpop.f32.mrb[8].mxu1 }
 0x3d0   : > { %v1353_v22 = vmul.f32 0.088388346, %v1339_v56  ;;  %v2283_v55 = vpop.f32.mrb[9].mxu1 }
 0x3d2   : > { %v1357_v23 = vsel %vm1356_vm2, %v1353_v22, -inf }
 0x3d3   : > { %1358 = vmax.xlane.f32.xlu0 %v1357_v23  ;;  %v1344_v24 = vpop.f32.mrb[10].mxu1 }
 0x3d4   : > { %v1354_v25 = vmul.f32 0.088388346, %v1344_v24  ;;  %v2286_v27 = vpop.f32.mrb[11].mxu1 }
 0x3d6   : > { %v1360_v58 = vsel %vm1356_vm2, %v1354_v25, -inf }
 0x3d7   : > { %1361 = vmax.xlane.f32.xlu1 %v1360_v58  ;;  %v1349_v30 = vpop.f32.mrb[12].mxu1 }
 0x3d8   : > { %v1355_v1 = vmul.f32 0.088388346, %v1349_v30  ;;  %v2289_v32 = vpop.f32.mrb[13].mxu1 }
 0x3da   : > { %v1364_v33 = vsel %vm1363_vm3, %v1355_v1, -inf }
 0x3db   : > { %1365 = vmax.xlane.f32.xlu0 %v1364_v33 }
 0x460   : > { %v1359_v12 = vpop.xlane.xlu0 %1358 }
 0x461   : > { %v1367_v34 = vsub.f32 %v1353_v22, %v1359_v12 }
 0x463   : > { %v1370_v35 = vmul.f32 1.442695, %v1367_v34 }
 0x464   : > { %v1362_v36 = vpop.xlane.xlu1 %1361 }
 0x465   : > { %2650 = vpow2.f32 %v1370_v35  ;;  %v1368_v37 = vsub.f32 %v1354_v25, %v1362_v36 }
 0x467   : > { %v1372_v38 = vmul.f32 1.442695, %v1368_v37 }
 0x468   : > { %v1366_v39 = vpop.xlane.xlu0 %1365 }
 0x469   : > { %2652 = vpow2.f32 %v1372_v38  ;;  %v1369_v40 = vsub.f32 %v1355_v1, %v1366_v39 }
 0x46b   : > { %v1374_v41 = vmul.f32 1.442695, %v1369_v40 }
 0x46d   : > { %2654 = vpow2.f32 %v1374_v41  ;;  %v2598_v41 = vld [vmem:[#allocation11 + $0x4] ss:$8 sps:$4 sm:$0xff]  }
 0x46f   : > { %v2651_v42 = vpop.eup %2650 }
 0x470   : > { %v1376_v43 = vsel %vm1356_vm2, %v2651_v42, 0.0 }
 0x471   : > { %1377 = vadd.xlane.f32.xlu1 %v1376_v43  ;;  %v2622_v43 = vld [vmem:[#allocation11 + $0x84] ss:$8 sps:$4 sm:$0xff]  }
 0x472   : > { %1715 = vmatprep.subr.bf16.mxu0 %v2622_v43 }
 0x473   : > { %v2653_v44 = vpop.eup %2652 }
 0x474   : > { %v1379_v45 = vsel %vm1356_vm2, %v2653_v44, 0.0 }
 0x475   : > { %1380 = vadd.xlane.f32.xlu0 %v1379_v45  ;;  %v2623_v45 = vld [vmem:[#allocation11 + $0x90] ss:$8 sps:$4 sm:$0xff]  }
 0x477   : > { %v2655_v46 = vpop.eup %2654 }
 0x478   : > { %v1382_v47 = vsel %vm1363_vm3, %v2655_v46, 0.0 }
 0x479   : > { %1383 = vadd.xlane.f32.xlu1 %v1382_v47  ;;  %v2626_v47 = vld [vmem:[#allocation11 + $0xa0] ss:$8 sps:$4 sm:$0xff]  }
 0x4fe   : > { %v1378_v48 = vpop.xlane.xlu1 %1377 }
 0x4ff   : > { %2656 = vrcp.f32 %v1378_v48  ;;  %v2631_v48 = vld [vmem:[#allocation11 + $0xb4] ss:$8 sps:$4 sm:$0xff]  }
 0x502   : > { %v1381_v49 = vpop.xlane.xlu0 %1380 }
 0x503   : > { %2658 = vrcp.f32 %v1381_v49  ;;  %v2629_v49 = vld [vmem:[#allocation11 + $0xb0] ss:$8 sps:$4 sm:$0xff]  }
 0x506   : > { %v1384_v50 = vpop.xlane.xlu1 %1383 }
 0x507   : > { %2660 = vrcp.f32 %v1384_v50  ;;  %v2634_v50 = vld [vmem:[#allocation11 + $0xc4] ss:$8 sps:$4 sm:$0xff]  }
 0x509   : > { %v2657_v51 = vpop.eup %2656 }
 0x50a   : > { %v1388_v53 = vmul.f32 %v2657_v51, %v2651_v42  ;;  %v2620_v42 = vld [vmem:[#allocation11 + $0x80] ss:$8 sps:$4 sm:$0xff]  }
 0x50b   : > { %1716 = vmatpush1.bf16.msra.mxu0 %v2620_v42  ;;  %v2632_v51 = vld [vmem:[#allocation11 + $0xc0] ss:$8 sps:$4 sm:$0xff]  }
 0x50d   : > { %v2659_v52 = vpop.eup %2658 }
 0x50e   : > { %v1389_v62 = vmul.f32 %v2659_v52, %v2653_v44  ;;  %v2625_v44 = vld [vmem:[#allocation11 + $0x94] ss:$8 sps:$4 sm:$0xff]  }
 0x50f   : > { %1717 = vmatprep.subr.bf16.mxu0 %v2625_v44  ;;  %v2637_v52 = vld [vmem:[#allocation11 + $0xd4] ss:$8 sps:$4 sm:$0xff]   ;;  %v1897_v44 = vld [vmem:[#allocation13] sm:$0x3] }
 0x510   : > { %v1391_v63 = vpack.c.bf16 %v1389_v62, %v1388_v53  ;;  %1718 = vmatpush1.bf16.msra.mxu0 %v2623_v45  ;;  %v2635_v53 = vld [vmem:[#allocation11 + $0xd0] ss:$8 sps:$4 sm:$0xff]   ;;  %v2640_v62 = vld [vmem:[#allocation11 + $0xe4] ss:$8 sps:$4 sm:$0xff]   ;;  %v1902_v45 = vrot.slane %v1897_v44, %v3338_v61 }
 0x511   : > { %v2661_v54 = vpop.eup %2660 }
 0x512   : > { %v1390_v0 = vmul.f32 %v2661_v54, %v2655_v46  ;;  %2294 = vmatprep.mubr.msk.bf16.mxu1 %vm1356_vm2, %v1391_v63  ;;  %v2628_v46 = vld [vmem:[#allocation11 + $0xa4] ss:$8 sps:$4 sm:$0xff]   ;;  %v2638_v63 = vld [vmem:[#allocation11 + $0xe0] ss:$8 sps:$4 sm:$0xff]  }
 0x513   : > { %1719 = vmatprep.subr.bf16.mxu0 %v2628_v46 }
 0x514   : > { %v1392_v9 = vpack.c.bf16 %v1390_v0, %v1390_v0  ;;  %1720 = vmatpush1.bf16.msra.mxu0 %v2626_v47  ;;  %v1906_v47 = vrot.slane %v1897_v44, %v3335_v59 }
 0x515   : > { %1721 = vmatprep.subr.bf16.mxu0 %v2631_v48 }
 0x516   : > { %2295 = vmatmul.mubr.msk.bf16.vlgmr.msra.gmra.mrb[16].mxu1 %vm1356_vm2, %v1392_v9 }
 0x517   : > { %2326 = vmatpush3.bf16.xpose.msra.mxu1 %v2325_v2  ;;  %2304 = vmatprep.mubr.msk.f32.mxu1 %vm2964_vm1, %v2965_v13 }
 0x518   : > { %2302 = vmatprep.subr.mxu1 %v2965_v13  ;;  %1722 = vmatpush1.bf16.msra.mxu0 %v2629_v49 }
 0x519   : > { %1723 = vmatprep.subr.bf16.mxu0 %v2634_v50 }
 0x51c   : > { %1724 = vmatpush1.bf16.msra.mxu0 %v2632_v51 }
 0x51d   : > { %1725 = vmatprep.subr.bf16.mxu0 %v2637_v52 }
 0x51f   : > { %2303 = vmatpush3.xpose.msra.mxu1 %v1186_v11 }
 0x520   : > { %2313 = vmatprep.subr.bf16.mxu1 %v3399_v60  ;;  %1726 = vmatpush1.bf16.msra.mxu0 %v2635_v53 }
 0x521   : > { %1727 = vmatprep.subr.bf16.mxu0 %v2640_v62 }
 0x522   : > { %2305 = vmatmul.mubr.f32.vlgmr.msra.gmra.mrb[14].mxu1 %v1125_v15 }
 0x523   : > { %2314 = vmatpush3.bf16.msra.mxu1 %v3399_v60  ;;  %2307 = vmatprep.mubr.msk.f32.mxu1 %vm2964_vm1, %v2965_v13 }
 0x524   : > { %2315 = vmatprep.subr.bf16.mxu1 %v3403_v19  ;;  %1728 = vmatpush1.bf16.msra.mxu0 %v2638_v63 }
 0x526   : > { %2308 = vmatmul.mubr.f32.gmra.mrb[20].mxu1 %v1129_v28 }
 0x527   : > { %2316 = vmatpush3.bf16.msra.mxu1 %v3403_v19  ;;  %2310 = vmatprep.mubr.msk.f32.mxu1 %vm2964_vm1, %v2965_v13 }
 0x528   : > { %1846 = vmatprep.subr.bf16.mxu1 %v2598_v41 }
 0x52a   : > { %2311 = vmatmul.mubr.f32.gmra.mrb[22].mxu1 %v1135_v16 }
 0x5e9   : > { %v3435_v20 = vpop.f32.mrb[16].mxu1 }
 0x5ea   : > { %v3437_v21 = vpop.f32.mrb[17].mxu1 }
 0x5eb   : > { %v2297_v29 = vpop.f32.mrb[18].mxu1 }
 0x5ec   : > { %v3439_v2 = vpop.f32.mrb[19].mxu1 }
 0x5ed   : > { %v1454_v26 = vpack.c.bf16 %v3439_v2, %v3437_v21 }
 0x5f5   : > { %v1522_v31 = vpop.f32.mrb[14].mxu1 }
 0x5f6   : > { %v1536_v60 = vmul.f32 0.088388346, %v1522_v31  ;;  %v2306_v17 = vpop.f32.mrb[15].mxu1 }
 0x5f8   : > { %v1539_v18 = vsel %vm1356_vm2, %v1536_v60, -inf }
 0x5f9   : > { %1540 = vmax.xlane.f32.xlu0 %v1539_v18  ;;  %v1527_v13 = vpop.f32.mrb[20].mxu1  ;;  %v2601_v18 = vld [vmem:[#allocation11 + $0x14] ss:$8 sps:$4 sm:$0xff]  }
 0x5fa   : > { %v1537_v19 = vmul.f32 0.088388346, %v1527_v13  ;;  %v2309_v57 = vpop.f32.mrb[21].mxu1  ;;  %v2599_v13 = vld [vmem:[#allocation11 + $0x10] ss:$8 sps:$4 sm:$0xff]  }
 0x5fb   : > { %v2602_v57 = vld [vmem:[#allocation11 + $0x20] ss:$8 sps:$4 sm:$0xff]  }
 0x5fc   : > { %v1542_v56 = vsel %vm1356_vm2, %v1537_v19, -inf }
 0x5fd   : > { %1543 = vmax.xlane.f32.xlu1 %v1542_v56  ;;  %v1532_v22 = vpop.f32.mrb[22].mxu1  ;;  %v2607_v56 = vld [vmem:[#allocation11 + $0x34] ss:$8 sps:$4 sm:$0xff]  }
 0x5fe   : > { %v1538_v55 = vmul.f32 0.088388346, %v1532_v22  ;;  %v2312_v23 = vpop.f32.mrb[23].mxu1  ;;  %v2605_v22 = vld [vmem:[#allocation11 + $0x30] ss:$8 sps:$4 sm:$0xff]  }
 0x5ff   : > { %v2608_v23 = vld [vmem:[#allocation11 + $0x40] ss:$8 sps:$4 sm:$0xff]  }
 0x600   : > { %v1545_v24 = vsel %vm1363_vm3, %v1538_v55, -inf }
 0x601   : > { %1546 = vmax.xlane.f32.xlu0 %v1545_v24  ;;  %v2613_v24 = vld [vmem:[#allocation11 + $0x54] ss:$8 sps:$4 sm:$0xff]  }
 0x686   : > { %v1541_v25 = vpop.xlane.xlu0 %1540 }
 0x687   : > { %v1548_v27 = vsub.f32 %v1536_v60, %v1541_v25  ;;  %v2596_v60 = vld [vmem:[#allocation11] ss:$8 sps:$4 sm:$0xff]   ;;  %v2611_v25 = vld [vmem:[#allocation11 + $0x50] ss:$8 sps:$4 sm:$0xff]  }
 0x689   : > { %v1551_v58 = vmul.f32 1.442695, %v1548_v27  ;;  %v2616_v27 = vld [vmem:[#allocation11 + $0x64] ss:$8 sps:$4 sm:$0xff]  }
 0x68a   : > { %v1544_v30 = vpop.xlane.xlu1 %1543 }
 0x68b   : > { %2662 = vpow2.f32 %v1551_v58  ;;  %v1549_v1 = vsub.f32 %v1537_v19, %v1544_v30  ;;  %v2604_v19 = vld [vmem:[#allocation11 + $0x24] ss:$8 sps:$4 sm:$0xff]   ;;  %v2614_v58 = vld [vmem:[#allocation11 + $0x60] ss:$8 sps:$4 sm:$0xff]   ;;  %v2619_v30 = vld [vmem:[#allocation11 + $0x74] ss:$8 sps:$4 sm:$0xff]  }
 0x68d   : > { %v1553_v32 = vmul.f32 1.442695, %v1549_v1  ;;  %v2617_v1 = vld [vmem:[#allocation11 + $0x70] ss:$8 sps:$4 sm:$0xff]  }
 0x68e   : > { %v1547_v33 = vpop.xlane.xlu0 %1546 }
 0x68f   : > { %2664 = vpow2.f32 %v1553_v32  ;;  %v1550_v12 = vsub.f32 %v1538_v55, %v1547_v33  ;;  %v2610_v55 = vld [vmem:[#allocation11 + $0x44] ss:$8 sps:$4 sm:$0xff]   ;;  %v1455_v32 = vpack.c.bf16 %v3435_v20, %v3435_v20  ;;  %v2643_v33 = vld [vmem:[#allocation11 + $0xf4] ss:$8 sps:$4 sm:$0xff]  }
 0x690   : > { %1729 = vmatprep.subr.bf16.mxu0 %v2643_v33 }
 0x691   : > { %v1555_v34 = vmul.f32 1.442695, %v1550_v12  ;;  %v2641_v12 = vld [vmem:[#allocation11 + $0xf0] ss:$8 sps:$4 sm:$0xff]  }
 0x692   : > { %1730 = vmatpush1.bf16.msra.mxu0 %v2641_v12 }
 0x693   : > { %2666 = vpow2.f32 %v1555_v34 }
 0x695   : > { %v2663_v35 = vpop.eup %2662 }
 0x696   : > { %v1557_v36 = vsel %vm1356_vm2, %v2663_v35, 0.0 }
 0x697   : > { %1558 = vadd.xlane.f32.xlu1 %v1557_v36 }
 0x699   : > { %v2665_v37 = vpop.eup %2664 }
 0x69a   : > { %v1560_v38 = vsel %vm1356_vm2, %v2665_v37, 0.0 }
 0x69b   : > { %1561 = vadd.xlane.f32.xlu0 %v1560_v38 }
 0x69d   : > { %v2667_v39 = vpop.eup %2666 }
 0x69e   : > { %v1563_v40 = vsel %vm1363_vm3, %v2667_v39, 0.0 }
 0x69f   : > { %1564 = vadd.xlane.f32.xlu1 %v1563_v40 }
 0x724   : > { %v1559_v54 = vpop.xlane.xlu1 %1558 }
 0x725   : > { %2668 = vrcp.f32 %v1559_v54 }
 0x728   : > { %v1562_v0 = vpop.xlane.xlu0 %1561 }
 0x729   : > { %2670 = vrcp.f32 %v1562_v0 }
 0x72c   : > { %v1565_v9 = vpop.xlane.xlu1 %1564 }
 0x72d   : > { %2672 = vrcp.f32 %v1565_v9 }
 0x72f   : > { %v2669_v10 = vpop.eup %2668 }
 0x730   : > { %v1569_v15 = vmul.f32 %v2669_v10, %v2663_v35 }
 0x733   : > { %v2671_v11 = vpop.eup %2670 }
 0x734   : > { %v1570_v28 = vmul.f32 %v2671_v11, %v2665_v37 }
 0x736   : > { %v1572_v16 = vpack.c.bf16 %v1570_v28, %v1569_v15 }
 0x737   : > { %v2673_v29 = vpop.eup %2672 }
 0x738   : > { %v1571_v31 = vmul.f32 %v2673_v29, %v2667_v39  ;;  %2317 = vmatprep.mubr.msk.bf16.mxu1 %vm1356_vm2, %v1572_v16 }
 0x73a   : > { %v1573_v17 = vpack.c.bf16 %v1571_v31, %v1571_v31 }
 0x73c   : > { %2318 = vmatmul.mubr.msk.bf16.vlgmr.msra.gmra.mrb[24].mxu1 %vm1356_vm2, %v1573_v17 }
 0x73d   : > { %1847 = vmatpush1.bf16.msra.mxu1 %v2596_v60  ;;  %1878 = vmatprep.mubr.bf16.mxu1 %v2966_v14 }
 0x73e   : > { %1848 = vmatprep.subr.bf16.mxu1 %v2601_v18  ;;  %v1950_v18 = vld [vmem:[%s375_s8 + $0x10] sm:$0x11] }
 0x741   : > { %1849 = vmatpush1.bf16.msra.mxu1 %v2599_v13 }
 0x742   : > { %1850 = vmatprep.subr.bf16.mxu1 %v2604_v19 }
 0x745   : > { %1851 = vmatpush1.bf16.msra.mxu1 %v2602_v57 }
 0x746   : > { %1852 = vmatprep.subr.bf16.mxu1 %v2607_v56 }
 0x749   : > { %1853 = vmatpush1.bf16.msra.mxu1 %v2605_v22 }
 0x74a   : > { %1854 = vmatprep.subr.bf16.mxu1 %v2610_v55 }
 0x74d   : > { %1855 = vmatpush1.bf16.msra.mxu1 %v2608_v23 }
 0x74e   : > { %1856 = vmatprep.subr.bf16.mxu1 %v2613_v24 }
 0x751   : > { %1857 = vmatpush1.bf16.msra.mxu1 %v2611_v25 }
 0x752   : > { %1858 = vmatprep.subr.bf16.mxu1 %v2616_v27 }
 0x755   : > { %1859 = vmatpush1.bf16.msra.mxu1 %v2614_v58 }
 0x756   : > { %1860 = vmatprep.subr.bf16.mxu1 %v2619_v30 }
 0x759   : > { %1861 = vmatpush1.bf16.msra.mxu1 %v2617_v1 }
 0x75c   : > { %1879 = vmatmul.mubr.bf16.vlgmr.msra.gmra.mrb[28].mxu1 %v1454_v26 }
 0x75d   : > { %1888 = vmatprep.mubr.bf16.mxu1 %v2966_v14 }
 0x764   : > { %1889 = vmatmul.mubr.bf16.gmra.mrb[32].mxu1 %v1455_v32 }
 0x80f   : > { %v2319_v34 = vpop.f32.mrb[24].mxu1 }
 0x810   : > { %v1619_v35 = vpop.f32.mrb[25].mxu1  ;;  %v1634_v21 = vpack.c.bf16 %v2319_v34, %v2319_v34 }
 0x811   : > { %v2320_v36 = vpop.f32.mrb[26].mxu1 }
 0x812   : > { %v1622_v37 = vpop.f32.mrb[27].mxu1 }
 0x813   : > { %v1633_v38 = vpack.c.bf16 %v1622_v37, %v1619_v35 }
 0x815   : > { %1748 = vmatmul.mubr.bf16.vlgmr.msra.gmra.mrb[16].mxu0 %v1633_v38 }
 0x816   : > { %1757 = vmatprep.mubr.bf16.mxu0 %v2966_v14 }
 0x81d   : > { %1758 = vmatmul.mubr.bf16.gmra.mrb[20].mxu0 %v1634_v21 }
 0x82f   : > { %v1880_v2 = vpop.f32.mrb[28].mxu1 }
 0x830   : > { %v1882_v26 = vpop.f32.mrb[29].mxu1 }
 0x831   : > { %v1884_v39 = vpop.f32.mrb[30].mxu1 }
 0x832   : > { %v1886_v40 = vpop.f32.mrb[31].mxu1 }
 0x837   : > { %v1890_v20 = vpop.f32.mrb[32].mxu1 }
 0x838   : > { %v1892_v41 = vpop.f32.mrb[33].mxu1 }
 0x839   : > { %v1894_v42 = vpop.f32.mrb[34].mxu1 }
 0x83a   : > { %v1895_v43 = vpop.f32.mrb[35].mxu1 }
 0x8e8   : > { %v1749_v46 = vpop.f32.mrb[16].mxu0 }
 0x8e9   : > { %v1881_v48 = vadd.f32 %v1880_v2, %v1749_v46  ;;  %v1751_v49 = vpop.f32.mrb[17].mxu0 }
 0x8ea   : > { %v1883_v50 = vadd.f32 %v1882_v26, %v1751_v49  ;;  %v1753_v14 = vpop.f32.mrb[18].mxu0 }
 0x8eb   : > { %v1909_v51 = vadd.f32 %v1902_v45, %v1881_v48  ;;  %v1885_v52 = vadd.f32 %v1884_v39, %v1753_v14  ;;  %v1755_v53 = vpop.f32.mrb[19].mxu0 }
 0x8ec   : > { %v1910_v62 = vadd.f32 %v1906_v47, %v1883_v50  ;;  %v1887_v63 = vadd.f32 %v1886_v40, %v1755_v53 }
 0x8ed   : > { %v1915_v54 = vadd.f32 %v1909_v51, %v3280_v3  ;;  %v1911_v0 = vadd.f32 %v1902_v45, %v1885_v52 }
 0x8ee   : > { %v1916_v9 = vadd.f32 %v1910_v62, %v3282_v4  ;;  %v1912_v10 = vadd.f32 %v1906_v47, %v1887_v63 }
 0x8ef   : > { %v1917_v61 = vadd.f32 %v1911_v0, %v3288_v7 }
 0x8f0   : > { %v2252_v11 = vpack.c.bf16 %v1916_v9, %v1915_v54  ;;  %v1918_v59 = vadd.f32 %v1912_v10, %v3290_v8  ;;  %v1759_v15 = vpop.f32.mrb[20].mxu0 }
 0x8f1   : > { %v1891_v28 = vadd.f32 %v1890_v20, %v1759_v15  ;;  %v1761_v16 = vpop.f32.mrb[21].mxu0 }
 0x8f2   : > { %1941 = vst [vmem:[%s375_s8] sm:$0xff] %v2252_v11  ;;  %v2253_v3 = vpack.c.bf16 %v1918_v59, %v1917_v61  ;;  %v1893_v29 = vadd.f32 %v1892_v41, %v1761_v16  ;;  %v1763_v31 = vpop.f32.mrb[22].mxu0 }
 0x8f3   : > { %v1913_v4 = vadd.f32 %v1902_v45, %v1891_v28  ;;  %v1764_v7 = vpop.f32.mrb[23].mxu0 }
 0x8f4   : > { %1942 = vst [vmem:[%s375_s8 + $0x8] sm:$0xff] %v2253_v3  ;;  %v1914_v8 = vadd.f32 %v1906_v47, %v1893_v29 }
 0x8f5   : > { %v1919_v60 = vadd.f32 %v1913_v4, %v3284_v5 }
 0x8f6   : > { %v1920_v17 = vadd.f32 %v1914_v8, %v3286_v6 }
 0x8f8   : > { %v2254_v13 = vpack.c.bf16 %v1920_v17, %v1919_v60 }
 0x8fa   : > { %v1951_v19 = vsel %vm1949_vm9, %v2254_v13, %v1950_v18 }
 0x8fb   : > { %1952 = vst [vmem:[%s375_s8 + $0x10] sm:$0x11] %v1951_v19 }
 0x8fc   : > { %2885 = shalt.err (!%p2882_p8)
}
 0x8fd   : > { %s2886_s10 = scalar_lea.hbm %s3474_s20, 384  ;;  %s2890_s14 = scalar_lea.hbm %s3527_s7, 768 }
 0x8fe   : > { %p2887_p13 = scmp.ne.s32.totalorder %s3474_s20, %s2886_s10  ;;  %p2891_p9 = scmp.lt.u32.totalorder %s3474_s20, %s3527_s7 }
 0x8ff   : > { %p2892_p6 = scmp.lt.u32.totalorder %s2890_s14, %s2886_s10  ;;  %p2894_p10 = scmp.lt.u32.totalorder %s2886_s10, %s3474_s20 }
 0x900   : > { %p2888_p0 = pnand %p2887_p13, %p3552_p12 }
 0x901   : > { %p2893_p11 = por %p2892_p6, %p2891_p9 }
 0x902   : > { %p2889_p2 = pneg %p2888_p0 }
 0x903   : > { %p2895_p5 = por %p2894_p10, %p2893_p11 }
 0x905   : > { %p2896_p7 = pnand %p2895_p5, %p2889_p2 }
 0x907   : > { %2899 = shalt.err (!%p2896_p7)
}
 0x908   : > { %s2968_s19 = smov 128   ;;  %s2969_s23 = smov 8  }
 0x909   : > { %2361 = dma.vmem_to_hbm [thread:$0]  (%p3552_p12), %s3476_s16, 384, %s3474_s20, %s1954_s30, %s2968_s19, %s2968_s19, %s2969_s23  }
 0x90a PF: > { %s1982_s28 = sand.u32 1, %s2938_s24   ;;  %p3553_p4 = scmp.ne.s32.totalorder %s3541_s22, 0 }
 0x90b   : > { %p3554_p1 = scmp.ge.s32.totalorder %s2950_s27, 2  ;;  %s1983_s17 = scalar_lea.sflag [#allocation4], %s1982_s28 }
 0x90d   : > { %p2387_p3 = pnand %p3554_p1, %p3553_p4 }
 0x90f   : > { %2933 = dma.done.wait (!%p2387_p3), %s1983_s17, 384  }
 0x910   : > { %2935 = vsyncadd (!%p2387_p3), %s1983_s17, 4294966912  ;;  %p23_p8 = scmp.ge.s32.totalorder %s3182_s11, 4   ;;  %s3555_s24 = smov %s2942_s25 }
 0x911   : > { %s3556_s25 = smov %s2946_s26  ;;  %s3557_s26 = smov %s3193_s13 }
 0x912   : > { %s3558_s27 = smov %s3182_s11  ;;  %25 = sbr.rel (!%p23_p8) target bundleno = 10 (0xa), region = 117 }
 0x919   :  { %1988 = vsyncpa [#allocation3], 1 }
 0x91a   :  { %1990 = vsyncpa [#allocation3 + $0x1], 1 }
 0x91b   :  { %1991 = vsyncpa [#allocation6], 1 }
 0x91c   :  { %1992 = vsyncpa [#allocation9], 1 }
 0x91d   :  { %1993 = vsyncpa [#allocation12], 1 }
 0x91e   :  { %1994 = vsyncpa [#allocation4], 1 }
 0x91f   :  { %1996 = vsyncpa [#allocation4 + $0x1], 1 }

// kernel: visual_encoder_forward.13
= control target key start
LH: loop header
LB: loop body
LE: loop exit
PB: predicated region body
PF: predicated region fallthrough
CT: control target
= control target key end

     0   :  { %9 = vsyncpa [#allocation3], 0  ;;  %s679_s0 = inlined_call_operand.hbm [shape: bf16[2,256], index: 0, kind: input, shape index: {}]   ;;  %s680_s1 = inlined_call_operand.hbm [shape: f32[1,256], index: 1, kind: input, shape index: {}]   ;;  %s681_s2 = inlined_call_operand.hbm [shape: f32[1,256], index: 2, kind: input, shape index: {}]   ;;  %s682_s3 = inlined_call_operand.hbm [shape: bf16[256,128], index: 3, kind: input, shape index: {}]   ;;  %s683_s4 = inlined_call_operand.hbm [shape: f32[2,128], index: 4, kind: output, shape index: {}]  }
   0x1   :  { %10 = vsyncpa [#allocation6], 0 }
   0x2   :  { %11 = vsyncpa [#allocation9], 0 }
   0x3   :  { %12 = vsyncpa [#allocation4], 0  ;;  %s560_s15 = smov [#allocation5]   ;;  %s561_s17 = smov [#allocation2]  }
   0x4   :  { %s29_s16 = sshll.u32 %s560_s15, 4  ;;  %s19_s18 = sshll.u32 %s561_s17, 4  ;;  %s30_s16 = int_to_ptr.vmem [resolvable:$true] %s29_s16  ;;  %s20_s18 = int_to_ptr.vmem [resolvable:$true] %s19_s18 }
   0x5   :  { %s442_s21 = scalar_lea.hbm %s680_s1, 32 }
   0x6   :  { %p443_p0 = scmp.ne.s32.totalorder %s680_s1, %s442_s21  ;;  %p446_p1 = scmp.lt.u32.totalorder %s442_s21, %s680_s1 }
   0x8   :  { %p448_p2 = pnand %p446_p1, %p443_p0 }
   0xa   :  { %451 = shalt.err (!%p448_p2)
}
   0xb   :  { %s452_s26 = scalar_lea.vmem %s30_s16, 32  ;;  %p457_p4 = scmp.lt.s32.totalorder %s30_s16, %s30_s16 }
   0xc   :  { %p453_p3 = scmp.ne.s32.totalorder %s30_s16, %s452_s26  ;;  %p458_p5 = scmp.lt.s32.totalorder %s452_s26, %s452_s26 }
   0xe   :  { %p459_p6 = por %p458_p5, %p457_p4 }
  0x10   :  { %p460_p7 = pnand %p459_p6, %p453_p3 }
  0x12   :  { %463 = shalt.err (!%p460_p7)
}
  0x13   :  { %32 = dma.hbm_to_vmem [thread:$0]  %s680_s1, 32, %s30_s16, [#allocation6]  }
  0x14   :  { %s464_s5 = scalar_lea.hbm %s679_s0, 32 }
  0x15   :  { %p465_p8 = scmp.ne.s32.totalorder %s679_s0, %s464_s5  ;;  %p468_p9 = scmp.lt.u32.totalorder %s464_s5, %s679_s0 }
  0x17   :  { %p470_p10 = pnand %p468_p9, %p465_p8 }
  0x19   :  { %473 = shalt.err (!%p470_p10)
}
  0x1a   :  { %s474_s10 = scalar_lea.vmem %s20_s18, 32  ;;  %p479_p12 = scmp.lt.s32.totalorder %s20_s18, %s20_s18 }
  0x1b   :  { %p475_p11 = scmp.ne.s32.totalorder %s20_s18, %s474_s10  ;;  %p480_p13 = scmp.lt.s32.totalorder %s474_s10, %s474_s10 }
  0x1d   :  { %p481_p0 = por %p480_p13, %p479_p12 }
  0x1f   :  { %p482_p1 = pnand %p481_p0, %p475_p11 }
  0x21   :  { %485 = shalt.err (!%p482_p1)
}
  0x22   :  { %22 = dma.hbm_to_vmem [thread:$0]  %s679_s0, 32, %s20_s18, [#allocation3]  }
  0x23   :  { %s562_s12 = smov [#allocation7]   ;;  %s563_s14 = smov [#allocation8]  }
  0x24   :  { %s39_s13 = sshll.u32 %s562_s12, 4  ;;  %s48_s15 = sshll.u32 %s563_s14, 4  ;;  %s40_s13 = int_to_ptr.vmem [resolvable:$true] %s39_s13  ;;  %s618_s15 = int_to_ptr.vmem [resolvable:$true] %s48_s15 }
  0x25   :  { %s486_s19 = scalar_lea.hbm %s681_s2, 32 }
  0x26   :  { %p487_p2 = scmp.ne.s32.totalorder %s681_s2, %s486_s19  ;;  %p490_p3 = scmp.lt.u32.totalorder %s486_s19, %s681_s2 }
  0x28   :  { %p492_p4 = pnand %p490_p3, %p487_p2 }
  0x2a   :  { %495 = shalt.err (!%p492_p4)
}
  0x2b   :  { %s496_s0 = scalar_lea.vmem %s40_s13, 32  ;;  %p501_p6 = scmp.lt.s32.totalorder %s40_s13, %s40_s13 }
  0x2c   :  { %p497_p5 = scmp.ne.s32.totalorder %s40_s13, %s496_s0  ;;  %p502_p7 = scmp.lt.s32.totalorder %s496_s0, %s496_s0 }
  0x2e   :  { %p503_p8 = por %p502_p7, %p501_p6 }
  0x30   :  { %p504_p9 = pnand %p503_p8, %p497_p5 }
  0x32   :  { %507 = shalt.err (!%p504_p9)
}
  0x33   :  { %42 = dma.hbm_to_vmem [thread:$0]  %s681_s2, 32, %s40_s13, [#allocation6]  }
  0x34   :  { %s508_s27 = scalar_lea.hbm %s682_s3, 2048 }
  0x35   :  { %p509_p10 = scmp.ne.s32.totalorder %s682_s3, %s508_s27  ;;  %p512_p11 = scmp.lt.u32.totalorder %s508_s27, %s682_s3 }
  0x37   :  { %p514_p12 = pnand %p512_p11, %p509_p10 }
  0x39   :  { %517 = shalt.err (!%p514_p12)
}
  0x3a   :  { %s518_s6 = scalar_lea.vmem %s618_s15, 2048  ;;  %p523_p0 = scmp.lt.s32.totalorder %s618_s15, %s618_s15 }
  0x3b   :  { %p519_p13 = scmp.ne.s32.totalorder %s618_s15, %s518_s6  ;;  %p524_p1 = scmp.lt.s32.totalorder %s518_s6, %s518_s6 }
  0x3d   :  { %p525_p2 = por %p524_p1, %p523_p0 }
  0x3f   :  { %p526_p3 = pnand %p525_p2, %p519_p13 }
  0x41   :  { %529 = shalt.err (!%p526_p3)
}
  0x42   :  { %s564_s2 = smov 64   ;;  %s565_s7 = smov 4  }
  0x43   :  { %54 = dma.hbm_to_vmem [thread:$0]  %s682_s3, 2048, %s618_s15, [#allocation9], %s564_s2, %s564_s2, %s565_s7  }
  0x44   :  { %552 = dma.done.wait [#allocation3], 32  }
  0x45   :  { %553 = vsyncadd [#allocation3], 4294967264 }
  0x46   :  { %554 = dma.done.wait [#allocation6], 64  }
  0x47   :  { %555 = vsyncadd [#allocation6], 4294967232 }
  0x48   :  { %556 = dma.done.wait [#allocation9], 2048  }
  0x49   :  { %557 = vsyncadd [#allocation9], 4294965248  ;;  %v74_v0 = vlaneseq  ;;  %v566_v1 = vmov 1983009808   ;;  %vm81_vm0 = vcmask 1041408   ;;  %v422_v13 = vld [vmem:[#allocation8 + $0x40] sm:$0xff]  }
  0x4a   :  { %v72_v2 = vunpack.c.l.s4 %v566_v1  ;;  %v68_v6 = vld [vmem:[#allocation2] sm:$0x3]  ;;  %v423_v14 = vld [vmem:[#allocation8] sm:$0xff]   ;;  %391 = vmatprep.subr.bf16.mxu0 %v422_v13  ;;  %v567_v15 = vmov 269488144   ;;  %v424_v29 = vld [vmem:[#allocation8 + $0x48] sm:$0xff]  }
  0x4b   :  { %v649_v3 = vshrl.u32 %v74_v0, 7  ;;  %v69_v7 = vunpack.c.l.bf16 %v68_v6  ;;  %392 = vmatpush3.bf16.msra.mxu0 %v423_v14  ;;  %v91_v16 = vunpack.c.l.s4 %v567_v15  ;;  %v425_v30 = vld [vmem:[#allocation8 + $0x8] sm:$0xff]   ;;  %v426_v31 = vld [vmem:[#allocation8 + $0x50] sm:$0xff]   ;;  %v428_v33 = vld [vmem:[#allocation8 + $0x58] sm:$0xff]   ;;  %s568_s3 = smov [#allocation10]  }
  0x4c   :  { %v73_v4 = vunpack.c.0.s8 %v72_v2  ;;  %393 = vmatprep.subr.bf16.mxu0 %v424_v29  ;;  %v427_v32 = vld [vmem:[#allocation8 + $0x10] sm:$0xff]   ;;  %v429_v34 = vld [vmem:[#allocation8 + $0x18] sm:$0xff]   ;;  %v430_v35 = vld [vmem:[#allocation8 + $0x60] sm:$0xff]   ;;  %s364_s10 = sshll.u32 %s568_s3, 4  ;;  %s365_s10 = int_to_ptr.vmem [resolvable:$true] %s364_s10 }
  0x4d   :  { %v92_v17 = vunpack.c.0.s8 %v91_v16  ;;  %v431_v36 = vld [vmem:[#allocation8 + $0x20] sm:$0xff]   ;;  %v432_v37 = vld [vmem:[#allocation8 + $0x68] sm:$0xff]   ;;  %v434_v39 = vld [vmem:[#allocation8 + $0x70] sm:$0xff]   ;;  %v133_v46 = vsub.s32 0, %v649_v3  ;;  %v137_v47 = vsub.s32 1, %v649_v3  ;;  %s530_s1 = scalar_lea.vmem %s365_s10, 32  ;;  %p535_p5 = scmp.lt.s32.totalorder %s365_s10, %s365_s10 }
  0x4e   :  { %v652_v5 = vsub.s32 %v73_v4, %v649_v3  ;;  %v433_v38 = vld [vmem:[#allocation8 + $0x28] sm:$0xff]   ;;  %v435_v40 = vld [vmem:[#allocation8 + $0x30] sm:$0xff]   ;;  %v436_v41 = vld [vmem:[#allocation8 + $0x78] sm:$0xff]   ;;  %p531_p4 = scmp.ne.s32.totalorder %s365_s10, %s530_s1  ;;  %p536_p6 = scmp.lt.s32.totalorder %s530_s1, %s530_s1 }
  0x4f   :  { %v95_v18 = vsub.s32 %v92_v17, %v649_v3  ;;  %394 = vmatpush3.bf16.msra.mxu0 %v425_v30  ;;  %v437_v42 = vld [vmem:[#allocation8 + $0x38] sm:$0xff]  }
  0x50   :  { %v77_v8 = vrot.slane %v69_v7, %v652_v5  ;;  %395 = vmatprep.subr.bf16.mxu0 %v426_v31  ;;  %v129_v48 = vld [vmem:[#allocation5] sm:$0x3]  ;;  %v149_v49 = vld [vmem:[#allocation7] sm:$0x3]  ;;  %p537_p7 = por %p536_p6, %p535_p5 }
  0x51   :  { %v134_v50 = vrot.slane %v129_v48, %v133_v46  ;;  %v138_v51 = vrot.slane %v129_v48, %v137_v47  ;;  %v154_v52 = vrot.slane %v149_v49, %v133_v46  ;;  %v158_v53 = vrot.slane %v149_v49, %v137_v47 }
  0x52   :  { %v78_v9 = vcombine.high %v77_v8, %v77_v8  ;;  %v82_v10 = vsel %vm81_vm0, %v77_v8, 0.0  ;;  %p538_p8 = pnand %p537_p7, %p531_p4 }
  0x53   :  { %396 = vmatpush3.bf16.msra.mxu0 %v427_v32  ;;  %v139_v54 = vcombine.low %v134_v50, %v138_v51  ;;  %v159_v55 = vcombine.low %v154_v52, %v158_v53 }
  0x54   :  { %v83_v11 = vsel %vm81_vm0, %v78_v9, 0.0  ;;  %397 = vmatprep.subr.bf16.mxu0 %v428_v33 }
  0x55   :  { %v84_v12 = vadd.f32 %v83_v11, %v82_v10  ;;  %v146_v58 = vrot.slane %v139_v54, %v652_v5  ;;  %v166_v60 = vrot.slane %v159_v55, %v652_v5 }
  0x57   :  { %85 = vadd.xlane.f32.xlu0 %v84_v12  ;;  %398 = vmatpush3.bf16.msra.mxu0 %v429_v34 }
  0x58   :  { %399 = vmatprep.subr.bf16.mxu0 %v430_v35 }
  0x5b   :  { %400 = vmatpush3.bf16.msra.mxu0 %v431_v36 }
  0x5c   :  { %401 = vmatprep.subr.bf16.mxu0 %v432_v37 }
  0x5f   :  { %402 = vmatpush3.bf16.msra.mxu0 %v433_v38 }
  0x60   :  { %403 = vmatprep.subr.bf16.mxu0 %v434_v39 }
  0x63   :  { %404 = vmatpush3.bf16.msra.mxu0 %v435_v40 }
  0x64   :  { %405 = vmatprep.subr.bf16.mxu0 %v436_v41 }
  0x67   :  { %406 = vmatpush3.bf16.msra.mxu0 %v437_v42 }
  0xe4   :  { %v86_v19 = vpop.xlane.xlu0 %85 }
  0xe5   :  { %v88_v20 = vmul.f32 0.00390625, %v86_v19 }
  0xe7   :  { %v96_v21 = vrot.slane %v88_v20, %v95_v18 }
  0xe9   :  { %v98_v22 = vsub.f32 %v69_v7, %v96_v21 }
  0xeb   :  { %v99_v23 = vmul.f32 %v98_v22, %v98_v22 }
  0xed   :  { %v107_v24 = vrot.slane %v99_v23, %v652_v5 }
  0xef   :  { %v108_v25 = vcombine.high %v107_v24, %v107_v24  ;;  %v111_v26 = vsel %vm81_vm0, %v107_v24, 0.0 }
  0xf1   :  { %v112_v27 = vsel %vm81_vm0, %v108_v25, 0.0 }
  0xf2   :  { %v113_v28 = vadd.f32 %v112_v27, %v111_v26 }
  0xf4   :  { %114 = vadd.xlane.f32.xlu0 %v113_v28 }
 0x181   :  { %v115_v43 = vpop.xlane.xlu0 %114 }
 0x182   :  { %v116_v44 = vmul.f32 0.00390625, %v115_v43 }
 0x184   :  { %v117_v45 = vadd.f32 1e-05, %v116_v44 }
 0x186   :  { %438 = vrsqrt.f32 %v117_v45 }
 0x190   :  { %v439_v56 = vpop.eup %438 }
 0x191   :  { %v126_v57 = vrot.slane %v439_v56, %v95_v18 }
 0x193   :  { %v128_v59 = vmul.f32 %v126_v57, %v98_v22 }
 0x195   :  { %v148_v61 = vmul.f32 %v146_v58, %v128_v59 }
 0x197   :  { %v168_v62 = vadd.f32 %v166_v60, %v148_v61 }
 0x199   :  { %v176_v63 = vrot.slane %v168_v62, %v652_v5 }
 0x19b   :  { %v177_v0 = vcombine.high %v176_v63, %v176_v63  ;;  %v180_v2 = vpack.c.bf16 %v176_v63, %v176_v63 }
 0x19d   :  { %v181_v1 = vpack.c.bf16 %v177_v0, %v177_v0 }
 0x19f   :  { %342 = vmatprep.mubr.bf16.mxu0 %v181_v1 }
 0x1a0   :  { %343 = vmatmul.mubr.bf16.vlgmr.msra.gmra.mrb[0].mxu0 %v180_v2 }
 0x273   :  { %v407_v3 = vpop.f32.mrb[0].mxu0 }
 0x274   :  { %v408_v4 = vpop.f32.mrb[1].mxu0 }
 0x275   :  { %v409_v6 = vadd.f32 %v408_v4, %v407_v3  ;;  %v410_v7 = vpop.f32.mrb[2].mxu0 }
 0x276   :  { %v411_v8 = vpop.f32.mrb[3].mxu0 }
 0x277   :  { %v350_v9 = vmul.f32 %v409_v6, %v409_v6 }
 0x279   :  { %v351_v10 = vsel %vm81_vm0, %v350_v9, 0.0 }
 0x27a   :  { %352 = vadd.xlane.f32.xlu1 %v351_v10 }
 0x307   :  { %v353_v11 = vpop.xlane.xlu1 %352 }
 0x308   :  { %v354_v12 = vadd.f32 1e-12, %v353_v11 }
 0x30a   :  { %440 = vrsqrt.f32 %v354_v12 }
 0x314   :  { %v441_v5 = vpop.eup %440 }
 0x315   :  { %v356_v13 = vmul.f32 %v441_v5, %v409_v6 }
 0x317   :  { %357 = vst [vmem:[#allocation10] sm:$0x3] %v356_v13 }
 0x318   :  { %541 = shalt.err (!%p538_p8)
}
 0x319   :  { %s542_s13 = scalar_lea.hbm %s683_s4, 32 }
 0x31a   :  { %p543_p9 = scmp.ne.s32.totalorder %s683_s4, %s542_s13  ;;  %p546_p10 = scmp.lt.u32.totalorder %s542_s13, %s683_s4 }
 0x31c   :  { %p548_p11 = pnand %p546_p10, %p543_p9 }
 0x31e   :  { %551 = shalt.err (!%p548_p11)
}
 0x31f   :  { %367 = dma.vmem_to_hbm [thread:$0]  %s365_s10, 32, %s683_s4, [#allocation4]  }
 0x320   :  { %558 = dma.done.wait [#allocation4], 32  }
 0x321   :  { %559 = vsyncadd [#allocation4], 4294967264 }
 0x322   :  { %371 = vsyncpa [#allocation3], 1 }
 0x323   :  { %372 = vsyncpa [#allocation6], 1 }
 0x324   :  { %373 = vsyncpa [#allocation9], 1 }
 0x325   :  { %374 = vsyncpa [#allocation4], 1 }

// kernel: visual_encoder_forward.10
= control target key start
LH: loop header
LB: loop body
LE: loop exit
PB: predicated region body
PF: predicated region fallthrough
CT: control target
= control target key end

     0   :  { %12 = vsyncpa [#allocation3], 0  ;;  %s4187_s0 = inlined_call_operand.hbm [shape: bf16[34,256], index: 0, kind: input, shape index: {}]   ;;  %s4188_s1 = inlined_call_operand.hbm [shape: f32[1,256], index: 1, kind: input, shape index: {}]   ;;  %s4189_s2 = inlined_call_operand.hbm [shape: f32[1,256], index: 2, kind: input, shape index: {}]   ;;  %s4190_s3 = inlined_call_operand.hbm [shape: bf16[256,1024], index: 3, kind: input, shape index: {}]   ;;  %s4191_s4 = inlined_call_operand.hbm [shape: f32[1,1024], index: 4, kind: input, shape index: {}]   ;;  %s4192_s5 = inlined_call_operand.hbm [shape: bf16[1024,256], index: 5, kind: input, shape index: {}]   ;;  %s4193_s6 = inlined_call_operand.hbm [shape: f32[1,256], index: 6, kind: input, shape index: {}]   ;;  %s4194_s7 = inlined_call_operand.hbm [shape: bf16[34,256], index: 7, kind: output, shape index: {}]  }
   0x1   :  { %13 = vsyncpa [#allocation6], 0 }
   0x2   :  { %14 = vsyncpa [#allocation9], 0 }
   0x3   :  { %15 = vsyncpa [#allocation12], 0 }
   0x4   :  { %16 = vsyncpa [#allocation4], 0  ;;  %s3652_s24 = smov [#allocation5]   ;;  %s3653_s26 = smov [#allocation8]  }
   0x5   :  { %s35_s25 = sshll.u32 %s3652_s24, 4  ;;  %s54_s27 = sshll.u32 %s3653_s26, 4  ;;  %s36_s25 = int_to_ptr.vmem [resolvable:$true] %s35_s25  ;;  %s3704_s27 = int_to_ptr.vmem [resolvable:$true] %s54_s27 }
   0x6   :  { %s3466_s30 = scalar_lea.hbm %s4188_s1, 32 }
   0x7   :  { %p3467_p0 = scmp.ne.s32.totalorder %s4188_s1, %s3466_s30  ;;  %p3470_p1 = scmp.lt.u32.totalorder %s3466_s30, %s4188_s1 }
   0x9   :  { %p3472_p2 = pnand %p3470_p1, %p3467_p0 }
   0xb   :  { %3475 = shalt.err (!%p3472_p2)
}
   0xc   :  { %s3476_s12 = scalar_lea.vmem %s36_s25, 32  ;;  %p3481_p4 = scmp.lt.s32.totalorder %s36_s25, %s36_s25 }
   0xd   :  { %p3477_p3 = scmp.ne.s32.totalorder %s36_s25, %s3476_s12  ;;  %p3482_p5 = scmp.lt.s32.totalorder %s3476_s12, %s3476_s12 }
   0xf   :  { %p3483_p6 = por %p3482_p5, %p3481_p4 }
  0x11   :  { %p3484_p7 = pnand %p3483_p6, %p3477_p3 }
  0x13   :  { %3487 = shalt.err (!%p3484_p7)
}
  0x14   :  { %38 = dma.hbm_to_vmem [thread:$0]  %s4188_s1, 32, %s36_s25, [#allocation6]  }
  0x15   :  { %s3488_s17 = scalar_lea.hbm %s4190_s3, 16384 }
  0x16   :  { %p3489_p8 = scmp.ne.s32.totalorder %s4190_s3, %s3488_s17  ;;  %p3492_p9 = scmp.lt.u32.totalorder %s3488_s17, %s4190_s3 }
  0x18   :  { %p3494_p10 = pnand %p3492_p9, %p3489_p8 }
  0x1a   :  { %3497 = shalt.err (!%p3494_p10)
}
  0x1b   :  { %s3498_s22 = scalar_lea.vmem %s3704_s27, 16384  ;;  %p3503_p12 = scmp.lt.s32.totalorder %s3704_s27, %s3704_s27 }
  0x1c   :  { %p3499_p11 = scmp.ne.s32.totalorder %s3704_s27, %s3498_s22  ;;  %p3504_p13 = scmp.lt.s32.totalorder %s3498_s22, %s3498_s22 }
  0x1e   :  { %p3505_p0 = por %p3504_p13, %p3503_p12 }
  0x20   :  { %p3506_p1 = pnand %p3505_p0, %p3499_p11 }
  0x22   :  { %3509 = shalt.err (!%p3506_p1)
}
  0x23   :  { %s3654_s1 = smov 512   ;;  %s3655_s23 = smov 32  }
  0x24   :  { %60 = dma.hbm_to_vmem [thread:$0]  %s4190_s3, 16384, %s3704_s27, [#allocation9], %s3654_s1, %s3654_s1, %s3655_s23  }
  0x25   :  { %s3656_s26 = smov [#allocation11]   ;;  %s3657_s29 = smov [#allocation2]  }
  0x26   :  { %s76_s28 = sshll.u32 %s3656_s26, 4  ;;  %s22_s30 = sshll.u32 %s3657_s29, 4  ;;  %s77_s28 = int_to_ptr.vmem [resolvable:$true] %s76_s28  ;;  %s3735_s30 = int_to_ptr.vmem [resolvable:$true] %s22_s30 }
  0x27   :  { %s3510_s10 = scalar_lea.hbm %s4192_s5, 16384 }
  0x28   :  { %p3511_p2 = scmp.ne.s32.totalorder %s4192_s5, %s3510_s10  ;;  %p3514_p3 = scmp.lt.u32.totalorder %s3510_s10, %s4192_s5 }
  0x2a   :  { %p3516_p4 = pnand %p3514_p3, %p3511_p2 }
  0x2c   :  { %3519 = shalt.err (!%p3516_p4)
}
  0x2d   :  { %s3520_s3 = scalar_lea.vmem %s77_s28, 16384  ;;  %p3525_p6 = scmp.lt.s32.totalorder %s77_s28, %s77_s28 }
  0x2e   :  { %p3521_p5 = scmp.ne.s32.totalorder %s77_s28, %s3520_s3  ;;  %p3526_p7 = scmp.lt.s32.totalorder %s3520_s3, %s3520_s3 }
  0x30   :  { %p3527_p8 = por %p3526_p7, %p3525_p6 }
  0x32   :  { %p3528_p9 = pnand %p3527_p8, %p3521_p5 }
  0x34   :  { %3531 = shalt.err (!%p3528_p9)
}
  0x35   :  { %s3658_s27 = smov 128   ;;  %s3659_s15 = smov 8  }
  0x36   :  { %82 = dma.hbm_to_vmem [thread:$0]  %s4192_s5, 16384, %s77_s28, [#allocation12], %s3658_s27, %s3658_s27, %s3659_s15  }
  0x37   :  { %s3532_s20 = scalar_lea.hbm %s4187_s0, 640 }
  0x38   :  { %p3533_p10 = scmp.ne.s32.totalorder %s4187_s0, %s3532_s20  ;;  %p3536_p11 = scmp.lt.u32.totalorder %s3532_s20, %s4187_s0 }
  0x3a   :  { %p3538_p12 = pnand %p3536_p11, %p3533_p10 }
  0x3c   :  { %3541 = shalt.err (!%p3538_p12)
}
  0x3d   :  { %s3542_s24 = scalar_lea.vmem %s3735_s30, 640  ;;  %p3547_p0 = scmp.lt.s32.totalorder %s3735_s30, %s3735_s30 }
  0x3e   :  { %p3543_p13 = scmp.ne.s32.totalorder %s3735_s30, %s3542_s24  ;;  %p3548_p1 = scmp.lt.s32.totalorder %s3542_s24, %s3542_s24 }
  0x40   :  { %p3549_p2 = por %p3548_p1, %p3547_p0 }
  0x42   :  { %p3550_p3 = pnand %p3549_p2, %p3543_p13 }
  0x44   :  { %3553 = shalt.err (!%p3550_p3)
}
  0x45   :  { %28 = dma.hbm_to_vmem [thread:$0]  %s4187_s0, 640, %s3735_s30, [#allocation3], %s3658_s27, %s3658_s27, %s3659_s15  }
  0x46   :  { %s3660_s26 = smov [#allocation7]   ;;  %s3661_s29 = smov [#allocation10]  }
  0x47   :  { %s45_s28 = sshll.u32 %s3660_s26, 4  ;;  %s67_s8 = sshll.u32 %s3661_s29, 4  ;;  %s46_s28 = int_to_ptr.vmem [resolvable:$true] %s45_s28  ;;  %s68_s8 = int_to_ptr.vmem [resolvable:$true] %s67_s8 }
  0x48   :  { %s3554_s11 = scalar_lea.hbm %s4189_s2, 32 }
  0x49   :  { %p3555_p4 = scmp.ne.s32.totalorder %s4189_s2, %s3554_s11  ;;  %p3558_p5 = scmp.lt.u32.totalorder %s3554_s11, %s4189_s2 }
  0x4b   :  { %p3560_p6 = pnand %p3558_p5, %p3555_p4 }
  0x4d   :  { %3563 = shalt.err (!%p3560_p6)
}
  0x4e   :  { %s3564_s0 = scalar_lea.vmem %s46_s28, 32  ;;  %p3569_p8 = scmp.lt.s32.totalorder %s46_s28, %s46_s28 }
  0x4f   :  { %p3565_p7 = scmp.ne.s32.totalorder %s46_s28, %s3564_s0  ;;  %p3570_p9 = scmp.lt.s32.totalorder %s3564_s0, %s3564_s0 }
  0x51   :  { %p3571_p10 = por %p3570_p9, %p3569_p8 }
  0x53   :  { %p3572_p11 = pnand %p3571_p10, %p3565_p7 }
  0x55   :  { %3575 = shalt.err (!%p3572_p11)
}
  0x56   :  { %48 = dma.hbm_to_vmem [thread:$0]  %s4189_s2, 32, %s46_s28, [#allocation6]  }
  0x57   :  { %s3576_s19 = scalar_lea.hbm %s4191_s4, 128 }
  0x58   :  { %p3577_p12 = scmp.ne.s32.totalorder %s4191_s4, %s3576_s19  ;;  %p3580_p13 = scmp.lt.u32.totalorder %s3576_s19, %s4191_s4 }
  0x5a   :  { %p3582_p0 = pnand %p3580_p13, %p3577_p12 }
  0x5c   :  { %3585 = shalt.err (!%p3582_p0)
}
  0x5d   :  { %s3586_s23 = scalar_lea.vmem %s68_s8, 128  ;;  %p3591_p2 = scmp.lt.s32.totalorder %s68_s8, %s68_s8 }
  0x5e   :  { %p3587_p1 = scmp.ne.s32.totalorder %s68_s8, %s3586_s23  ;;  %p3592_p3 = scmp.lt.s32.totalorder %s3586_s23, %s3586_s23 }
  0x60   :  { %p3593_p4 = por %p3592_p3, %p3591_p2 }
  0x62   :  { %p3594_p5 = pnand %p3593_p4, %p3587_p1 }
  0x64   :  { %3597 = shalt.err (!%p3594_p5)
}
  0x65   :  { %70 = dma.hbm_to_vmem [thread:$0]  %s4191_s4, 128, %s68_s8, [#allocation9]  }
  0x66   :  { %s3662_s5 = smov [#allocation13]   ;;  %s3598_s29 = scalar_lea.hbm %s4193_s6, 32 }
  0x67   :  { %s89_s25 = sshll.u32 %s3662_s5, 4  ;;  %p3599_p6 = scmp.ne.s32.totalorder %s4193_s6, %s3598_s29  ;;  %s90_s25 = int_to_ptr.vmem [resolvable:$true] %s89_s25 }
  0x68   :  { %p3602_p7 = scmp.lt.u32.totalorder %s3598_s29, %s4193_s6 }
  0x6a   :  { %p3604_p8 = pnand %p3602_p7, %p3599_p6 }
  0x6c   :  { %3607 = shalt.err (!%p3604_p8)
}
  0x6d   :  { %s3608_s13 = scalar_lea.vmem %s90_s25, 32  ;;  %p3613_p10 = scmp.lt.s32.totalorder %s90_s25, %s90_s25 }
  0x6e   :  { %p3609_p9 = scmp.ne.s32.totalorder %s90_s25, %s3608_s13  ;;  %p3614_p11 = scmp.lt.s32.totalorder %s3608_s13, %s3608_s13 }
  0x70   :  { %p3615_p12 = por %p3614_p11, %p3613_p10 }
  0x72   :  { %p3616_p13 = pnand %p3615_p12, %p3609_p9 }
  0x74   :  { %3619 = shalt.err (!%p3616_p13)
}
  0x75   :  { %92 = dma.hbm_to_vmem [thread:$0]  %s4193_s6, 32, %s90_s25, [#allocation12]  }
  0x76   :  { %3642 = dma.done.wait [#allocation3], 640  }
  0x77   :  { %3643 = vsyncadd [#allocation3], 4294966656 }
  0x78   :  { %3644 = dma.done.wait [#allocation6], 64  }
  0x79   :  { %3645 = vsyncadd [#allocation6], 4294967232 }
  0x7a   :  { %3646 = dma.done.wait [#allocation9], 16512  }
  0x7b   :  { %3647 = vsyncadd [#allocation9], 4294950784 }
  0x7c   :  { %3648 = dma.done.wait [#allocation12], 16416  }
  0x7d   :  { %3649 = vsyncadd [#allocation12], 4294950880  ;;  %v114_v0 = vld [vmem:[#allocation2] sm:$0xff]  ;;  %v116_v1 = vld [vmem:[#allocation2 + $0x10] sm:$0xff]  ;;  %vm141_vm0 = vcmask 1041408   ;;  %s3663_s6 = smov [#allocation14]  }
  0x7e   :  { %v115_v2 = vld [vmem:[#allocation2 + $0x8] sm:$0xff]  ;;  %v3808_v3 = vunpack.c.l.bf16 %v114_v0  ;;  %v3810_v4 = vunpack.c.h.bf16 %v114_v0  ;;  %v3812_v5 = vunpack.c.l.bf16 %v116_v1  ;;  %v3814_v6 = vunpack.c.h.bf16 %v116_v1  ;;  %v117_v7 = vld [vmem:[#allocation2 + $0x18] sm:$0xff]  ;;  %v118_v8 = vld [vmem:[#allocation2 + $0x20] sm:$0x11]  ;;  %s2739_s14 = sshll.u32 %s3663_s6, 4  ;;  %s2740_s14 = int_to_ptr.vmem [resolvable:$true] %s2739_s14 }
  0x7f   :  { %v3816_v9 = vunpack.c.l.bf16 %v115_v2  ;;  %v3818_v10 = vunpack.c.h.bf16 %v115_v2  ;;  %v3820_v11 = vunpack.c.l.bf16 %v117_v7  ;;  %v3822_v12 = vunpack.c.h.bf16 %v117_v7  ;;  %v265_v22 = vld [vmem:[#allocation8] sm:$0xff]  ;;  %s3620_s3 = scalar_lea.vmem %s2740_s14, 640  ;;  %p3625_p1 = scmp.lt.s32.totalorder %s2740_s14, %s2740_s14 }
  0x80   :  { %v129_v13 = vadd.f32 %v3810_v4, %v3808_v3  ;;  %v135_v14 = vadd.f32 %v3814_v6, %v3812_v5  ;;  %v3828_v15 = vunpack.c.l.bf16 %v118_v8  ;;  %v3830_v16 = vunpack.c.h.bf16 %v118_v8  ;;  %v269_v23 = vld [vmem:[#allocation8 + $0x20] sm:$0xff]  ;;  %p3621_p0 = scmp.ne.s32.totalorder %s2740_s14, %s3620_s3  ;;  %p3626_p2 = scmp.lt.s32.totalorder %s3620_s3, %s3620_s3 }
  0x81   :  { %v132_v17 = vadd.f32 %v3818_v10, %v3816_v9  ;;  %v138_v18 = vadd.f32 %v3822_v12, %v3820_v11  ;;  %v273_v24 = vld [vmem:[#allocation8 + $0x40] sm:$0xff]  ;;  %v2755_v25 = vcombine.high %v265_v22, %v269_v23  ;;  %v2754_v26 = vcombine.low %v265_v22, %v269_v23 }
  0x82   :  { %130 = vadd.xlane.f32.xlu0 %v129_v13  ;;  %136 = vadd.xlane.f32.xlu1 %v135_v14  ;;  %v142_v19 = vsel %vm141_vm0, %v3828_v15, 0.0  ;;  %v143_v20 = vsel %vm141_vm0, %v3830_v16, 0.0  ;;  %v277_v27 = vld [vmem:[#allocation8 + $0x60] sm:$0xff]  ;;  %p3627_p3 = por %p3626_p2, %p3625_p1 }
  0x83   :  { %v144_v21 = vadd.f32 %v143_v20, %v142_v19  ;;  %v2763_v28 = vcombine.high %v273_v24, %v277_v27  ;;  %v281_v29 = vld [vmem:[#allocation8 + $0x80] sm:$0xff]  ;;  %1075 = vmatprep.subr.bf16.mxu1 %v2755_v25  ;;  %v2762_v31 = vcombine.low %v273_v24, %v277_v27 }
  0x84   :  { %v285_v30 = vld [vmem:[#allocation8 + $0xa0] sm:$0xff]  ;;  %1076 = vmatpush1.bf16.msra.mxu1 %v2754_v26  ;;  %p3628_p4 = pnand %p3627_p3, %p3621_p0 }
  0x85   :  { %1077 = vmatprep.subr.bf16.mxu1 %v2763_v28  ;;  %v2771_v32 = vcombine.high %v281_v29, %v285_v30  ;;  %v289_v33 = vld [vmem:[#allocation8 + $0xc0] sm:$0xff]  ;;  %v2770_v35 = vcombine.low %v281_v29, %v285_v30 }
  0x86   :  { %133 = vadd.xlane.f32.xlu0 %v132_v17  ;;  %139 = vadd.xlane.f32.xlu1 %v138_v18  ;;  %v293_v34 = vld [vmem:[#allocation8 + $0xe0] sm:$0xff] }
  0x87   :  { %v297_v36 = vld [vmem:[#allocation8 + $0x100] sm:$0xff]  ;;  %v2779_v38 = vcombine.high %v289_v33, %v293_v34  ;;  %v2778_v39 = vcombine.low %v289_v33, %v293_v34 }
  0x88   :  { %1078 = vmatpush1.bf16.msra.mxu1 %v2762_v31  ;;  %v301_v37 = vld [vmem:[#allocation8 + $0x120] sm:$0xff] }
  0x89   :  { %1079 = vmatprep.subr.bf16.mxu1 %v2771_v32  ;;  %v305_v40 = vld [vmem:[#allocation8 + $0x140] sm:$0xff]  ;;  %v2787_v42 = vcombine.high %v297_v36, %v301_v37  ;;  %v2786_v43 = vcombine.low %v297_v36, %v301_v37 }
  0x8a   :  { %145 = vadd.xlane.f32.xlu0 %v144_v21  ;;  %v309_v41 = vld [vmem:[#allocation8 + $0x160] sm:$0xff] }
  0x8b   :  { %v2795_v44 = vcombine.high %v305_v40, %v309_v41  ;;  %v313_v45 = vld [vmem:[#allocation8 + $0x180] sm:$0xff]  ;;  %v2794_v47 = vcombine.low %v305_v40, %v309_v41 }
  0x8c   :  { %1080 = vmatpush1.bf16.msra.mxu1 %v2770_v35  ;;  %v317_v46 = vld [vmem:[#allocation8 + $0x1a0] sm:$0xff] }
  0x8d   :  { %1081 = vmatprep.subr.bf16.mxu1 %v2779_v38  ;;  %v2803_v48 = vcombine.high %v313_v45, %v317_v46  ;;  %v321_v49 = vld [vmem:[#allocation8 + $0x1c0] sm:$0xff]  ;;  %v2802_v51 = vcombine.low %v313_v45, %v317_v46 }
  0x8e   :  { %v325_v50 = vld [vmem:[#allocation8 + $0x1e0] sm:$0xff] }
  0x8f   :  { %v2811_v52 = vcombine.high %v321_v49, %v325_v50  ;;  %v329_v53 = vld [vmem:[#allocation8 + $0x200] sm:$0xff]  ;;  %v2810_v55 = vcombine.low %v321_v49, %v325_v50 }
  0x90   :  { %1082 = vmatpush1.bf16.msra.mxu1 %v2778_v39  ;;  %v333_v54 = vld [vmem:[#allocation8 + $0x220] sm:$0xff] }
  0x91   :  { %1083 = vmatprep.subr.bf16.mxu1 %v2787_v42  ;;  %v2819_v56 = vcombine.high %v329_v53, %v333_v54  ;;  %v337_v57 = vld [vmem:[#allocation8 + $0x240] sm:$0xff]  ;;  %v2818_v59 = vcombine.low %v329_v53, %v333_v54 }
  0x92   :  { %v341_v58 = vld [vmem:[#allocation8 + $0x260] sm:$0xff] }
  0x93   :  { %v2827_v60 = vcombine.high %v337_v57, %v341_v58  ;;  %v345_v45 = vld [vmem:[#allocation8 + $0x280] sm:$0xff] }
  0x94   :  { %1084 = vmatpush1.bf16.msra.mxu1 %v2786_v43  ;;  %v349_v46 = vld [vmem:[#allocation8 + $0x2a0] sm:$0xff] }
  0x95   :  { %1085 = vmatprep.subr.bf16.mxu1 %v2795_v44  ;;  %v2826_v44 = vcombine.low %v337_v57, %v341_v58  ;;  %v353_v49 = vld [vmem:[#allocation8 + $0x2c0] sm:$0xff] }
  0x96   :  { %v357_v50 = vld [vmem:[#allocation8 + $0x2e0] sm:$0xff] }
  0x97   :  { %v361_v53 = vld [vmem:[#allocation8 + $0x300] sm:$0xff] }
  0x98   :  { %1086 = vmatpush1.bf16.msra.mxu1 %v2794_v47  ;;  %v2835_v47 = vcombine.high %v345_v45, %v349_v46  ;;  %v365_v54 = vld [vmem:[#allocation8 + $0x320] sm:$0xff] }
  0x99   :  { %1087 = vmatprep.subr.bf16.mxu1 %v2803_v48  ;;  %v2834_v48 = vcombine.low %v345_v45, %v349_v46  ;;  %v369_v57 = vld [vmem:[#allocation8 + $0x340] sm:$0xff] }
  0x9a   :  { %v373_v58 = vld [vmem:[#allocation8 + $0x360] sm:$0xff] }
  0x9c   :  { %1088 = vmatpush1.bf16.msra.mxu1 %v2802_v51  ;;  %v2843_v51 = vcombine.high %v353_v49, %v357_v50 }
  0x9d   :  { %1089 = vmatprep.subr.bf16.mxu1 %v2811_v52  ;;  %v2842_v52 = vcombine.low %v353_v49, %v357_v50 }
  0xa0   :  { %1090 = vmatpush1.bf16.msra.mxu1 %v2810_v55  ;;  %v2851_v55 = vcombine.high %v361_v53, %v365_v54 }
  0xa1   :  { %1091 = vmatprep.subr.bf16.mxu1 %v2819_v56  ;;  %v2850_v56 = vcombine.low %v361_v53, %v365_v54 }
  0xa4   :  { %1092 = vmatpush1.bf16.msra.mxu1 %v2818_v59  ;;  %v2859_v59 = vcombine.high %v369_v57, %v373_v58 }
  0xa5   :  { %1093 = vmatprep.subr.bf16.mxu1 %v2827_v60  ;;  %v2858_v60 = vcombine.low %v369_v57, %v373_v58 }
  0xa8   :  { %1094 = vmatpush1.bf16.msra.mxu1 %v2826_v44 }
  0xa9   :  { %1095 = vmatprep.subr.bf16.mxu1 %v2835_v47 }
  0xac   :  { %1096 = vmatpush1.bf16.msra.mxu1 %v2834_v48  ;;  %v215_v48 = vld [vmem:[#allocation5] sm:$0x3] }
  0xad   :  { %1097 = vmatprep.subr.bf16.mxu1 %v2843_v51 }
  0xb0   :  { %1098 = vmatpush1.bf16.msra.mxu1 %v2842_v52  ;;  %v237_v52 = vld [vmem:[#allocation7] sm:$0x3] }
  0xb1   :  { %1099 = vmatprep.subr.bf16.mxu1 %v2851_v55 }
  0xb4   :  { %1100 = vmatpush1.bf16.msra.mxu1 %v2850_v56 }
  0xb5   :  { %1101 = vmatprep.subr.bf16.mxu1 %v2859_v59 }
  0xb8   :  { %1102 = vmatpush1.bf16.msra.mxu1 %v2858_v60 }
 0x10f   :  { %v131_v61 = vpop.xlane.xlu0 %130  ;;  %v137_v62 = vpop.xlane.xlu1 %136 }
 0x110   :  { %v148_v63 = vmul.f32 0.00390625, %v131_v61  ;;  %v150_v0 = vmul.f32 0.00390625, %v137_v62  ;;  %v377_v61 = vld [vmem:[#allocation8 + $0x380] sm:$0xff] }
 0x111   :  { %v381_v62 = vld [vmem:[#allocation8 + $0x3a0] sm:$0xff] }
 0x112   :  { %v3841_v1 = vsub.f32 %v3808_v3, %v148_v63  ;;  %v3844_v2 = vsub.f32 %v3810_v4, %v148_v63  ;;  %v3847_v7 = vsub.f32 %v3812_v5, %v150_v0  ;;  %v3850_v8 = vsub.f32 %v3814_v6, %v150_v0 }
 0x113   :  { %v134_v13 = vpop.xlane.xlu0 %133  ;;  %v140_v14 = vpop.xlane.xlu1 %139  ;;  %v2867_v63 = vcombine.high %v377_v61, %v381_v62  ;;  %v2866_v0 = vcombine.low %v377_v61, %v381_v62 }
 0x114   :  { %v149_v17 = vmul.f32 0.00390625, %v134_v13  ;;  %v151_v18 = vmul.f32 0.00390625, %v140_v14  ;;  %v163_v19 = vmul.f32 %v3841_v1, %v3841_v1  ;;  %v164_v20 = vmul.f32 %v3844_v2, %v3844_v2  ;;  %v385_v13 = vld [vmem:[#allocation8 + $0x3c0] sm:$0xff] }
 0x115   :  { %v167_v21 = vmul.f32 %v3847_v7, %v3847_v7  ;;  %v168_v22 = vmul.f32 %v3850_v8, %v3850_v8  ;;  %1103 = vmatprep.subr.bf16.mxu1 %v2867_v63  ;;  %v389_v14 = vld [vmem:[#allocation8 + $0x3e0] sm:$0xff] }
 0x116   :  { %v3861_v23 = vsub.f32 %v3816_v9, %v149_v17  ;;  %v3864_v24 = vsub.f32 %v3818_v10, %v149_v17  ;;  %v3867_v25 = vsub.f32 %v3820_v11, %v151_v18  ;;  %v3870_v26 = vsub.f32 %v3822_v12, %v151_v18  ;;  %1104 = vmatpush1.bf16.msra.mxu1 %v2866_v0 }
 0x117   :  { %v146_v27 = vpop.xlane.xlu0 %145  ;;  %v173_v28 = vadd.f32 %v164_v20, %v163_v19  ;;  %v179_v33 = vadd.f32 %v168_v22, %v167_v21  ;;  %v2875_v17 = vcombine.high %v385_v13, %v389_v14  ;;  %v2874_v18 = vcombine.low %v385_v13, %v389_v14  ;;  %v3892_v19 = vld [vmem:[#allocation8 + $0x8] sm:$0xff] }
 0x118   :  { %v152_v29 = vmul.f32 0.00390625, %v146_v27  ;;  %v165_v30 = vmul.f32 %v3861_v23, %v3861_v23  ;;  %v166_v31 = vmul.f32 %v3864_v24, %v3864_v24  ;;  %v169_v32 = vmul.f32 %v3867_v25, %v3867_v25  ;;  %v3894_v20 = vld [vmem:[#allocation8 + $0x28] sm:$0xff] }
 0x119   :  { %174 = vadd.xlane.f32.xlu1 %v173_v28  ;;  %v170_v34 = vmul.f32 %v3870_v26, %v3870_v26  ;;  %1105 = vmatprep.subr.bf16.mxu1 %v2875_v17  ;;  %v2757_v21 = vcombine.high %v3892_v19, %v3894_v20  ;;  %v2756_v22 = vcombine.low %v3892_v19, %v3894_v20 }
 0x11a   :  { %v3881_v35 = vsub.f32 %v3828_v15, %v152_v29  ;;  %v3884_v36 = vsub.f32 %v3830_v16, %v152_v29  ;;  %v176_v37 = vadd.f32 %v166_v31, %v165_v30  ;;  %1106 = vmatpush1.bf16.msra.mxu1 %v2874_v18  ;;  %v217_v29 = vlaneseq }
 0x11b   :  { %v182_v38 = vadd.f32 %v170_v34, %v169_v32  ;;  %1136 = vmatprep.subr.bf16.mxu1 %v2757_v21 }
 0x11c   :  { %177 = vadd.xlane.f32.xlu0 %v176_v37  ;;  %v171_v39 = vmul.f32 %v3881_v35, %v3881_v35  ;;  %v172_v40 = vmul.f32 %v3884_v36, %v3884_v36 }
 0x11d   :  { %180 = vadd.xlane.f32.xlu1 %v179_v33 }
 0x11e   :  { %v185_v41 = vsel %vm141_vm0, %v171_v39, 0.0  ;;  %v186_v42 = vsel %vm141_vm0, %v172_v40, 0.0 }
 0x11f   :  { %v187_v43 = vadd.f32 %v186_v42, %v185_v41 }
 0x120   :  { %183 = vadd.xlane.f32.xlu0 %v182_v38  ;;  %v3900_v38 = vshrl.u32 %v217_v29, 7 }
 0x121   :  { %188 = vadd.xlane.f32.xlu1 %v187_v43 }
 0x122   :  { %v3903_v45 = vsub.s32 1, %v3900_v38  ;;  %v3906_v46 = vsub.s32 0, %v3900_v38 }
 0x124   :  { %v224_v49 = vrot.slane %v215_v48, %v3903_v45  ;;  %v220_v50 = vrot.slane %v215_v48, %v3906_v46  ;;  %v246_v57 = vrot.slane %v237_v52, %v3903_v45  ;;  %v242_v59 = vrot.slane %v237_v52, %v3906_v46 }
 0x1a6   :  { %v175_v27 = vpop.xlane.xlu1 %174 }
 0x1a7   :  { %v190_v28 = vmul.f32 0.00390625, %v175_v27 }
 0x1a9   :  { %v195_v30 = vadd.f32 1e-05, %v190_v28  ;;  %v178_v31 = vpop.xlane.xlu0 %177 }
 0x1aa   :  { %v181_v32 = vpop.xlane.xlu1 %180  ;;  %v191_v33 = vmul.f32 0.00390625, %v178_v31  ;;  %v278_v31 = vld [vmem:[#allocation8 + $0x68] sm:$0xff] }
 0x1ab   :  { %3296 = vrsqrt.f32 %v195_v30  ;;  %v192_v34 = vmul.f32 0.00390625, %v181_v32  ;;  %v274_v30 = vld [vmem:[#allocation8 + $0x48] sm:$0xff] }
 0x1ac   :  { %v196_v37 = vadd.f32 1e-05, %v191_v33 }
 0x1ad   :  { %v197_v39 = vadd.f32 1e-05, %v192_v34  ;;  %v184_v40 = vpop.xlane.xlu0 %183  ;;  %v2765_v34 = vcombine.high %v274_v30, %v278_v31 }
 0x1ae   :  { %3298 = vrsqrt.f32 %v196_v37  ;;  %v193_v41 = vmul.f32 0.00390625, %v184_v40  ;;  %v189_v42 = vpop.xlane.xlu1 %188  ;;  %v286_v40 = vld [vmem:[#allocation8 + $0xa8] sm:$0xff] }
 0x1af   :  { %3300 = vrsqrt.f32 %v197_v39  ;;  %v194_v43 = vmul.f32 0.00390625, %v189_v42 }
 0x1b0   :  { %v198_v44 = vadd.f32 1e-05, %v193_v41 }
 0x1b1   :  { %v199_v47 = vadd.f32 1e-05, %v194_v43 }
 0x1b2   :  { %3302 = vrsqrt.f32 %v198_v44 }
 0x1b3   :  { %3304 = vrsqrt.f32 %v199_v47 }
 0x1b5   :  { %v3297_v51 = vpop.eup %3296 }
 0x1b6   :  { %v205_v53 = vmul.f32 %v3297_v51, %v3841_v1  ;;  %v206_v54 = vmul.f32 %v3297_v51, %v3844_v2  ;;  %v290_v51 = vld [vmem:[#allocation8 + $0xc8] sm:$0xff] }
 0x1b8   :  { %v3299_v55 = vpop.eup %3298  ;;  %v228_v56 = vmul.f32 %v224_v49, %v206_v54  ;;  %v227_v58 = vmul.f32 %v220_v50, %v205_v53 }
 0x1b9   :  { %v3301_v60 = vpop.eup %3300  ;;  %v207_v61 = vmul.f32 %v3299_v55, %v3861_v23  ;;  %v208_v62 = vmul.f32 %v3299_v55, %v3864_v24  ;;  %v298_v55 = vld [vmem:[#allocation8 + $0x108] sm:$0xff] }
 0x1ba   :  { %v210_v63 = vmul.f32 %v3301_v60, %v3850_v8  ;;  %v250_v1 = vadd.f32 %v246_v57, %v228_v56  ;;  %v249_v17 = vadd.f32 %v242_v59, %v227_v58  ;;  %v209_v23 = vmul.f32 %v3301_v60, %v3847_v7  ;;  %v306_v60 = vld [vmem:[#allocation8 + $0x148] sm:$0xff] }
 0x1bb   :  { %v230_v0 = vmul.f32 %v224_v49, %v208_v62  ;;  %v229_v13 = vmul.f32 %v220_v50, %v207_v61  ;;  %v310_v61 = vld [vmem:[#allocation8 + $0x168] sm:$0xff] }
 0x1bc   :  { %v3303_v14 = vpop.eup %3302  ;;  %v232_v2 = vmul.f32 %v224_v49, %v210_v63  ;;  %v231_v42 = vmul.f32 %v220_v50, %v209_v23 }
 0x1bd   :  { %v3305_v18 = vpop.eup %3304  ;;  %v211_v21 = vmul.f32 %v3303_v14, %v3867_v25  ;;  %v212_v27 = vmul.f32 %v3303_v14, %v3870_v26  ;;  %v252_v28 = vadd.f32 %v246_v57, %v230_v0  ;;  %v251_v29 = vadd.f32 %v242_v59, %v229_v13  ;;  %v282_v26 = vld [vmem:[#allocation8 + $0x88] sm:$0xff] }
 0x1be   :  { %v214_v24 = vmul.f32 %v3305_v18, %v3884_v36  ;;  %v254_v25 = vadd.f32 %v246_v57, %v232_v2  ;;  %v2764_v36 = vcombine.low %v274_v30, %v278_v31  ;;  %v213_v43 = vmul.f32 %v3305_v18, %v3881_v35  ;;  %v302_v35 = vld [vmem:[#allocation8 + $0x128] sm:$0xff] }
 0x1bf   :  { %v3921_v8 = vpack.c.bf16 %v252_v28, %v250_v1  ;;  %v3923_v32 = vpack.c.bf16 %v251_v29, %v249_v17  ;;  %v234_v33 = vmul.f32 %v224_v49, %v212_v27  ;;  %v233_v37 = vmul.f32 %v220_v50, %v211_v21  ;;  %v314_v0 = vld [vmem:[#allocation8 + $0x188] sm:$0xff] }
 0x1c0   :  { %v236_v41 = vmul.f32 %v224_v49, %v214_v24  ;;  %v2773_v44 = vcombine.high %v282_v26, %v286_v40  ;;  %v294_v49 = vld [vmem:[#allocation8 + $0xe8] sm:$0xff]  ;;  %v253_v52 = vadd.f32 %v242_v59, %v231_v42  ;;  %v2772_v53 = vcombine.low %v282_v26, %v286_v40 }
 0x1c1   :  { %1107 = vmatprep.mubr.bf16.mxu1 %v3921_v8  ;;  %v256_v39 = vadd.f32 %v246_v57, %v234_v33  ;;  %v255_v47 = vadd.f32 %v242_v59, %v233_v37  ;;  %v2781_v19 = vcombine.high %v290_v51, %v294_v49  ;;  %v235_v20 = vmul.f32 %v220_v50, %v213_v43  ;;  %v318_v13 = vld [vmem:[#allocation8 + $0x1a8] sm:$0xff] }
 0x1c2   :  { %1108 = vmatmul.mubr.bf16.vlgmr.msra.gmra.mrb[0].mxu1 %v3923_v32  ;;  %v258_v48 = vadd.f32 %v246_v57, %v236_v41  ;;  %v2780_v56 = vcombine.low %v290_v51, %v294_v49  ;;  %v2789_v57 = vcombine.high %v298_v55, %v302_v35  ;;  %v2788_v62 = vcombine.low %v298_v55, %v302_v35  ;;  %v322_v17 = vld [vmem:[#allocation8 + $0x1c8] sm:$0xff] }
 0x1c3   :  { %1137 = vmatpush1.bf16.msra.mxu1 %v2756_v22  ;;  %v3930_v7 = vpack.c.bf16 %v256_v39, %v254_v25  ;;  %v3934_v54 = vpack.c.bf16 %v255_v47, %v253_v52  ;;  %v257_v58 = vadd.f32 %v242_v59, %v235_v20  ;;  %v2797_v50 = vcombine.high %v306_v60, %v310_v61  ;;  %v326_v59 = vld [vmem:[#allocation8 + $0x1e8] sm:$0xff] }
 0x1c4   :  { %1138 = vmatprep.subr.bf16.mxu1 %v2765_v34  ;;  %v3936_v22 = vpack.c.bf16 %v258_v48, %v258_v48  ;;  %v2796_v14 = vcombine.low %v306_v60, %v310_v61  ;;  %v2805_v1 = vcombine.high %v314_v0, %v318_v13  ;;  %v2804_v2 = vcombine.low %v314_v0, %v318_v13  ;;  %v330_v21 = vld [vmem:[#allocation8 + $0x208] sm:$0xff]  ;;  %v271_v60 = vld [vmem:[#allocation8 + $0x30] sm:$0xff] }
 0x1c5   :  { %1117 = vmatprep.mubr.bf16.mxu1 %v3930_v7  ;;  %v3940_v63 = vpack.c.bf16 %v257_v58, %v257_v58  ;;  %v2813_v18 = vcombine.high %v322_v17, %v326_v59  ;;  %v334_v27 = vld [vmem:[#allocation8 + $0x228] sm:$0xff]  ;;  %v2812_v28 = vcombine.low %v322_v17, %v326_v59  ;;  %v267_v58 = vld [vmem:[#allocation8 + $0x10] sm:$0xff]  ;;  %v3109_v59 = vld [vmem:[#allocation11 + $0x10] ss:$8 sps:$4 sm:$0xff]  }
 0x1c6   :  { %v2821_v29 = vcombine.high %v330_v21, %v334_v27  ;;  %v338_v30 = vld [vmem:[#allocation8 + $0x248] sm:$0xff]  ;;  %v2820_v23 = vcombine.low %v330_v21, %v334_v27  ;;  %v2759_v0 = vcombine.high %v267_v58, %v271_v60  ;;  %v275_v13 = vld [vmem:[#allocation8 + $0x50] sm:$0xff]  ;;  %v2758_v17 = vcombine.low %v267_v58, %v271_v60  ;;  %v3127_v60 = vld [vmem:[#allocation11 + $0x70] ss:$8 sps:$4 sm:$0xff]  }
 0x1c7   :  { %1139 = vmatpush1.bf16.msra.mxu1 %v2764_v36  ;;  %v342_v31 = vld [vmem:[#allocation8 + $0x268] sm:$0xff]  ;;  %v287_v21 = vld [vmem:[#allocation8 + $0xb0] sm:$0xff] }
 0x1c8   :  { %1140 = vmatprep.subr.bf16.mxu1 %v2773_v44  ;;  %v2829_v24 = vcombine.high %v338_v30, %v342_v31  ;;  %v346_v33 = vld [vmem:[#allocation8 + $0x288] sm:$0xff]  ;;  %v2828_v37 = vcombine.low %v338_v30, %v342_v31  ;;  %v3113_v30 = vld [vmem:[#allocation11 + $0x34] ss:$8 sps:$4 sm:$0xff]  }
 0x1c9   :  { %v350_v34 = vld [vmem:[#allocation8 + $0x2a8] sm:$0xff] }
 0x1ca   :  { %1118 = vmatmul.mubr.bf16.gmra.mrb[4].mxu1 %v3934_v54  ;;  %v2837_v25 = vcombine.high %v346_v33, %v350_v34  ;;  %v354_v39 = vld [vmem:[#allocation8 + $0x2c8] sm:$0xff]  ;;  %v2836_v40 = vcombine.low %v346_v33, %v350_v34  ;;  %v3115_v33 = vld [vmem:[#allocation11 + $0x30] ss:$8 sps:$4 sm:$0xff]  }
 0x1cb   :  { %1141 = vmatpush1.bf16.msra.mxu1 %v2772_v53  ;;  %1127 = vmatprep.mubr.bf16.mxu1 %v3936_v22  ;;  %v358_v26 = vld [vmem:[#allocation8 + $0x2e8] sm:$0xff] }
 0x1cc   :  { %1142 = vmatprep.subr.bf16.mxu1 %v2781_v19  ;;  %v2845_v41 = vcombine.high %v354_v39, %v358_v26  ;;  %v362_v42 = vld [vmem:[#allocation8 + $0x308] sm:$0xff]  ;;  %v2844_v43 = vcombine.low %v354_v39, %v358_v26  ;;  %v303_v39 = vld [vmem:[#allocation8 + $0x130] sm:$0xff] }
 0x1cd   :  { %v366_v36 = vld [vmem:[#allocation8 + $0x328] sm:$0xff] }
 0x1ce   :  { %v2853_v44 = vcombine.high %v362_v42, %v366_v36  ;;  %v370_v47 = vld [vmem:[#allocation8 + $0x348] sm:$0xff]  ;;  %v2852_v51 = vcombine.low %v362_v42, %v366_v36  ;;  %v3119_v42 = vld [vmem:[#allocation11 + $0x54] ss:$8 sps:$4 sm:$0xff]  }
 0x1cf   :  { %1143 = vmatpush1.bf16.msra.mxu1 %v2780_v56  ;;  %v374_v48 = vld [vmem:[#allocation8 + $0x368] sm:$0xff] }
 0x1d0   :  { %1144 = vmatprep.subr.bf16.mxu1 %v2789_v57  ;;  %v2861_v49 = vcombine.high %v370_v47, %v374_v48  ;;  %v378_v52 = vld [vmem:[#allocation8 + $0x388] sm:$0xff]  ;;  %v2860_v19 = vcombine.low %v370_v47, %v374_v48  ;;  %v3121_v47 = vld [vmem:[#allocation11 + $0x50] ss:$8 sps:$4 sm:$0xff]  }
 0x1d1   :  { %v382_v53 = vld [vmem:[#allocation8 + $0x3a8] sm:$0xff] }
 0x1d2   :  { %1128 = vmatmul.mubr.bf16.gmra.mrb[8].mxu1 %v3940_v63  ;;  %v2869_v20 = vcombine.high %v378_v52, %v382_v53  ;;  %v386_v55 = vld [vmem:[#allocation8 + $0x3c8] sm:$0xff]  ;;  %v2868_v56 = vcombine.low %v378_v52, %v382_v53  ;;  %v319_v52 = vld [vmem:[#allocation8 + $0x1b0] sm:$0xff] }
 0x1d3   :  { %1145 = vmatpush1.bf16.msra.mxu1 %v2788_v62  ;;  %1168 = vmatprep.mubr.bf16.mxu1 %v3921_v8  ;;  %v390_v35 = vld [vmem:[#allocation8 + $0x3e8] sm:$0xff] }
 0x1d4   :  { %1146 = vmatprep.subr.bf16.mxu1 %v2797_v50  ;;  %v2877_v57 = vcombine.high %v386_v55, %v390_v35  ;;  %v3104_v61 = vld [vmem:[#allocation11 + $0x4] ss:$8 sps:$4 sm:$0xff]   ;;  %v2876_v62 = vcombine.low %v386_v55, %v390_v35  ;;  %v3106_v50 = vld [vmem:[#allocation11] ss:$8 sps:$4 sm:$0xff]  }
 0x1d5   :  { %2443 = vmatprep.subr.bf16.mxu0 %v3104_v61  ;;  %v3110_v27 = vld [vmem:[#allocation11 + $0x24] ss:$8 sps:$4 sm:$0xff]  }
 0x1d6   :  { %2444 = vmatpush1.bf16.msra.mxu0 %v3106_v50  ;;  %v3116_v26 = vld [vmem:[#allocation11 + $0x44] ss:$8 sps:$4 sm:$0xff]  }
 0x1d7   :  { %1147 = vmatpush1.bf16.msra.mxu1 %v2796_v14  ;;  %v279_v14 = vld [vmem:[#allocation8 + $0x70] sm:$0xff] }
 0x1d8   :  { %1148 = vmatprep.subr.bf16.mxu1 %v2805_v1  ;;  %v3107_v1 = vld [vmem:[#allocation11 + $0x14] ss:$8 sps:$4 sm:$0xff]   ;;  %v3122_v53 = vld [vmem:[#allocation11 + $0x64] ss:$8 sps:$4 sm:$0xff]  }
 0x1d9   :  { %2445 = vmatprep.subr.bf16.mxu0 %v3107_v1  ;;  %v323_v35 = vld [vmem:[#allocation8 + $0x1d0] sm:$0xff] }
 0x1da   :  { %2446 = vmatpush1.bf16.msra.mxu0 %v3109_v59  ;;  %v335_v50 = vld [vmem:[#allocation8 + $0x230] sm:$0xff] }
 0x1db   :  { %1149 = vmatpush1.bf16.msra.mxu1 %v2804_v2  ;;  %v2767_v2 = vcombine.high %v275_v13, %v279_v14  ;;  %2447 = vmatprep.subr.bf16.mxu0 %v3110_v27  ;;  %v343_v59 = vld [vmem:[#allocation8 + $0x270] sm:$0xff] }
 0x1dc   :  { %1150 = vmatprep.subr.bf16.mxu1 %v2813_v18  ;;  %v283_v18 = vld [vmem:[#allocation8 + $0x90] sm:$0xff] }
 0x1dd   :  { %v2775_v31 = vcombine.high %v283_v18, %v287_v21  ;;  %v2774_v34 = vcombine.low %v283_v18, %v287_v21  ;;  %v3133_v21 = vld [vmem:[#allocation11 + $0x90] ss:$8 sps:$4 sm:$0xff]  }
 0x1df   :  { %1151 = vmatpush1.bf16.msra.mxu1 %v2812_v28  ;;  %v2766_v28 = vcombine.low %v275_v13, %v279_v14  ;;  %v3130_v14 = vld [vmem:[#allocation11 + $0x80] ss:$8 sps:$4 sm:$0xff]  }
 0x1e0   :  { %1152 = vmatprep.subr.bf16.mxu1 %v2821_v29  ;;  %v3112_v29 = vld [vmem:[#allocation11 + $0x20] ss:$8 sps:$4 sm:$0xff]  }
 0x1e1   :  { %2448 = vmatpush1.bf16.msra.mxu0 %v3112_v29  ;;  %v351_v29 = vld [vmem:[#allocation8 + $0x2b0] sm:$0xff] }
 0x1e2   :  { %2449 = vmatprep.subr.bf16.mxu0 %v3113_v30  ;;  %v3134_v30 = vld [vmem:[#allocation11 + $0xa4] ss:$8 sps:$4 sm:$0xff]  }
 0x1e3   :  { %1153 = vmatpush1.bf16.msra.mxu1 %v2820_v23  ;;  %v291_v23 = vld [vmem:[#allocation8 + $0xd0] sm:$0xff] }
 0x1e4   :  { %1154 = vmatprep.subr.bf16.mxu1 %v2829_v24  ;;  %v295_v24 = vld [vmem:[#allocation8 + $0xf0] sm:$0xff] }
 0x1e5   :  { %2450 = vmatpush1.bf16.msra.mxu0 %v3115_v33  ;;  %v355_v33 = vld [vmem:[#allocation8 + $0x2d0] sm:$0xff] }
 0x1e6   :  { %2451 = vmatprep.subr.bf16.mxu0 %v3116_v26 }
 0x1e7   :  { %1155 = vmatpush1.bf16.msra.mxu1 %v2828_v37  ;;  %v2783_v37 = vcombine.high %v291_v23, %v295_v24 }
 0x1e8   :  { %1156 = vmatprep.subr.bf16.mxu1 %v2837_v25  ;;  %v299_v25 = vld [vmem:[#allocation8 + $0x110] sm:$0xff] }
 0x1e9   :  { %v2791_v36 = vcombine.high %v299_v25, %v303_v39  ;;  %v2790_v48 = vcombine.low %v299_v25, %v303_v39  ;;  %v3139_v39 = vld [vmem:[#allocation11 + $0xb0] ss:$8 sps:$4 sm:$0xff]  }
 0x1eb   :  { %1157 = vmatpush1.bf16.msra.mxu1 %v2836_v40  ;;  %v2782_v40 = vcombine.low %v291_v23, %v295_v24  ;;  %v3136_v23 = vld [vmem:[#allocation11 + $0xa0] ss:$8 sps:$4 sm:$0xff]  }
 0x1ec   :  { %1158 = vmatprep.subr.bf16.mxu1 %v2845_v41  ;;  %v3118_v41 = vld [vmem:[#allocation11 + $0x40] ss:$8 sps:$4 sm:$0xff]  }
 0x1ed   :  { %2452 = vmatpush1.bf16.msra.mxu0 %v3118_v41  ;;  %v367_v41 = vld [vmem:[#allocation8 + $0x330] sm:$0xff] }
 0x1ee   :  { %2453 = vmatprep.subr.bf16.mxu0 %v3119_v42  ;;  %v3140_v42 = vld [vmem:[#allocation11 + $0xc4] ss:$8 sps:$4 sm:$0xff]  }
 0x1ef   :  { %1159 = vmatpush1.bf16.msra.mxu1 %v2844_v43  ;;  %v307_v43 = vld [vmem:[#allocation8 + $0x150] sm:$0xff] }
 0x1f0   :  { %1160 = vmatprep.subr.bf16.mxu1 %v2853_v44  ;;  %v311_v44 = vld [vmem:[#allocation8 + $0x170] sm:$0xff] }
 0x1f1   :  { %2454 = vmatpush1.bf16.msra.mxu0 %v3121_v47  ;;  %v371_v47 = vld [vmem:[#allocation8 + $0x350] sm:$0xff] }
 0x1f2   :  { %2455 = vmatprep.subr.bf16.mxu0 %v3122_v53 }
 0x1f3   :  { %1161 = vmatpush1.bf16.msra.mxu1 %v2852_v51  ;;  %v2799_v51 = vcombine.high %v307_v43, %v311_v44 }
 0x1f4   :  { %1162 = vmatprep.subr.bf16.mxu1 %v2861_v49  ;;  %v315_v49 = vld [vmem:[#allocation8 + $0x190] sm:$0xff] }
 0x1f5   :  { %v2807_v55 = vcombine.high %v315_v49, %v319_v52  ;;  %v2806_v58 = vcombine.low %v315_v49, %v319_v52  ;;  %v3145_v52 = vld [vmem:[#allocation11 + $0xd0] ss:$8 sps:$4 sm:$0xff]  }
 0x1f7   :  { %1163 = vmatpush1.bf16.msra.mxu1 %v2860_v19  ;;  %v3124_v19 = vld [vmem:[#allocation11 + $0x60] ss:$8 sps:$4 sm:$0xff]  }
 0x1f8   :  { %1164 = vmatprep.subr.bf16.mxu1 %v2869_v20  ;;  %v2798_v20 = vcombine.low %v307_v43, %v311_v44  ;;  %2456 = vmatpush1.bf16.msra.mxu0 %v3124_v19  ;;  %v3142_v43 = vld [vmem:[#allocation11 + $0xc0] ss:$8 sps:$4 sm:$0xff]  }
 0x1f9   :  { %v379_v19 = vld [vmem:[#allocation8 + $0x390] sm:$0xff] }
 0x1fb   :  { %1165 = vmatpush1.bf16.msra.mxu1 %v2868_v56  ;;  %v327_v56 = vld [vmem:[#allocation8 + $0x1f0] sm:$0xff] }
 0x1fc   :  { %1166 = vmatprep.subr.bf16.mxu1 %v2877_v57  ;;  %v3125_v57 = vld [vmem:[#allocation11 + $0x74] ss:$8 sps:$4 sm:$0xff]   ;;  %v2815_v61 = vcombine.high %v323_v35, %v327_v56  ;;  %v2814_v13 = vcombine.low %v323_v35, %v327_v56  ;;  %v3148_v56 = vld [vmem:[#allocation11 + $0xe0] ss:$8 sps:$4 sm:$0xff]  }
 0x1fd   :  { %2457 = vmatprep.subr.bf16.mxu0 %v3125_v57 }
 0x1fe   :  { %2458 = vmatpush1.bf16.msra.mxu0 %v3127_v60  ;;  %v391_v60 = vld [vmem:[#allocation8 + $0x3f0] sm:$0xff] }
 0x1ff   :  { %1167 = vmatpush1.bf16.msra.mxu1 %v2876_v62  ;;  %v331_v62 = vld [vmem:[#allocation8 + $0x210] sm:$0xff] }
 0x200   :  { %1197 = vmatprep.subr.bf16.mxu1 %v2759_v0  ;;  %v3128_v0 = vld [vmem:[#allocation11 + $0x84] ss:$8 sps:$4 sm:$0xff]   ;;  %v2823_v1 = vcombine.high %v331_v62, %v335_v50  ;;  %v2822_v18 = vcombine.low %v331_v62, %v335_v50  ;;  %v3151_v50 = vld [vmem:[#allocation11 + $0xf0] ss:$8 sps:$4 sm:$0xff]  }
 0x201   :  { %2459 = vmatprep.subr.bf16.mxu0 %v3128_v0 }
 0x202   :  { %1169 = vmatmul.mubr.bf16.vlgmr.msra.gmra.mrb[12].mxu1 %v3923_v32  ;;  %2460 = vmatpush1.bf16.msra.mxu0 %v3130_v14  ;;  %v272_v14 = vld [vmem:[#allocation8 + $0x38] sm:$0xff] }
 0x203   :  { %1178 = vmatprep.mubr.bf16.mxu1 %v3930_v7  ;;  %1198 = vmatpush1.bf16.msra.mxu1 %v2758_v17  ;;  %v339_v17 = vld [vmem:[#allocation8 + $0x250] sm:$0xff] }
 0x204   :  { %1199 = vmatprep.subr.bf16.mxu1 %v2767_v2  ;;  %v3131_v2 = vld [vmem:[#allocation11 + $0x94] ss:$8 sps:$4 sm:$0xff]   ;;  %v2831_v27 = vcombine.high %v339_v17, %v343_v59 }
 0x205   :  { %2461 = vmatprep.subr.bf16.mxu0 %v3131_v2  ;;  %v276_v2 = vld [vmem:[#allocation8 + $0x58] sm:$0xff] }
 0x206   :  { %2462 = vmatpush1.bf16.msra.mxu0 %v3133_v21 }
 0x207   :  { %1200 = vmatpush1.bf16.msra.mxu1 %v2766_v28  ;;  %v347_v28 = vld [vmem:[#allocation8 + $0x290] sm:$0xff]  ;;  %2463 = vmatprep.subr.bf16.mxu0 %v3134_v30 }
 0x208   :  { %1201 = vmatprep.subr.bf16.mxu1 %v2775_v31  ;;  %v2830_v31 = vcombine.low %v339_v17, %v343_v59  ;;  %v2839_v24 = vcombine.high %v347_v28, %v351_v29  ;;  %v2838_v25 = vcombine.low %v347_v28, %v351_v29  ;;  %v284_v28 = vld [vmem:[#allocation8 + $0x98] sm:$0xff] }
 0x209   :  { %v288_v29 = vld [vmem:[#allocation8 + $0xb8] sm:$0xff] }
 0x20a   :  { %1179 = vmatmul.mubr.bf16.gmra.mrb[16].mxu1 %v3934_v54  ;;  %2464 = vmatpush1.bf16.msra.mxu0 %v3136_v23  ;;  %v292_v23 = vld [vmem:[#allocation8 + $0xd8] sm:$0xff] }
 0x20b   :  { %1188 = vmatprep.mubr.bf16.mxu1 %v3936_v22  ;;  %1202 = vmatpush1.bf16.msra.mxu1 %v2774_v34  ;;  %v359_v34 = vld [vmem:[#allocation8 + $0x2f0] sm:$0xff] }
 0x20c   :  { %1203 = vmatprep.subr.bf16.mxu1 %v2783_v37  ;;  %v3137_v37 = vld [vmem:[#allocation11 + $0xb4] ss:$8 sps:$4 sm:$0xff]   ;;  %v2847_v26 = vcombine.high %v355_v33, %v359_v34 }
 0x20d   :  { %2465 = vmatprep.subr.bf16.mxu0 %v3137_v37  ;;  %v300_v37 = vld [vmem:[#allocation8 + $0x118] sm:$0xff] }
 0x20e   :  { %2466 = vmatpush1.bf16.msra.mxu0 %v3139_v39 }
 0x20f   :  { %1204 = vmatpush1.bf16.msra.mxu1 %v2782_v40  ;;  %v363_v40 = vld [vmem:[#allocation8 + $0x310] sm:$0xff]  ;;  %2467 = vmatprep.subr.bf16.mxu0 %v3140_v42 }
 0x210   :  { %1205 = vmatprep.subr.bf16.mxu1 %v2791_v36  ;;  %v2846_v36 = vcombine.low %v355_v33, %v359_v34  ;;  %v2855_v44 = vcombine.high %v363_v40, %v367_v41  ;;  %v2854_v49 = vcombine.low %v363_v40, %v367_v41  ;;  %v2776_v33 = vcombine.low %v284_v28, %v288_v29  ;;  %v308_v40 = vld [vmem:[#allocation8 + $0x158] sm:$0xff] }
 0x211   :  { %v312_v41 = vld [vmem:[#allocation8 + $0x178] sm:$0xff] }
 0x212   :  { %1189 = vmatmul.mubr.bf16.gmra.mrb[20].mxu1 %v3940_v63  ;;  %2468 = vmatpush1.bf16.msra.mxu0 %v3142_v43  ;;  %v316_v43 = vld [vmem:[#allocation8 + $0x198] sm:$0xff] }
 0x213   :  { %1206 = vmatpush1.bf16.msra.mxu1 %v2790_v48  ;;  %1229 = vmatprep.mubr.bf16.mxu1 %v3921_v8  ;;  %v375_v48 = vld [vmem:[#allocation8 + $0x370] sm:$0xff] }
 0x214   :  { %1207 = vmatprep.subr.bf16.mxu1 %v2799_v51  ;;  %v3143_v51 = vld [vmem:[#allocation11 + $0xd4] ss:$8 sps:$4 sm:$0xff]   ;;  %v2863_v53 = vcombine.high %v371_v47, %v375_v48  ;;  %v2862_v35 = vcombine.low %v371_v47, %v375_v48  ;;  %v2800_v47 = vcombine.low %v308_v40, %v312_v41 }
 0x215   :  { %2469 = vmatprep.subr.bf16.mxu0 %v3143_v51  ;;  %v324_v51 = vld [vmem:[#allocation8 + $0x1d8] sm:$0xff] }
 0x216   :  { %2470 = vmatpush1.bf16.msra.mxu0 %v3145_v52 }
 0x217   :  { %1208 = vmatpush1.bf16.msra.mxu1 %v2798_v20  ;;  %v383_v20 = vld [vmem:[#allocation8 + $0x3b0] sm:$0xff] }
 0x218   :  { %1209 = vmatprep.subr.bf16.mxu1 %v2807_v55  ;;  %v3146_v55 = vld [vmem:[#allocation11 + $0xe4] ss:$8 sps:$4 sm:$0xff]   ;;  %v2871_v57 = vcombine.high %v379_v19, %v383_v20  ;;  %v2870_v62 = vcombine.low %v379_v19, %v383_v20  ;;  %v332_v19 = vld [vmem:[#allocation8 + $0x218] sm:$0xff] }
 0x219   :  { %2471 = vmatprep.subr.bf16.mxu0 %v3146_v55  ;;  %v336_v20 = vld [vmem:[#allocation8 + $0x238] sm:$0xff] }
 0x21a   :  { %2472 = vmatpush1.bf16.msra.mxu0 %v3148_v56  ;;  %v340_v56 = vld [vmem:[#allocation8 + $0x258] sm:$0xff] }
 0x21b   :  { %1210 = vmatpush1.bf16.msra.mxu1 %v2806_v58  ;;  %v387_v58 = vld [vmem:[#allocation8 + $0x3d0] sm:$0xff] }
 0x21c   :  { %1211 = vmatprep.subr.bf16.mxu1 %v2815_v61  ;;  %v3149_v61 = vld [vmem:[#allocation11 + $0xf4] ss:$8 sps:$4 sm:$0xff]   ;;  %v2879_v0 = vcombine.high %v387_v58, %v391_v60  ;;  %v2878_v17 = vcombine.low %v387_v58, %v391_v60  ;;  %v2824_v58 = vcombine.low %v332_v19, %v336_v20 }
 0x21d   :  { %2473 = vmatprep.subr.bf16.mxu0 %v3149_v61  ;;  %v348_v60 = vld [vmem:[#allocation8 + $0x298] sm:$0xff] }
 0x21e   :  { %2474 = vmatpush1.bf16.msra.mxu0 %v3151_v50  ;;  %v352_v61 = vld [vmem:[#allocation8 + $0x2b8] sm:$0xff] }
 0x21f   :  { %1212 = vmatpush1.bf16.msra.mxu1 %v2814_v13  ;;  %v268_v13 = vld [vmem:[#allocation8 + $0x18] sm:$0xff]  ;;  %v2841_v50 = vcombine.high %v348_v60, %v352_v61 }
 0x220   :  { %1213 = vmatprep.subr.bf16.mxu1 %v2823_v1  ;;  %v3154_v1 = vld [vmem:[#allocation11 + $0x104] ss:$8 sps:$4 sm:$0xff]   ;;  %v2761_v59 = vcombine.high %v268_v13, %v272_v14  ;;  %v2760_v21 = vcombine.low %v268_v13, %v272_v14  ;;  %v360_v13 = vld [vmem:[#allocation8 + $0x2f8] sm:$0xff]  ;;  %v2840_v14 = vcombine.low %v348_v60, %v352_v61 }
 0x221   :  { %2504 = vmatprep.subr.bf16.mxu0 %v3154_v1 }
 0x223   :  { %1214 = vmatpush1.bf16.msra.mxu1 %v2822_v18  ;;  %v280_v18 = vld [vmem:[#allocation8 + $0x78] sm:$0xff] }
 0x224   :  { %1215 = vmatprep.subr.bf16.mxu1 %v2831_v27  ;;  %v2769_v27 = vcombine.high %v276_v2, %v280_v18  ;;  %v2768_v30 = vcombine.low %v276_v2, %v280_v18 }
 0x227   :  { %1216 = vmatpush1.bf16.msra.mxu1 %v2830_v31  ;;  %v2777_v31 = vcombine.high %v284_v28, %v288_v29 }
 0x228   :  { %1217 = vmatprep.subr.bf16.mxu1 %v2839_v24  ;;  %v296_v24 = vld [vmem:[#allocation8 + $0xf8] sm:$0xff] }
 0x229   :  { %v2785_v34 = vcombine.high %v292_v23, %v296_v24  ;;  %v2784_v39 = vcombine.low %v292_v23, %v296_v24 }
 0x22b   :  { %1218 = vmatpush1.bf16.msra.mxu1 %v2838_v25  ;;  %v304_v25 = vld [vmem:[#allocation8 + $0x138] sm:$0xff] }
 0x22c   :  { %1219 = vmatprep.subr.bf16.mxu1 %v2847_v26  ;;  %v2793_v26 = vcombine.high %v300_v37, %v304_v25  ;;  %v2792_v42 = vcombine.low %v300_v37, %v304_v25 }
 0x22f   :  { %1220 = vmatpush1.bf16.msra.mxu1 %v2846_v36  ;;  %v2801_v36 = vcombine.high %v308_v40, %v312_v41 }
 0x230   :  { %1221 = vmatprep.subr.bf16.mxu1 %v2855_v44  ;;  %v320_v44 = vld [vmem:[#allocation8 + $0x1b8] sm:$0xff] }
 0x231   :  { %v2809_v48 = vcombine.high %v316_v43, %v320_v44  ;;  %v2808_v52 = vcombine.low %v316_v43, %v320_v44 }
 0x233   :  { %1222 = vmatpush1.bf16.msra.mxu1 %v2854_v49  ;;  %v328_v49 = vld [vmem:[#allocation8 + $0x1f8] sm:$0xff] }
 0x234   :  { %1223 = vmatprep.subr.bf16.mxu1 %v2863_v53  ;;  %v2817_v53 = vcombine.high %v324_v51, %v328_v49  ;;  %v2816_v55 = vcombine.low %v324_v51, %v328_v49 }
 0x237   :  { %1224 = vmatpush1.bf16.msra.mxu1 %v2862_v35  ;;  %v2825_v35 = vcombine.high %v332_v19, %v336_v20 }
 0x238   :  { %1225 = vmatprep.subr.bf16.mxu1 %v2871_v57  ;;  %v344_v57 = vld [vmem:[#allocation8 + $0x278] sm:$0xff] }
 0x23b   :  { %1226 = vmatpush1.bf16.msra.mxu1 %v2870_v62  ;;  %v2832_v62 = vcombine.low %v340_v56, %v344_v57 }
 0x23c   :  { %1227 = vmatprep.subr.bf16.mxu1 %v2879_v0  ;;  %v356_v0 = vld [vmem:[#allocation8 + $0x2d8] sm:$0xff] }
 0x23d   :  { %v2849_v1 = vcombine.high %v356_v0, %v360_v13  ;;  %v2848_v2 = vcombine.low %v356_v0, %v360_v13 }
 0x23f   :  { %1228 = vmatpush1.bf16.msra.mxu1 %v2878_v17  ;;  %v364_v17 = vld [vmem:[#allocation8 + $0x318] sm:$0xff] }
 0x240   :  { %1258 = vmatprep.subr.bf16.mxu1 %v2761_v59  ;;  %v368_v59 = vld [vmem:[#allocation8 + $0x338] sm:$0xff] }
 0x241   :  { %v2857_v18 = vcombine.high %v364_v17, %v368_v59  ;;  %v2856_v28 = vcombine.low %v364_v17, %v368_v59 }
 0x242   :  { %1230 = vmatmul.mubr.bf16.vlgmr.msra.gmra.mrb[24].mxu1 %v3923_v32 }
 0x243   :  { %1239 = vmatprep.mubr.bf16.mxu1 %v3930_v7  ;;  %1259 = vmatpush1.bf16.msra.mxu1 %v2760_v21  ;;  %v372_v21 = vld [vmem:[#allocation8 + $0x358] sm:$0xff] }
 0x244   :  { %1260 = vmatprep.subr.bf16.mxu1 %v2769_v27  ;;  %v376_v27 = vld [vmem:[#allocation8 + $0x378] sm:$0xff] }
 0x245   :  { %v2865_v29 = vcombine.high %v372_v21, %v376_v27  ;;  %v2864_v23 = vcombine.low %v372_v21, %v376_v27 }
 0x247   :  { %1261 = vmatpush1.bf16.msra.mxu1 %v2768_v30  ;;  %v380_v30 = vld [vmem:[#allocation8 + $0x398] sm:$0xff] }
 0x248   :  { %1262 = vmatprep.subr.bf16.mxu1 %v2777_v31  ;;  %v384_v31 = vld [vmem:[#allocation8 + $0x3b8] sm:$0xff] }
 0x249   :  { %v2873_v24 = vcombine.high %v380_v30, %v384_v31  ;;  %v2872_v37 = vcombine.low %v380_v30, %v384_v31 }
 0x24a   :  { %1240 = vmatmul.mubr.bf16.gmra.mrb[28].mxu1 %v3934_v54 }
 0x24b   :  { %1249 = vmatprep.mubr.bf16.mxu1 %v3936_v22  ;;  %1263 = vmatpush1.bf16.msra.mxu1 %v2776_v33  ;;  %v388_v33 = vld [vmem:[#allocation8 + $0x3d8] sm:$0xff] }
 0x24c   :  { %1264 = vmatprep.subr.bf16.mxu1 %v2785_v34  ;;  %v392_v34 = vld [vmem:[#allocation8 + $0x3f8] sm:$0xff] }
 0x24d   :  { %v2881_v25 = vcombine.high %v388_v33, %v392_v34 }
 0x24f   :  { %1265 = vmatpush1.bf16.msra.mxu1 %v2784_v39  ;;  %v2880_v39 = vcombine.low %v388_v33, %v392_v34 }
 0x250   :  { %1266 = vmatprep.subr.bf16.mxu1 %v2793_v26  ;;  %v3960_v26 = vld [vmem:[#allocation10] sm:$0xff] }
 0x251   :  { %v398_v40 = vrot.slane %v3960_v26, %v3906_v46  ;;  %v402_v41 = vrot.slane %v3960_v26, %v3903_v45 }
 0x252   :  { %1250 = vmatmul.mubr.bf16.gmra.mrb[32].mxu1 %v3940_v63 }
 0x253   :  { %1267 = vmatpush1.bf16.msra.mxu1 %v2792_v42  ;;  %1290 = vmatprep.mubr.bf16.mxu1 %v3921_v8  ;;  %v2833_v8 = vcombine.high %v340_v56, %v344_v57 }
 0x254   :  { %1268 = vmatprep.subr.bf16.mxu1 %v2801_v36 }
 0x257   :  { %1269 = vmatpush1.bf16.msra.mxu1 %v2800_v47 }
 0x258   :  { %1270 = vmatprep.subr.bf16.mxu1 %v2809_v48 }
 0x25b   :  { %1271 = vmatpush1.bf16.msra.mxu1 %v2808_v52 }
 0x25c   :  { %1272 = vmatprep.subr.bf16.mxu1 %v2817_v53 }
 0x25f   :  { %1273 = vmatpush1.bf16.msra.mxu1 %v2816_v55 }
 0x260   :  { %1274 = vmatprep.subr.bf16.mxu1 %v2825_v35 }
 0x263   :  { %1275 = vmatpush1.bf16.msra.mxu1 %v2824_v58 }
 0x264   :  { %1276 = vmatprep.subr.bf16.mxu1 %v2833_v8 }
 0x267   :  { %1277 = vmatpush1.bf16.msra.mxu1 %v2832_v62 }
 0x268   :  { %1278 = vmatprep.subr.bf16.mxu1 %v2841_v50 }
 0x26b   :  { %1279 = vmatpush1.bf16.msra.mxu1 %v2840_v14 }
 0x26c   :  { %1280 = vmatprep.subr.bf16.mxu1 %v2849_v1 }
 0x26f   :  { %1281 = vmatpush1.bf16.msra.mxu1 %v2848_v2 }
 0x270   :  { %1282 = vmatprep.subr.bf16.mxu1 %v2857_v18 }
 0x273   :  { %1283 = vmatpush1.bf16.msra.mxu1 %v2856_v28 }
 0x274   :  { %1284 = vmatprep.subr.bf16.mxu1 %v2865_v29 }
 0x277   :  { %1285 = vmatpush1.bf16.msra.mxu1 %v2864_v23 }
 0x278   :  { %1286 = vmatprep.subr.bf16.mxu1 %v2873_v24 }
 0x27b   :  { %1287 = vmatpush1.bf16.msra.mxu1 %v2872_v37 }
 0x27c   :  { %1288 = vmatprep.subr.bf16.mxu1 %v2881_v25 }
 0x27f   :  { %1289 = vmatpush1.bf16.msra.mxu1 %v2880_v39 }
 0x282   :  { %1291 = vmatmul.mubr.bf16.vlgmr.msra.gmra.mrb[36].mxu1 %v3923_v32 }
 0x283   :  { %1300 = vmatprep.mubr.bf16.mxu1 %v3930_v7 }
 0x28a   :  { %1301 = vmatmul.mubr.bf16.gmra.mrb[40].mxu1 %v3934_v54 }
 0x28b   :  { %1310 = vmatprep.mubr.bf16.mxu1 %v3936_v22 }
 0x292   :  { %1311 = vmatmul.mubr.bf16.gmra.mrb[44].mxu1 %v3940_v63 }
 0x295   :  { %v1109_v42 = vpop.f32.mrb[0].mxu1 }
 0x296   :  { %v3967_v36 = vadd.f32 %v1109_v42, %v398_v40  ;;  %v1111_v32 = vpop.f32.mrb[1].mxu1 }
 0x297   :  { %v3969_v43 = vadd.f32 %v1111_v32, %v402_v41  ;;  %v1113_v7 = vpop.f32.mrb[2].mxu1 }
 0x298   :  { %v2882_v54 = vmul.f32 -1.702, %v3967_v36  ;;  %v3972_v22 = vadd.f32 %v1113_v7, %v398_v40  ;;  %v1115_v44 = vpop.f32.mrb[3].mxu1 }
 0x299   :  { %v2883_v63 = vmul.f32 -1.702, %v3969_v43  ;;  %v3975_v47 = vadd.f32 %v1115_v44, %v402_v41 }
 0x29a   :  { %v1399_v48 = vmul.f32 1.442695, %v2882_v54  ;;  %v2890_v51 = vmul.f32 -1.702, %v3972_v22 }
 0x29b   :  { %v1401_v49 = vmul.f32 1.442695, %v2883_v63  ;;  %v2891_v52 = vmul.f32 -1.702, %v3975_v47 }
 0x29c   :  { %3306 = vpow2.f32 %v1399_v48  ;;  %v1415_v53 = vmul.f32 1.442695, %v2890_v51 }
 0x29d   :  { %3308 = vpow2.f32 %v1401_v49  ;;  %v1417_v19 = vmul.f32 1.442695, %v2891_v52  ;;  %v1119_v20 = vpop.f32.mrb[4].mxu1 }
 0x29e   :  { %3310 = vpow2.f32 %v1415_v53  ;;  %v3979_v55 = vadd.f32 %v1119_v20, %v398_v40  ;;  %v1121_v35 = vpop.f32.mrb[5].mxu1 }
 0x29f   :  { %3312 = vpow2.f32 %v1417_v19  ;;  %v3981_v56 = vadd.f32 %v1121_v35, %v402_v41  ;;  %v1123_v57 = vpop.f32.mrb[6].mxu1 }
 0x2a0   :  { %v2898_v58 = vmul.f32 -1.702, %v3979_v55  ;;  %v3984_v8 = vadd.f32 %v1123_v57, %v398_v40  ;;  %v1125_v60 = vpop.f32.mrb[7].mxu1 }
 0x2a1   :  { %v2899_v61 = vmul.f32 -1.702, %v3981_v56  ;;  %v3987_v62 = vadd.f32 %v1125_v60, %v402_v41 }
 0x2a2   :  { %v1431_v50 = vmul.f32 1.442695, %v2898_v58  ;;  %v2906_v0 = vmul.f32 -1.702, %v3984_v8 }
 0x2a3   :  { %v1433_v13 = vmul.f32 1.442695, %v2899_v61  ;;  %v2907_v14 = vmul.f32 -1.702, %v3987_v62 }
 0x2a4   :  { %3314 = vpow2.f32 %v1431_v50  ;;  %v1447_v1 = vmul.f32 1.442695, %v2906_v0 }
 0x2a5   :  { %3316 = vpow2.f32 %v1433_v13  ;;  %v1449_v17 = vmul.f32 1.442695, %v2907_v14  ;;  %v1129_v59 = vpop.f32.mrb[8].mxu1 }
 0x2a6   :  { %v3307_v2 = vpop.eup %3306  ;;  %3318 = vpow2.f32 %v1447_v1  ;;  %v3991_v18 = vadd.f32 %v1129_v59, %v398_v40  ;;  %v1131_v21 = vpop.f32.mrb[9].mxu1  ;;  %v3152_v1 = vld [vmem:[#allocation11 + $0x100] ss:$8 sps:$4 sm:$0xff]  }
 0x2a7   :  { %v3309_v27 = vpop.eup %3308  ;;  %v1479_v28 = vadd.f32 1.0, %v3307_v2  ;;  %3320 = vpow2.f32 %v1449_v17  ;;  %v3993_v29 = vadd.f32 %v1131_v21, %v402_v41  ;;  %v1133_v30 = vpop.f32.mrb[10].mxu1  ;;  %v3157_v17 = vld [vmem:[#allocation11 + $0x114] ss:$8 sps:$4 sm:$0xff]  }
 0x2a8   :  { %v3311_v31 = vpop.eup %3310  ;;  %v1480_v23 = vadd.f32 1.0, %v3309_v27  ;;  %v2914_v24 = vmul.f32 -1.702, %v3991_v18  ;;  %v1134_v33 = vpop.f32.mrb[11].mxu1  ;;  %v3160_v27 = vld [vmem:[#allocation11 + $0x124] ss:$8 sps:$4 sm:$0xff]  }
 0x2a9   :  { %v3313_v34 = vpop.eup %3312  ;;  %3322 = vrcp.f32 %v1479_v28  ;;  %v1487_v37 = vadd.f32 1.0, %v3311_v31  ;;  %v2915_v25 = vmul.f32 -1.702, %v3993_v29  ;;  %v3163_v33 = vld [vmem:[#allocation11 + $0x134] ss:$8 sps:$4 sm:$0xff]  }
 0x2aa   :  { %3324 = vrcp.f32 %v1480_v23  ;;  %v1488_v39 = vadd.f32 1.0, %v3313_v34  ;;  %v1463_v40 = vmul.f32 1.442695, %v2914_v24  ;;  %v3158_v24 = vld [vmem:[#allocation11 + $0x120] ss:$8 sps:$4 sm:$0xff]  }
 0x2ab   :  { %3326 = vrcp.f32 %v1487_v37  ;;  %v1465_v42 = vmul.f32 1.442695, %v2915_v25 }
 0x2ac   :  { %3328 = vrcp.f32 %v1488_v39 }
 0x2ad   :  { %3330 = vpow2.f32 %v1463_v40 }
 0x2ae   :  { %v3315_v41 = vpop.eup %3314  ;;  %3332 = vpow2.f32 %v1465_v42  ;;  %v3169_v42 = vld [vmem:[#allocation11 + $0x154] ss:$8 sps:$4 sm:$0xff]  }
 0x2af   :  { %v3317_v32 = vpop.eup %3316  ;;  %v1495_v7 = vadd.f32 1.0, %v3315_v41  ;;  %v3167_v41 = vld [vmem:[#allocation11 + $0x150] ss:$8 sps:$4 sm:$0xff]  }
 0x2b0   :  { %v3319_v54 = vpop.eup %3318  ;;  %v1496_v44 = vadd.f32 1.0, %v3317_v32  ;;  %v3172_v32 = vld [vmem:[#allocation11 + $0x164] ss:$8 sps:$4 sm:$0xff]  }
 0x2b1   :  { %v3321_v63 = vpop.eup %3320  ;;  %3334 = vrcp.f32 %v1495_v7  ;;  %v1503_v48 = vadd.f32 1.0, %v3319_v54  ;;  %v405_v7 = vsub.s32 2, %v3900_v38 }
 0x2b2   :  { %3336 = vrcp.f32 %v1496_v44  ;;  %v1504_v51 = vadd.f32 1.0, %v3321_v63  ;;  %v3175_v44 = vld [vmem:[#allocation11 + $0x174] ss:$8 sps:$4 sm:$0xff]  }
 0x2b3   :  { %v3323_v49 = vpop.eup %3322  ;;  %3338 = vrcp.f32 %v1503_v48  ;;  %v406_v54 = vrot.slane %v3960_v26, %v405_v7 }
 0x2b4   :  { %v3325_v52 = vpop.eup %3324  ;;  %3340 = vrcp.f32 %v1504_v51  ;;  %v1599_v20 = vmul.f32 %v3323_v49, %v3967_v36  ;;  %v3173_v51 = vld [vmem:[#allocation11 + $0x170] ss:$8 sps:$4 sm:$0xff]  }
 0x2b5   :  { %v3327_v53 = vpop.eup %3326  ;;  %v1600_v58 = vmul.f32 %v3325_v52, %v3969_v43 }
 0x2b6   :  { %v3329_v19 = vpop.eup %3328  ;;  %v1607_v35 = vmul.f32 %v3327_v53, %v3972_v22  ;;  %v3155_v22 = vld [vmem:[#allocation11 + $0x110] ss:$8 sps:$4 sm:$0xff]   ;;  %v3178_v53 = vld [vmem:[#allocation11 + $0x184] ss:$8 sps:$4 sm:$0xff]  }
 0x2b7   :  { %v3331_v57 = vpop.eup %3330  ;;  %v1608_v60 = vmul.f32 %v3329_v19, %v3975_v47 }
 0x2b8   :  { %v3333_v61 = vpop.eup %3332  ;;  %v1511_v50 = vadd.f32 1.0, %v3331_v57  ;;  %v1639_v0 = vpack.c.bf16 %v1607_v35, %v1599_v20 }
 0x2b9   :  { %v1512_v13 = vadd.f32 1.0, %v3333_v61  ;;  %v1640_v14 = vpack.c.bf16 %v1608_v60, %v1600_v58 }
 0x2ba   :  { %3342 = vrcp.f32 %v1511_v50  ;;  %v3176_v50 = vld [vmem:[#allocation11 + $0x180] ss:$8 sps:$4 sm:$0xff]  }
 0x2bb   :  { %v3335_v59 = vpop.eup %3334  ;;  %3344 = vrcp.f32 %v1512_v13  ;;  %2475 = vmatprep.mubr.bf16.mxu0 %v1640_v14  ;;  %v3181_v14 = vld [vmem:[#allocation11 + $0x194] ss:$8 sps:$4 sm:$0xff]  }
 0x2bc   :  { %v3337_v2 = vpop.eup %3336  ;;  %2476 = vmatmul.mubr.bf16.vlgmr.msra.gmra.mrb[0].mxu0 %v1639_v0  ;;  %v1615_v43 = vmul.f32 %v3335_v59, %v3979_v55  ;;  %v3161_v55 = vld [vmem:[#allocation11 + $0x130] ss:$8 sps:$4 sm:$0xff]  }
 0x2bd   :  { %v3339_v36 = vpop.eup %3338  ;;  %2505 = vmatpush1.bf16.msra.mxu0 %v3152_v1  ;;  %v1616_v28 = vmul.f32 %v3337_v2, %v3981_v56  ;;  %v3166_v56 = vld [vmem:[#allocation11 + $0x144] ss:$8 sps:$4 sm:$0xff]  }
 0x2be   :  { %v3341_v21 = vpop.eup %3340  ;;  %v1623_v47 = vmul.f32 %v3339_v36, %v3984_v8  ;;  %2506 = vmatprep.subr.bf16.mxu0 %v3157_v17 }
 0x2bf   :  { %v1624_v30 = vmul.f32 %v3341_v21, %v3987_v62  ;;  %v3164_v62 = vld [vmem:[#allocation11 + $0x140] ss:$8 sps:$4 sm:$0xff]  }
 0x2c0   :  { %v1647_v31 = vpack.c.bf16 %v1623_v47, %v1615_v43  ;;  %v3184_v47 = vld [vmem:[#allocation11 + $0x1a4] ss:$8 sps:$4 sm:$0xff]  }
 0x2c1   :  { %2507 = vmatpush1.bf16.msra.mxu0 %v3155_v22  ;;  %v1648_v23 = vpack.c.bf16 %v1624_v30, %v1616_v28  ;;  %v3179_v22 = vld [vmem:[#allocation11 + $0x190] ss:$8 sps:$4 sm:$0xff]  }
 0x2c2   :  { %2508 = vmatprep.subr.bf16.mxu0 %v3160_v27 }
 0x2c3   :  { %2485 = vmatprep.mubr.bf16.mxu0 %v1648_v23 }
 0x2c4   :  { %v3343_v34 = vpop.eup %3342  ;;  %2486 = vmatmul.mubr.bf16.gmra.mrb[4].mxu0 %v1647_v31 }
 0x2c5   :  { %v3345_v37 = vpop.eup %3344  ;;  %2509 = vmatpush1.bf16.msra.mxu0 %v3158_v24  ;;  %v1631_v8 = vmul.f32 %v3343_v34, %v3991_v18  ;;  %v409_v18 = vsub.s32 3, %v3900_v38  ;;  %v3182_v34 = vld [vmem:[#allocation11 + $0x1a0] ss:$8 sps:$4 sm:$0xff]  }
 0x2c6   :  { %v1632_v25 = vmul.f32 %v3345_v37, %v3993_v29  ;;  %2510 = vmatprep.subr.bf16.mxu0 %v3163_v33  ;;  %v3170_v29 = vld [vmem:[#allocation11 + $0x160] ss:$8 sps:$4 sm:$0xff]  }
 0x2c7   :  { %v1655_v40 = vpack.c.bf16 %v1631_v8, %v1631_v8  ;;  %v4011_v63 = vrot.slane %v3960_v26, %v409_v18  ;;  %v3187_v8 = vld [vmem:[#allocation11 + $0x1b4] ss:$8 sps:$4 sm:$0xff]   ;;  %v3190_v18 = vld [vmem:[#allocation11 + $0x1c4] ss:$8 sps:$4 sm:$0xff]  }
 0x2c8   :  { %v1656_v39 = vpack.c.bf16 %v1632_v25, %v1632_v25 }
 0x2c9   :  { %2511 = vmatpush1.bf16.msra.mxu0 %v3161_v55 }
 0x2ca   :  { %2495 = vmatprep.mubr.bf16.mxu0 %v1656_v39  ;;  %2512 = vmatprep.subr.bf16.mxu0 %v3166_v56 }
 0x2cc   :  { %2496 = vmatmul.mubr.bf16.gmra.mrb[8].mxu0 %v1655_v40 }
 0x2cd   :  { %2513 = vmatpush1.bf16.msra.mxu0 %v3164_v62 }
 0x2ce   :  { %2514 = vmatprep.subr.bf16.mxu0 %v3169_v42  ;;  %v3185_v42 = vld [vmem:[#allocation11 + $0x1b0] ss:$8 sps:$4 sm:$0xff]  }
 0x2d1   :  { %2515 = vmatpush1.bf16.msra.mxu0 %v3167_v41 }
 0x2d2   :  { %2516 = vmatprep.subr.bf16.mxu0 %v3172_v32 }
 0x2d5   :  { %v1170_v48 = vpop.f32.mrb[12].mxu1  ;;  %2517 = vmatpush1.bf16.msra.mxu0 %v3170_v29 }
 0x2d6   :  { %v4013_v49 = vadd.f32 %v1170_v48, %v406_v54  ;;  %v1172_v52 = vpop.f32.mrb[13].mxu1  ;;  %2518 = vmatprep.subr.bf16.mxu0 %v3175_v44 }
 0x2d7   :  { %v4016_v19 = vadd.f32 %v1172_v52, %v4011_v63  ;;  %v1174_v20 = vpop.f32.mrb[14].mxu1 }
 0x2d8   :  { %v2884_v35 = vmul.f32 -1.702, %v4013_v49  ;;  %v4019_v57 = vadd.f32 %v1174_v20, %v406_v54  ;;  %v1176_v58 = vpop.f32.mrb[15].mxu1 }
 0x2d9   :  { %v2885_v60 = vmul.f32 -1.702, %v4016_v19  ;;  %v4023_v61 = vadd.f32 %v1176_v58, %v4011_v63  ;;  %2519 = vmatpush1.bf16.msra.mxu0 %v3173_v51 }
 0x2da   :  { %v1403_v0 = vmul.f32 1.442695, %v2884_v35  ;;  %v2892_v13 = vmul.f32 -1.702, %v4019_v57  ;;  %2520 = vmatprep.subr.bf16.mxu0 %v3178_v53 }
 0x2db   :  { %v1405_v1 = vmul.f32 1.442695, %v2885_v60  ;;  %v2893_v17 = vmul.f32 -1.702, %v4023_v61 }
 0x2dc   :  { %3346 = vpow2.f32 %v1403_v0  ;;  %v1419_v59 = vmul.f32 1.442695, %v2892_v13 }
 0x2dd   :  { %3348 = vpow2.f32 %v1405_v1  ;;  %v1421_v2 = vmul.f32 1.442695, %v2893_v17  ;;  %v1180_v36 = vpop.f32.mrb[16].mxu1  ;;  %2521 = vmatpush1.bf16.msra.mxu0 %v3176_v50  ;;  %v3188_v50 = vld [vmem:[#allocation11 + $0x1c0] ss:$8 sps:$4 sm:$0xff]  }
 0x2de   :  { %3350 = vpow2.f32 %v1419_v59  ;;  %v4027_v21 = vadd.f32 %v1180_v36, %v406_v54  ;;  %v1182_v43 = vpop.f32.mrb[17].mxu1  ;;  %2522 = vmatprep.subr.bf16.mxu0 %v3181_v14  ;;  %v3193_v14 = vld [vmem:[#allocation11 + $0x1d4] ss:$8 sps:$4 sm:$0xff]   ;;  %v3191_v1 = vld [vmem:[#allocation11 + $0x1d0] ss:$8 sps:$4 sm:$0xff]  }
 0x2df   :  { %3352 = vpow2.f32 %v1421_v2  ;;  %v4030_v27 = vadd.f32 %v1182_v43, %v4011_v63  ;;  %v1184_v28 = vpop.f32.mrb[18].mxu1  ;;  %v3196_v59 = vld [vmem:[#allocation11 + $0x1e4] ss:$8 sps:$4 sm:$0xff]  }
 0x2e0   :  { %v2900_v30 = vmul.f32 -1.702, %v4027_v21  ;;  %v4033_v31 = vadd.f32 %v1184_v28, %v406_v54  ;;  %v1186_v23 = vpop.f32.mrb[19].mxu1 }
 0x2e1   :  { %v2901_v24 = vmul.f32 -1.702, %v4030_v27  ;;  %v4037_v33 = vadd.f32 %v1186_v23, %v4011_v63  ;;  %2523 = vmatpush1.bf16.msra.mxu0 %v3179_v22 }
 0x2e2   :  { %v1435_v37 = vmul.f32 1.442695, %v2900_v30  ;;  %v2908_v55 = vmul.f32 -1.702, %v4033_v31  ;;  %2524 = vmatprep.subr.bf16.mxu0 %v3184_v47  ;;  %v3194_v30 = vld [vmem:[#allocation11 + $0x1e0] ss:$8 sps:$4 sm:$0xff]  }
 0x2e3   :  { %v1437_v25 = vmul.f32 1.442695, %v2901_v24  ;;  %v2909_v56 = vmul.f32 -1.702, %v4037_v33  ;;  %v3199_v24 = vld [vmem:[#allocation11 + $0x1f4] ss:$8 sps:$4 sm:$0xff]  }
 0x2e4   :  { %3354 = vpow2.f32 %v1435_v37  ;;  %v1451_v39 = vmul.f32 1.442695, %v2908_v55 }
 0x2e5   :  { %3356 = vpow2.f32 %v1437_v25  ;;  %v1453_v62 = vmul.f32 1.442695, %v2909_v56  ;;  %v1190_v40 = vpop.f32.mrb[20].mxu1  ;;  %2525 = vmatpush1.bf16.msra.mxu0 %v3182_v34 }
 0x2e6   :  { %v3347_v41 = vpop.eup %3346  ;;  %3358 = vpow2.f32 %v1451_v39  ;;  %v4041_v32 = vadd.f32 %v1190_v40, %v406_v54  ;;  %v1192_v7 = vpop.f32.mrb[21].mxu1  ;;  %2526 = vmatprep.subr.bf16.mxu0 %v3187_v8  ;;  %v3197_v8 = vld [vmem:[#allocation11 + $0x1f0] ss:$8 sps:$4 sm:$0xff]  }
 0x2e7   :  { %v3349_v29 = vpop.eup %3348  ;;  %v1481_v44 = vadd.f32 1.0, %v3347_v41  ;;  %3360 = vpow2.f32 %v1453_v62  ;;  %v4044_v48 = vadd.f32 %v1192_v7, %v4011_v63  ;;  %v1194_v51 = vpop.f32.mrb[22].mxu1  ;;  %v3202_v62 = vld [vmem:[#allocation11 + $0x204] ss:$8 sps:$4 sm:$0xff]  }
 0x2e8   :  { %v3351_v52 = vpop.eup %3350  ;;  %v1482_v53 = vadd.f32 1.0, %v3349_v29  ;;  %v2916_v20 = vmul.f32 -1.702, %v4041_v32  ;;  %v1195_v35 = vpop.f32.mrb[23].mxu1 }
 0x2e9   :  { %v3353_v58 = vpop.eup %3352  ;;  %3362 = vrcp.f32 %v1481_v44  ;;  %v1489_v60 = vadd.f32 1.0, %v3351_v52  ;;  %v2917_v54 = vmul.f32 -1.702, %v4044_v48  ;;  %2527 = vmatpush1.bf16.msra.mxu0 %v3185_v42  ;;  %v3200_v52 = vld [vmem:[#allocation11 + $0x200] ss:$8 sps:$4 sm:$0xff]  }
 0x2ea   :  { %3364 = vrcp.f32 %v1482_v53  ;;  %v1490_v0 = vadd.f32 1.0, %v3353_v58  ;;  %v1467_v13 = vmul.f32 1.442695, %v2916_v20  ;;  %2528 = vmatprep.subr.bf16.mxu0 %v3190_v18  ;;  %v3205_v53 = vld [vmem:[#allocation11 + $0x214] ss:$8 sps:$4 sm:$0xff]  }
 0x2eb   :  { %3366 = vrcp.f32 %v1489_v60  ;;  %v1469_v63 = vmul.f32 1.442695, %v2917_v54  ;;  %v3208_v60 = vld [vmem:[#allocation11 + $0x224] ss:$8 sps:$4 sm:$0xff]  }
 0x2ec   :  { %3368 = vrcp.f32 %v1490_v0 }
 0x2ed   :  { %3370 = vpow2.f32 %v1467_v13  ;;  %2529 = vmatpush1.bf16.msra.mxu0 %v3188_v50 }
 0x2ee   :  { %v3355_v17 = vpop.eup %3354  ;;  %3372 = vpow2.f32 %v1469_v63  ;;  %2530 = vmatprep.subr.bf16.mxu0 %v3193_v14  ;;  %v3206_v14 = vld [vmem:[#allocation11 + $0x220] ss:$8 sps:$4 sm:$0xff]   ;;  %v3211_v63 = vld [vmem:[#allocation11 + $0x234] ss:$8 sps:$4 sm:$0xff]  }
 0x2ef   :  { %v3357_v2 = vpop.eup %3356  ;;  %v1497_v36 = vadd.f32 1.0, %v3355_v17 }
 0x2f0   :  { %v3359_v22 = vpop.eup %3358  ;;  %v1498_v43 = vadd.f32 1.0, %v3357_v2 }
 0x2f1   :  { %v3361_v47 = vpop.eup %3360  ;;  %3374 = vrcp.f32 %v1497_v36  ;;  %v1505_v28 = vadd.f32 1.0, %v3359_v22  ;;  %2531 = vmatpush1.bf16.msra.mxu0 %v3191_v1  ;;  %v3217_v22 = vld [vmem:[#allocation11 + $0x254] ss:$8 sps:$4 sm:$0xff]  }
 0x2f2   :  { %3376 = vrcp.f32 %v1498_v43  ;;  %v1506_v23 = vadd.f32 1.0, %v3361_v47  ;;  %2532 = vmatprep.subr.bf16.mxu0 %v3196_v59  ;;  %v3215_v43 = vld [vmem:[#allocation11 + $0x250] ss:$8 sps:$4 sm:$0xff]   ;;  %v3220_v47 = vld [vmem:[#allocation11 + $0x264] ss:$8 sps:$4 sm:$0xff]  }
 0x2f3   :  { %v3363_v34 = vpop.eup %3362  ;;  %3378 = vrcp.f32 %v1505_v28  ;;  %v413_v28 = vsub.s32 4, %v3900_v38 }
 0x2f4   :  { %v3365_v37 = vpop.eup %3364  ;;  %3380 = vrcp.f32 %v1506_v23  ;;  %v1601_v56 = vmul.f32 %v3363_v34, %v4013_v49  ;;  %v3223_v23 = vld [vmem:[#allocation11 + $0x274] ss:$8 sps:$4 sm:$0xff]  }
 0x2f5   :  { %v3367_v55 = vpop.eup %3366  ;;  %2533 = vmatpush1.bf16.msra.mxu0 %v3194_v30  ;;  %v1602_v42 = vmul.f32 %v3365_v37, %v4016_v19  ;;  %v3203_v19 = vld [vmem:[#allocation11 + $0x210] ss:$8 sps:$4 sm:$0xff]   ;;  %v414_v30 = vrot.slane %v3960_v26, %v413_v28 }
 0x2f6   :  { %v3369_v25 = vpop.eup %3368  ;;  %v1609_v39 = vmul.f32 %v3367_v55, %v4019_v57  ;;  %2534 = vmatprep.subr.bf16.mxu0 %v3199_v24  ;;  %v3221_v37 = vld [vmem:[#allocation11 + $0x270] ss:$8 sps:$4 sm:$0xff]  }
 0x2f7   :  { %v3371_v40 = vpop.eup %3370  ;;  %v1610_v41 = vmul.f32 %v3369_v25, %v4023_v61  ;;  %v3226_v25 = vld [vmem:[#allocation11 + $0x284] ss:$8 sps:$4 sm:$0xff]  }
 0x2f8   :  { %v3373_v7 = vpop.eup %3372  ;;  %v1641_v18 = vpack.c.bf16 %v1609_v39, %v1601_v56  ;;  %v1513_v29 = vadd.f32 1.0, %v3371_v40 }
 0x2f9   :  { %v1514_v44 = vadd.f32 1.0, %v3373_v7  ;;  %2535 = vmatpush1.bf16.msra.mxu0 %v3197_v8  ;;  %v1642_v51 = vpack.c.bf16 %v1610_v41, %v1602_v42 }
 0x2fa   :  { %3382 = vrcp.f32 %v1513_v29  ;;  %2565 = vmatprep.subr.bf16.mxu0 %v3202_v62 }
 0x2fb   :  { %v3375_v49 = vpop.eup %3374  ;;  %3384 = vrcp.f32 %v1514_v44  ;;  %2536 = vmatprep.mubr.bf16.mxu0 %v1642_v51  ;;  %v3229_v51 = vld [vmem:[#allocation11 + $0x294] ss:$8 sps:$4 sm:$0xff]  }
 0x2fc   :  { %v3377_v57 = vpop.eup %3376  ;;  %2537 = vmatmul.mubr.bf16.vlgmr.msra.gmra.mrb[0].mxu0 %v1641_v18  ;;  %v1617_v61 = vmul.f32 %v3375_v49, %v4027_v21  ;;  %v3209_v21 = vld [vmem:[#allocation11 + $0x230] ss:$8 sps:$4 sm:$0xff]   ;;  %v3224_v18 = vld [vmem:[#allocation11 + $0x280] ss:$8 sps:$4 sm:$0xff]  }
 0x2fd   :  { %v3379_v20 = vpop.eup %3378  ;;  %2566 = vmatpush1.bf16.msra.mxu0 %v3200_v52  ;;  %v1618_v54 = vmul.f32 %v3377_v57, %v4030_v27  ;;  %v3214_v27 = vld [vmem:[#allocation11 + $0x244] ss:$8 sps:$4 sm:$0xff]  }
 0x2fe   :  { %v3381_v35 = vpop.eup %3380  ;;  %v1625_v58 = vmul.f32 %v3379_v20, %v4033_v31  ;;  %2567 = vmatprep.subr.bf16.mxu0 %v3205_v53 }
 0x2ff   :  { %v1626_v50 = vmul.f32 %v3381_v35, %v4037_v33  ;;  %v3212_v33 = vld [vmem:[#allocation11 + $0x240] ss:$8 sps:$4 sm:$0xff]  }
 0x300   :  { %v1649_v0 = vpack.c.bf16 %v1625_v58, %v1617_v61  ;;  %v3232_v58 = vld [vmem:[#allocation11 + $0x2a4] ss:$8 sps:$4 sm:$0xff]  }
 0x301   :  { %2568 = vmatpush1.bf16.msra.mxu0 %v3203_v19  ;;  %v1650_v13 = vpack.c.bf16 %v1626_v50, %v1618_v54  ;;  %v3227_v19 = vld [vmem:[#allocation11 + $0x290] ss:$8 sps:$4 sm:$0xff]  }
 0x302   :  { %2569 = vmatprep.subr.bf16.mxu0 %v3208_v60 }
 0x303   :  { %2546 = vmatprep.mubr.bf16.mxu0 %v1650_v13 }
 0x304   :  { %v3383_v1 = vpop.eup %3382  ;;  %2547 = vmatmul.mubr.bf16.gmra.mrb[4].mxu0 %v1649_v0 }
 0x305   :  { %v3385_v17 = vpop.eup %3384  ;;  %2570 = vmatpush1.bf16.msra.mxu0 %v3206_v14  ;;  %v1633_v31 = vmul.f32 %v3383_v1, %v4041_v32  ;;  %v417_v32 = vsub.s32 5, %v3900_v38  ;;  %v3230_v1 = vld [vmem:[#allocation11 + $0x2a0] ss:$8 sps:$4 sm:$0xff]  }
 0x306   :  { %v1634_v59 = vmul.f32 %v3385_v17, %v4044_v48  ;;  %2571 = vmatprep.subr.bf16.mxu0 %v3211_v63  ;;  %v3218_v48 = vld [vmem:[#allocation11 + $0x260] ss:$8 sps:$4 sm:$0xff]  }
 0x307   :  { %v1657_v36 = vpack.c.bf16 %v1633_v31, %v1633_v31  ;;  %v4062_v24 = vrot.slane %v3960_v26, %v417_v32  ;;  %v3235_v31 = vld [vmem:[#allocation11 + $0x2b4] ss:$8 sps:$4 sm:$0xff]   ;;  %v3238_v32 = vld [vmem:[#allocation11 + $0x2c4] ss:$8 sps:$4 sm:$0xff]  }
 0x308   :  { %v1658_v2 = vpack.c.bf16 %v1634_v59, %v1634_v59 }
 0x309   :  { %2572 = vmatpush1.bf16.msra.mxu0 %v3209_v21 }
 0x30a   :  { %2556 = vmatprep.mubr.bf16.mxu0 %v1658_v2  ;;  %2573 = vmatprep.subr.bf16.mxu0 %v3214_v27 }
 0x30c   :  { %2557 = vmatmul.mubr.bf16.gmra.mrb[12].mxu0 %v1657_v36 }
 0x30d   :  { %2574 = vmatpush1.bf16.msra.mxu0 %v3212_v33 }
 0x30e   :  { %2575 = vmatprep.subr.bf16.mxu0 %v3217_v22  ;;  %v3233_v22 = vld [vmem:[#allocation11 + $0x2b0] ss:$8 sps:$4 sm:$0xff]  }
 0x311   :  { %2576 = vmatpush1.bf16.msra.mxu0 %v3215_v43 }
 0x312   :  { %2577 = vmatprep.subr.bf16.mxu0 %v3220_v47 }
 0x315   :  { %v1231_v34 = vpop.f32.mrb[24].mxu1  ;;  %2578 = vmatpush1.bf16.msra.mxu0 %v3218_v48 }
 0x316   :  { %v4064_v55 = vadd.f32 %v1231_v34, %v414_v30  ;;  %v1233_v8 = vpop.f32.mrb[25].mxu1  ;;  %2579 = vmatprep.subr.bf16.mxu0 %v3223_v23 }
 0x317   :  { %v4067_v56 = vadd.f32 %v1233_v8, %v4062_v24  ;;  %v1235_v39 = vpop.f32.mrb[26].mxu1 }
 0x318   :  { %v2886_v62 = vmul.f32 -1.702, %v4064_v55  ;;  %v4070_v40 = vadd.f32 %v1235_v39, %v414_v30  ;;  %v1237_v42 = vpop.f32.mrb[27].mxu1 }
 0x319   :  { %v2887_v41 = vmul.f32 -1.702, %v4067_v56  ;;  %v4074_v7 = vadd.f32 %v1237_v42, %v4062_v24  ;;  %2580 = vmatpush1.bf16.msra.mxu0 %v3221_v37 }
 0x31a   :  { %v1407_v29 = vmul.f32 1.442695, %v2886_v62  ;;  %v2894_v44 = vmul.f32 -1.702, %v4070_v40  ;;  %2581 = vmatprep.subr.bf16.mxu0 %v3226_v25 }
 0x31b   :  { %v1409_v52 = vmul.f32 1.442695, %v2887_v41  ;;  %v2895_v53 = vmul.f32 -1.702, %v4074_v7 }
 0x31c   :  { %3386 = vpow2.f32 %v1407_v29  ;;  %v1423_v49 = vmul.f32 1.442695, %v2894_v44 }
 0x31d   :  { %3388 = vpow2.f32 %v1409_v52  ;;  %v1425_v57 = vmul.f32 1.442695, %v2895_v53  ;;  %v1241_v20 = vpop.f32.mrb[28].mxu1  ;;  %2582 = vmatpush1.bf16.msra.mxu0 %v3224_v18  ;;  %v3236_v18 = vld [vmem:[#allocation11 + $0x2c0] ss:$8 sps:$4 sm:$0xff]  }
 0x31e   :  { %3390 = vpow2.f32 %v1423_v49  ;;  %v4078_v35 = vadd.f32 %v1241_v20, %v414_v30  ;;  %v1243_v61 = vpop.f32.mrb[29].mxu1  ;;  %2583 = vmatprep.subr.bf16.mxu0 %v3229_v51  ;;  %v3241_v51 = vld [vmem:[#allocation11 + $0x2d4] ss:$8 sps:$4 sm:$0xff]   ;;  %v3239_v52 = vld [vmem:[#allocation11 + $0x2d0] ss:$8 sps:$4 sm:$0xff]  }
 0x31f   :  { %3392 = vpow2.f32 %v1425_v57  ;;  %v4081_v60 = vadd.f32 %v1243_v61, %v4062_v24  ;;  %v1245_v54 = vpop.f32.mrb[30].mxu1  ;;  %v3244_v49 = vld [vmem:[#allocation11 + $0x2e4] ss:$8 sps:$4 sm:$0xff]  }
 0x320   :  { %v2902_v50 = vmul.f32 -1.702, %v4078_v35  ;;  %v4084_v0 = vadd.f32 %v1245_v54, %v414_v30  ;;  %v1247_v13 = vpop.f32.mrb[31].mxu1 }
 0x321   :  { %v2903_v14 = vmul.f32 -1.702, %v4081_v60  ;;  %v4088_v63 = vadd.f32 %v1247_v13, %v4062_v24  ;;  %2584 = vmatpush1.bf16.msra.mxu0 %v3227_v19 }
 0x322   :  { %v1439_v17 = vmul.f32 1.442695, %v2902_v50  ;;  %v2910_v21 = vmul.f32 -1.702, %v4084_v0  ;;  %2585 = vmatprep.subr.bf16.mxu0 %v3232_v58  ;;  %v3242_v50 = vld [vmem:[#allocation11 + $0x2e0] ss:$8 sps:$4 sm:$0xff]  }
 0x323   :  { %v1441_v59 = vmul.f32 1.442695, %v2903_v14  ;;  %v2911_v27 = vmul.f32 -1.702, %v4088_v63  ;;  %v3247_v14 = vld [vmem:[#allocation11 + $0x2f4] ss:$8 sps:$4 sm:$0xff]  }
 0x324   :  { %3394 = vpow2.f32 %v1439_v17  ;;  %v1455_v2 = vmul.f32 1.442695, %v2910_v21 }
 0x325   :  { %3396 = vpow2.f32 %v1441_v59  ;;  %v1457_v33 = vmul.f32 1.442695, %v2911_v27  ;;  %v1251_v36 = vpop.f32.mrb[32].mxu1  ;;  %2586 = vmatpush1.bf16.msra.mxu0 %v3230_v1 }
 0x326   :  { %v3387_v43 = vpop.eup %3386  ;;  %3398 = vpow2.f32 %v1455_v2  ;;  %v4092_v47 = vadd.f32 %v1251_v36, %v414_v30  ;;  %v1253_v28 = vpop.f32.mrb[33].mxu1  ;;  %2587 = vmatprep.subr.bf16.mxu0 %v3235_v31  ;;  %v3245_v31 = vld [vmem:[#allocation11 + $0x2f0] ss:$8 sps:$4 sm:$0xff]  }
 0x327   :  { %v3389_v48 = vpop.eup %3388  ;;  %v1483_v23 = vadd.f32 1.0, %v3387_v43  ;;  %3400 = vpow2.f32 %v1457_v33  ;;  %v4095_v34 = vadd.f32 %v1253_v28, %v4062_v24  ;;  %v1255_v37 = vpop.f32.mrb[34].mxu1  ;;  %v3250_v33 = vld [vmem:[#allocation11 + $0x304] ss:$8 sps:$4 sm:$0xff]  }
 0x328   :  { %v3391_v8 = vpop.eup %3390  ;;  %v1484_v25 = vadd.f32 1.0, %v3389_v48  ;;  %v2918_v39 = vmul.f32 -1.702, %v4092_v47  ;;  %v1256_v62 = vpop.f32.mrb[35].mxu1 }
 0x329   :  { %v3393_v42 = vpop.eup %3392  ;;  %3402 = vrcp.f32 %v1483_v23  ;;  %v1491_v41 = vadd.f32 1.0, %v3391_v8  ;;  %v2919_v30 = vmul.f32 -1.702, %v4095_v34  ;;  %2588 = vmatpush1.bf16.msra.mxu0 %v3233_v22  ;;  %v3248_v8 = vld [vmem:[#allocation11 + $0x300] ss:$8 sps:$4 sm:$0xff]  }
 0x32a   :  { %3404 = vrcp.f32 %v1484_v25  ;;  %v1492_v29 = vadd.f32 1.0, %v3393_v42  ;;  %v1471_v44 = vmul.f32 1.442695, %v2918_v39  ;;  %2589 = vmatprep.subr.bf16.mxu0 %v3238_v32  ;;  %v3253_v25 = vld [vmem:[#allocation11 + $0x314] ss:$8 sps:$4 sm:$0xff]  }
 0x32b   :  { %3406 = vrcp.f32 %v1491_v41  ;;  %v1473_v24 = vmul.f32 1.442695, %v2919_v30  ;;  %v3256_v41 = vld [vmem:[#allocation11 + $0x324] ss:$8 sps:$4 sm:$0xff]  }
 0x32c   :  { %3408 = vrcp.f32 %v1492_v29 }
 0x32d   :  { %3410 = vpow2.f32 %v1471_v44  ;;  %2590 = vmatpush1.bf16.msra.mxu0 %v3236_v18 }
 0x32e   :  { %v3395_v53 = vpop.eup %3394  ;;  %3412 = vpow2.f32 %v1473_v24  ;;  %2591 = vmatprep.subr.bf16.mxu0 %v3241_v51  ;;  %v3254_v51 = vld [vmem:[#allocation11 + $0x320] ss:$8 sps:$4 sm:$0xff]   ;;  %v3259_v24 = vld [vmem:[#allocation11 + $0x334] ss:$8 sps:$4 sm:$0xff]  }
 0x32f   :  { %v3397_v57 = vpop.eup %3396  ;;  %v1499_v20 = vadd.f32 1.0, %v3395_v53 }
 0x330   :  { %v3399_v19 = vpop.eup %3398  ;;  %v1500_v61 = vadd.f32 1.0, %v3397_v57 }
 0x331   :  { %v3401_v58 = vpop.eup %3400  ;;  %3414 = vrcp.f32 %v1499_v20  ;;  %v1507_v54 = vadd.f32 1.0, %v3399_v19  ;;  %2592 = vmatpush1.bf16.msra.mxu0 %v3239_v52  ;;  %v3265_v19 = vld [vmem:[#allocation11 + $0x354] ss:$8 sps:$4 sm:$0xff]  }
 0x332   :  { %3416 = vrcp.f32 %v1500_v61  ;;  %v1508_v13 = vadd.f32 1.0, %v3401_v58  ;;  %2593 = vmatprep.subr.bf16.mxu0 %v3244_v49  ;;  %v3263_v61 = vld [vmem:[#allocation11 + $0x350] ss:$8 sps:$4 sm:$0xff]   ;;  %v3268_v58 = vld [vmem:[#allocation11 + $0x364] ss:$8 sps:$4 sm:$0xff]  }
 0x333   :  { %v3403_v1 = vpop.eup %3402  ;;  %3418 = vrcp.f32 %v1507_v54  ;;  %v421_v54 = vsub.s32 6, %v3900_v38 }
 0x334   :  { %v3405_v17 = vpop.eup %3404  ;;  %3420 = vrcp.f32 %v1508_v13  ;;  %v1603_v27 = vmul.f32 %v3403_v1, %v4064_v55  ;;  %v3271_v13 = vld [vmem:[#allocation11 + $0x374] ss:$8 sps:$4 sm:$0xff]  }
 0x335   :  { %v3407_v21 = vpop.eup %3406  ;;  %2594 = vmatpush1.bf16.msra.mxu0 %v3242_v50  ;;  %v1604_v22 = vmul.f32 %v3405_v17, %v4067_v56  ;;  %v3251_v56 = vld [vmem:[#allocation11 + $0x310] ss:$8 sps:$4 sm:$0xff]   ;;  %v422_v50 = vrot.slane %v3960_v26, %v421_v54 }
 0x336   :  { %v3409_v59 = vpop.eup %3408  ;;  %v1611_v2 = vmul.f32 %v3407_v21, %v4070_v40  ;;  %2595 = vmatprep.subr.bf16.mxu0 %v3247_v14  ;;  %v3269_v17 = vld [vmem:[#allocation11 + $0x370] ss:$8 sps:$4 sm:$0xff]  }
 0x337   :  { %v3411_v36 = vpop.eup %3410  ;;  %v1612_v43 = vmul.f32 %v3409_v59, %v4074_v7  ;;  %v3274_v59 = vld [vmem:[#allocation11 + $0x384] ss:$8 sps:$4 sm:$0xff]  }
 0x338   :  { %v3413_v28 = vpop.eup %3412  ;;  %v1643_v32 = vpack.c.bf16 %v1611_v2, %v1603_v27  ;;  %v1515_v48 = vadd.f32 1.0, %v3411_v36 }
 0x339   :  { %v1516_v23 = vadd.f32 1.0, %v3413_v28  ;;  %2596 = vmatpush1.bf16.msra.mxu0 %v3245_v31  ;;  %v1644_v37 = vpack.c.bf16 %v1612_v43, %v1604_v22  ;;  %v3272_v43 = vld [vmem:[#allocation11 + $0x380] ss:$8 sps:$4 sm:$0xff]  }
 0x33a   :  { %3422 = vrcp.f32 %v1515_v48  ;;  %2626 = vmatprep.subr.bf16.mxu0 %v3250_v33  ;;  %v3277_v48 = vld [vmem:[#allocation11 + $0x394] ss:$8 sps:$4 sm:$0xff]  }
 0x33b   :  { %v3415_v55 = vpop.eup %3414  ;;  %3424 = vrcp.f32 %v1516_v23  ;;  %2597 = vmatprep.mubr.bf16.mxu0 %v1644_v37 }
 0x33c   :  { %v3417_v40 = vpop.eup %3416  ;;  %2598 = vmatmul.mubr.bf16.vlgmr.msra.gmra.mrb[0].mxu0 %v1643_v32  ;;  %v1619_v7 = vmul.f32 %v3415_v55, %v4078_v35  ;;  %v3257_v35 = vld [vmem:[#allocation11 + $0x330] ss:$8 sps:$4 sm:$0xff]  }
 0x33d   :  { %v3419_v39 = vpop.eup %3418  ;;  %2627 = vmatpush1.bf16.msra.mxu0 %v3248_v8  ;;  %v1620_v30 = vmul.f32 %v3417_v40, %v4081_v60  ;;  %v3262_v60 = vld [vmem:[#allocation11 + $0x344] ss:$8 sps:$4 sm:$0xff]   ;;  %v3275_v40 = vld [vmem:[#allocation11 + $0x390] ss:$8 sps:$4 sm:$0xff]  }
 0x33e   :  { %v3421_v62 = vpop.eup %3420  ;;  %v1627_v42 = vmul.f32 %v3419_v39, %v4084_v0  ;;  %2628 = vmatprep.subr.bf16.mxu0 %v3253_v25 }
 0x33f   :  { %v1628_v18 = vmul.f32 %v3421_v62, %v4088_v63  ;;  %v3260_v63 = vld [vmem:[#allocation11 + $0x340] ss:$8 sps:$4 sm:$0xff]   ;;  %v3280_v62 = vld [vmem:[#allocation11 + $0x3a4] ss:$8 sps:$4 sm:$0xff]  }
 0x340   :  { %v1651_v29 = vpack.c.bf16 %v1627_v42, %v1619_v7 }
 0x341   :  { %2629 = vmatpush1.bf16.msra.mxu0 %v3251_v56  ;;  %v1652_v44 = vpack.c.bf16 %v1628_v18, %v1620_v30 }
 0x342   :  { %2630 = vmatprep.subr.bf16.mxu0 %v3256_v41 }
 0x343   :  { %2607 = vmatprep.mubr.bf16.mxu0 %v1652_v44 }
 0x344   :  { %v3423_v52 = vpop.eup %3422  ;;  %2608 = vmatmul.mubr.bf16.gmra.mrb[4].mxu0 %v1651_v29 }
 0x345   :  { %v3425_v53 = vpop.eup %3424  ;;  %2631 = vmatpush1.bf16.msra.mxu0 %v3254_v51  ;;  %v1635_v0 = vmul.f32 %v3423_v52, %v4092_v47  ;;  %v425_v47 = vsub.s32 7, %v3900_v38  ;;  %v3278_v51 = vld [vmem:[#allocation11 + $0x3a0] ss:$8 sps:$4 sm:$0xff]  }
 0x346   :  { %v1636_v49 = vmul.f32 %v3425_v53, %v4095_v34  ;;  %2632 = vmatprep.subr.bf16.mxu0 %v3259_v24  ;;  %v3266_v34 = vld [vmem:[#allocation11 + $0x360] ss:$8 sps:$4 sm:$0xff]   ;;  %v3283_v53 = vld [vmem:[#allocation11 + $0x3b4] ss:$8 sps:$4 sm:$0xff]  }
 0x347   :  { %v1659_v20 = vpack.c.bf16 %v1635_v0, %v1635_v0  ;;  %v4113_v14 = vrot.slane %v3960_v26, %v425_v47 }
 0x348   :  { %v1660_v57 = vpack.c.bf16 %v1636_v49, %v1636_v49 }
 0x349   :  { %2633 = vmatpush1.bf16.msra.mxu0 %v3257_v35 }
 0x34a   :  { %2617 = vmatprep.mubr.bf16.mxu0 %v1660_v57  ;;  %2634 = vmatprep.subr.bf16.mxu0 %v3262_v60 }
 0x34c   :  { %2618 = vmatmul.mubr.bf16.gmra.mrb[16].mxu0 %v1659_v20 }
 0x34d   :  { %2635 = vmatpush1.bf16.msra.mxu0 %v3260_v63  ;;  %v3281_v63 = vld [vmem:[#allocation11 + $0x3b0] ss:$8 sps:$4 sm:$0xff]  }
 0x34e   :  { %2636 = vmatprep.subr.bf16.mxu0 %v3265_v19 }
 0x351   :  { %2637 = vmatpush1.bf16.msra.mxu0 %v3263_v61 }
 0x352   :  { %2638 = vmatprep.subr.bf16.mxu0 %v3268_v58  ;;  %v3286_v58 = vld [vmem:[#allocation11 + $0x3c4] ss:$8 sps:$4 sm:$0xff]  }
 0x355   :  { %v1292_v1 = vpop.f32.mrb[36].mxu1  ;;  %2639 = vmatpush1.bf16.msra.mxu0 %v3266_v34 }
 0x356   :  { %v4115_v21 = vadd.f32 %v1292_v1, %v422_v50  ;;  %v1294_v31 = vpop.f32.mrb[37].mxu1  ;;  %2640 = vmatprep.subr.bf16.mxu0 %v3271_v13 }
 0x357   :  { %v4118_v27 = vadd.f32 %v1294_v31, %v4113_v14  ;;  %v1296_v38 = vpop.f32.mrb[38].mxu1 }
 0x358   :  { %v2888_v2 = vmul.f32 -1.702, %v4115_v21  ;;  %v4121_v33 = vadd.f32 %v1296_v38, %v422_v50  ;;  %v1298_v36 = vpop.f32.mrb[39].mxu1 }
 0x359   :  { %v2889_v26 = vmul.f32 -1.702, %v4118_v27  ;;  %v4125_v22 = vadd.f32 %v1298_v36, %v4113_v14  ;;  %2641 = vmatpush1.bf16.msra.mxu0 %v3269_v17  ;;  %v3284_v36 = vld [vmem:[#allocation11 + $0x3c0] ss:$8 sps:$4 sm:$0xff]  }
 0x35a   :  { %v1411_v28 = vmul.f32 1.442695, %v2888_v2  ;;  %v2896_v32 = vmul.f32 -1.702, %v4121_v33  ;;  %2642 = vmatprep.subr.bf16.mxu0 %v3274_v59 }
 0x35b   :  { %v1413_v23 = vmul.f32 1.442695, %v2889_v26  ;;  %v2897_v37 = vmul.f32 -1.702, %v4125_v22 }
 0x35c   :  { %3426 = vpow2.f32 %v1411_v28  ;;  %v1427_v8 = vmul.f32 1.442695, %v2896_v32  ;;  %v3289_v28 = vld [vmem:[#allocation11 + $0x3d4] ss:$8 sps:$4 sm:$0xff]   ;;  %v3287_v32 = vld [vmem:[#allocation11 + $0x3d0] ss:$8 sps:$4 sm:$0xff]  }
 0x35d   :  { %3428 = vpow2.f32 %v1413_v23  ;;  %v1429_v25 = vmul.f32 1.442695, %v2897_v37  ;;  %v1302_v55 = vpop.f32.mrb[40].mxu1  ;;  %2643 = vmatpush1.bf16.msra.mxu0 %v3272_v43  ;;  %v3292_v23 = vld [vmem:[#allocation11 + $0x3e4] ss:$8 sps:$4 sm:$0xff]  }
 0x35e   :  { %3430 = vpow2.f32 %v1427_v8  ;;  %v4129_v39 = vadd.f32 %v1302_v55, %v422_v50  ;;  %v1304_v56 = vpop.f32.mrb[41].mxu1  ;;  %2644 = vmatprep.subr.bf16.mxu0 %v3277_v48 }
 0x35f   :  { %3432 = vpow2.f32 %v1429_v25  ;;  %v4132_v7 = vadd.f32 %v1304_v56, %v4113_v14  ;;  %v1306_v42 = vpop.f32.mrb[42].mxu1 }
 0x360   :  { %v2904_v41 = vmul.f32 -1.702, %v4129_v39  ;;  %v4135_v30 = vadd.f32 %v1306_v42, %v422_v50  ;;  %v1308_v18 = vpop.f32.mrb[43].mxu1 }
 0x361   :  { %v2905_v29 = vmul.f32 -1.702, %v4132_v7  ;;  %v4139_v44 = vadd.f32 %v1308_v18, %v4113_v14  ;;  %2645 = vmatpush1.bf16.msra.mxu0 %v3275_v40 }
 0x362   :  { %v1443_v24 = vmul.f32 1.442695, %v2904_v41  ;;  %v2912_v52 = vmul.f32 -1.702, %v4135_v30  ;;  %2646 = vmatprep.subr.bf16.mxu0 %v3280_v62  ;;  %v3290_v62 = vld [vmem:[#allocation11 + $0x3e0] ss:$8 sps:$4 sm:$0xff]  }
 0x363   :  { %v1445_v35 = vmul.f32 1.442695, %v2905_v29  ;;  %v2913_v0 = vmul.f32 -1.702, %v4139_v44  ;;  %v3295_v41 = vld [vmem:[#allocation11 + $0x3f4] ss:$8 sps:$4 sm:$0xff]  }
 0x364   :  { %3434 = vpow2.f32 %v1443_v24  ;;  %v1459_v49 = vmul.f32 1.442695, %v2912_v52  ;;  %v3293_v24 = vld [vmem:[#allocation11 + $0x3f0] ss:$8 sps:$4 sm:$0xff]  }
 0x365   :  { %3436 = vpow2.f32 %v1445_v35  ;;  %v1461_v60 = vmul.f32 1.442695, %v2913_v0  ;;  %v1312_v57 = vpop.f32.mrb[44].mxu1  ;;  %2647 = vmatpush1.bf16.msra.mxu0 %v3278_v51 }
 0x366   :  { %v3427_v20 = vpop.eup %3426  ;;  %3438 = vpow2.f32 %v1459_v49  ;;  %v4143_v19 = vadd.f32 %v1312_v57, %v422_v50  ;;  %v1314_v61 = vpop.f32.mrb[45].mxu1  ;;  %2648 = vmatprep.subr.bf16.mxu0 %v3283_v53 }
 0x367   :  { %v3429_v54 = vpop.eup %3428  ;;  %v1485_v47 = vadd.f32 1.0, %v3427_v20  ;;  %3440 = vpow2.f32 %v1461_v60  ;;  %v4146_v34 = vadd.f32 %v1314_v61, %v4113_v14  ;;  %v1316_v13 = vpop.f32.mrb[46].mxu1 }
 0x368   :  { %v3431_v1 = vpop.eup %3430  ;;  %v1486_v17 = vadd.f32 1.0, %v3429_v54  ;;  %v2920_v31 = vmul.f32 -1.702, %v4143_v19  ;;  %v1317_v59 = vpop.f32.mrb[47].mxu1 }
 0x369   :  { %v3433_v38 = vpop.eup %3432  ;;  %3442 = vrcp.f32 %v1485_v47  ;;  %v1493_v2 = vadd.f32 1.0, %v3431_v1  ;;  %v2921_v50 = vmul.f32 -1.702, %v4146_v34  ;;  %2649 = vmatpush1.bf16.msra.mxu0 %v3281_v63 }
 0x36a   :  { %3444 = vrcp.f32 %v1486_v17  ;;  %v1494_v26 = vadd.f32 1.0, %v3433_v38  ;;  %v1475_v43 = vmul.f32 1.442695, %v2920_v31  ;;  %2650 = vmatprep.subr.bf16.mxu0 %v3286_v58 }
 0x36b   :  { %3446 = vrcp.f32 %v1493_v2  ;;  %v1477_v14 = vmul.f32 1.442695, %v2921_v50 }
 0x36c   :  { %3448 = vrcp.f32 %v1494_v26 }
 0x36d   :  { %3450 = vpow2.f32 %v1475_v43  ;;  %2651 = vmatpush1.bf16.msra.mxu0 %v3284_v36 }
 0x36e   :  { %v3435_v48 = vpop.eup %3434  ;;  %3452 = vpow2.f32 %v1477_v14  ;;  %2652 = vmatprep.subr.bf16.mxu0 %v3289_v28  ;;  %v1791_v28 = vld [vmem:[#allocation13] sm:$0x3] }
 0x36f   :  { %v3437_v37 = vpop.eup %3436  ;;  %v1501_v8 = vadd.f32 1.0, %v3435_v48  ;;  %v1800_v14 = vrot.slane %v1791_v28, %v3903_v45 }
 0x370   :  { %v3439_v25 = vpop.eup %3438  ;;  %v1502_v55 = vadd.f32 1.0, %v3437_v37 }
 0x371   :  { %v3441_v40 = vpop.eup %3440  ;;  %3454 = vrcp.f32 %v1501_v8  ;;  %v1509_v56 = vadd.f32 1.0, %v3439_v25  ;;  %2653 = vmatpush1.bf16.msra.mxu0 %v3287_v32 }
 0x372   :  { %3456 = vrcp.f32 %v1502_v55  ;;  %v1510_v42 = vadd.f32 1.0, %v3441_v40  ;;  %2654 = vmatprep.subr.bf16.mxu0 %v3292_v23 }
 0x373   :  { %v3443_v18 = vpop.eup %3442  ;;  %3458 = vrcp.f32 %v1509_v56 }
 0x374   :  { %v3445_v29 = vpop.eup %3444  ;;  %3460 = vrcp.f32 %v1510_v42  ;;  %v1605_v53 = vmul.f32 %v3443_v18, %v4115_v21 }
 0x375   :  { %v3447_v51 = vpop.eup %3446  ;;  %2655 = vmatpush1.bf16.msra.mxu0 %v3290_v62  ;;  %v1606_v49 = vmul.f32 %v3445_v29, %v4118_v27 }
 0x376   :  { %v3449_v52 = vpop.eup %3448  ;;  %v1613_v35 = vmul.f32 %v3447_v51, %v4121_v33  ;;  %2656 = vmatprep.subr.bf16.mxu0 %v3295_v41 }
 0x377   :  { %v3451_v0 = vpop.eup %3450  ;;  %v1614_v60 = vmul.f32 %v3449_v52, %v4125_v22 }
 0x378   :  { %v3453_v57 = vpop.eup %3452  ;;  %v1645_v63 = vpack.c.bf16 %v1613_v35, %v1605_v53  ;;  %v1517_v20 = vadd.f32 1.0, %v3451_v0 }
 0x379   :  { %v1518_v61 = vadd.f32 1.0, %v3453_v57  ;;  %2657 = vmatpush1.bf16.msra.mxu0 %v3293_v24  ;;  %v1646_v58 = vpack.c.bf16 %v1614_v60, %v1606_v49 }
 0x37a   :  { %3462 = vrcp.f32 %v1517_v20 }
 0x37b   :  { %v3455_v54 = vpop.eup %3454  ;;  %3464 = vrcp.f32 %v1518_v61  ;;  %2658 = vmatprep.mubr.bf16.mxu0 %v1646_v58 }
 0x37c   :  { %v3457_v47 = vpop.eup %3456  ;;  %2659 = vmatmul.mubr.bf16.vlgmr.msra.gmra.mrb[0].mxu0 %v1645_v63  ;;  %v1621_v13 = vmul.f32 %v3455_v54, %v4129_v39 }
 0x37d   :  { %v3459_v21 = vpop.eup %3458  ;;  %v1622_v22 = vmul.f32 %v3457_v47, %v4132_v7 }
 0x37e   :  { %v3461_v33 = vpop.eup %3460  ;;  %v1629_v27 = vmul.f32 %v3459_v21, %v4135_v30 }
 0x37f   :  { %v1630_v1 = vmul.f32 %v3461_v33, %v4139_v44  ;;  %v1796_v44 = vrot.slane %v1791_v28, %v3906_v46 }
 0x380   :  { %v1653_v17 = vpack.c.bf16 %v1629_v27, %v1621_v13 }
 0x381   :  { %v1654_v31 = vpack.c.bf16 %v1630_v1, %v1622_v22 }
 0x383   :  { %2668 = vmatprep.mubr.bf16.mxu0 %v1654_v31 }
 0x384   :  { %v3463_v59 = vpop.eup %3462  ;;  %2669 = vmatmul.mubr.bf16.gmra.mrb[4].mxu0 %v1653_v17 }
 0x385   :  { %v3465_v38 = vpop.eup %3464  ;;  %v1637_v2 = vmul.f32 %v3463_v59, %v4143_v19 }
 0x386   :  { %v1638_v50 = vmul.f32 %v3465_v38, %v4146_v34 }
 0x387   :  { %v1661_v26 = vpack.c.bf16 %v1637_v2, %v1637_v2 }
 0x388   :  { %v1662_v36 = vpack.c.bf16 %v1638_v50, %v1638_v50 }
 0x38a   :  { %2678 = vmatprep.mubr.bf16.mxu0 %v1662_v36 }
 0x38c   :  { %2679 = vmatmul.mubr.bf16.gmra.mrb[20].mxu0 %v1661_v26 }
 0x39f   :  { %v2497_v39 = vpop.f32.mrb[8].mxu0 }
 0x3a0   :  { %v2499_v30 = vpop.f32.mrb[9].mxu0  ;;  %v2498_v32 = vadd.f32 %v2497_v39, %v1796_v44 }
 0x3a1   :  { %v2501_v43 = vpop.f32.mrb[10].mxu0  ;;  %v2500_v48 = vadd.f32 %v2499_v30, %v1800_v14 }
 0x3a2   :  { %v2502_v7 = vpop.f32.mrb[11].mxu0 }
 0x3df   :  { %v2558_v23 = vpop.f32.mrb[12].mxu0 }
 0x3e0   :  { %v2559_v37 = vadd.f32 %v2558_v23, %v2498_v32  ;;  %v2560_v19 = vpop.f32.mrb[13].mxu0 }
 0x3e1   :  { %v2561_v8 = vadd.f32 %v2560_v19, %v2500_v48  ;;  %v2562_v34 = vpop.f32.mrb[14].mxu0 }
 0x3e2   :  { %v2563_v25 = vpop.f32.mrb[15].mxu0 }
 0x41f   :  { %v2619_v55 = vpop.f32.mrb[16].mxu0 }
 0x420   :  { %v2620_v40 = vadd.f32 %v2619_v55, %v2559_v37  ;;  %v2621_v56 = vpop.f32.mrb[17].mxu0 }
 0x421   :  { %v2622_v62 = vadd.f32 %v2621_v56, %v2561_v8  ;;  %v2623_v42 = vpop.f32.mrb[18].mxu0 }
 0x422   :  { %v2624_v41 = vpop.f32.mrb[19].mxu0 }
 0x44f   :  { %v2660_v18 = vpop.f32.mrb[0].mxu0 }
 0x450   :  { %v3060_v29 = vadd.f32 %v2660_v18, %v1796_v44  ;;  %v2662_v51 = vpop.f32.mrb[1].mxu0 }
 0x451   :  { %v3061_v46 = vadd.f32 %v2662_v51, %v1800_v14  ;;  %v2664_v24 = vpop.f32.mrb[2].mxu0 }
 0x452   :  { %v2687_v45 = vadd.f32 %v3060_v29, %v3808_v3  ;;  %v3062_v52 = vadd.f32 %v2664_v24, %v1796_v44  ;;  %v2666_v53 = vpop.f32.mrb[3].mxu0 }
 0x453   :  { %v2688_v35 = vadd.f32 %v3061_v46, %v3810_v4  ;;  %v3063_v0 = vadd.f32 %v2666_v53, %v1800_v14 }
 0x454   :  { %v2689_v49 = vadd.f32 %v3062_v52, %v3816_v9 }
 0x455   :  { %v3055_v60 = vpack.c.bf16 %v2688_v35, %v2687_v45  ;;  %v2690_v57 = vadd.f32 %v3063_v0, %v3818_v10 }
 0x457   :  { %2729 = vst [vmem:[#allocation14] sm:$0xff] %v3055_v60  ;;  %v3056_v63 = vpack.c.bf16 %v2690_v57, %v2689_v49  ;;  %v2670_v20 = vpop.f32.mrb[4].mxu0 }
 0x458   :  { %v3064_v61 = vadd.f32 %v2670_v20, %v1796_v44  ;;  %v2672_v58 = vpop.f32.mrb[5].mxu0 }
 0x459   :  { %2730 = vst [vmem:[#allocation14 + $0x8] sm:$0xff] %v3056_v63  ;;  %v3065_v54 = vadd.f32 %v2672_v58, %v1800_v14  ;;  %v2674_v47 = vpop.f32.mrb[6].mxu0 }
 0x45a   :  { %v2691_v3 = vadd.f32 %v3064_v61, %v3812_v5  ;;  %v3066_v21 = vadd.f32 %v2674_v47, %v1796_v44  ;;  %v2676_v33 = vpop.f32.mrb[7].mxu0 }
 0x45b   :  { %v2692_v4 = vadd.f32 %v3065_v54, %v3814_v6  ;;  %v3067_v13 = vadd.f32 %v2676_v33, %v1800_v14 }
 0x45c   :  { %v2693_v9 = vadd.f32 %v3066_v21, %v3820_v11 }
 0x45d   :  { %v3057_v27 = vpack.c.bf16 %v2692_v4, %v2691_v3  ;;  %v2694_v10 = vadd.f32 %v3067_v13, %v3822_v12 }
 0x45f   :  { %2731 = vst [vmem:[#allocation14 + $0x10] sm:$0xff] %v3057_v27  ;;  %v3058_v22 = vpack.c.bf16 %v2694_v10, %v2693_v9  ;;  %v2680_v1 = vpop.f32.mrb[20].mxu0 }
 0x460   :  { %v2681_v17 = vadd.f32 %v2680_v1, %v2620_v40  ;;  %v2682_v31 = vpop.f32.mrb[21].mxu0 }
 0x461   :  { %2732 = vst [vmem:[#allocation14 + $0x18] sm:$0xff] %v3058_v22  ;;  %v2683_v59 = vadd.f32 %v2682_v31, %v2622_v62  ;;  %v2684_v38 = vpop.f32.mrb[22].mxu0 }
 0x462   :  { %v2695_v5 = vadd.f32 %v2681_v17, %v3828_v15  ;;  %v2685_v2 = vpop.f32.mrb[23].mxu0 }
 0x463   :  { %v2696_v6 = vadd.f32 %v2683_v59, %v3830_v16 }
 0x465   :  { %v3059_v50 = vpack.c.bf16 %v2696_v6, %v2695_v5 }
 0x467   :  { %2733 = vst [vmem:[#allocation14 + $0x20] sm:$0x11] %v3059_v50 }
 0x468   :  { %3631 = shalt.err (!%p3628_p4)
}
 0x469   :  { %s3632_s16 = scalar_lea.hbm %s4194_s7, 640 }
 0x46a   :  { %p3633_p5 = scmp.ne.s32.totalorder %s4194_s7, %s3632_s16  ;;  %p3636_p6 = scmp.lt.u32.totalorder %s3632_s16, %s4194_s7 }
 0x46c   :  { %p3638_p7 = pnand %p3636_p6, %p3633_p5 }
 0x46e   :  { %3641 = shalt.err (!%p3638_p7)
}
 0x46f   :  { %2745 = dma.vmem_to_hbm [thread:$0]  %s2740_s14, 640, %s4194_s7, [#allocation4], %s3658_s27, %s3658_s27, %s3659_s15  }
 0x470   :  { %3650 = dma.done.wait [#allocation4], 640  }
 0x471   :  { %3651 = vsyncadd [#allocation4], 4294966656 }
 0x472   :  { %2749 = vsyncpa [#allocation3], 1 }
 0x473   :  { %2750 = vsyncpa [#allocation6], 1 }
 0x474   :  { %2751 = vsyncpa [#allocation9], 1 }
 0x475   :  { %2752 = vsyncpa [#allocation12], 1 }
 0x476   :  { %2753 = vsyncpa [#allocation4], 1 }

</bundles_post_ra>
